<compile_context>
chip_gen: v5e
topology: v5e:2x2
jax: 0.10.0
libtpu: 0.0.40
codegen_flags: <defaults>
</compile_context>

<pallas_src>
import functools

import jax
import jax.numpy as jnp
from jax.experimental import pallas as pl
from jax.experimental.pallas import tpu as pltpu


def _round_up(x, m):
    return (x + m - 1) // m * m


# ============================================================================
# Pallas kernel: full bidirectional CLSTM recurrence (one grid step per dir)
# ============================================================================
def _bdclstm_seq_kernel(lens_ref, *refs, num_layers, K, W, M):
    """Fused bidirectional CLSTM recurrence in transposed (C, M) layout.

    grid = (direction,).  The time loop runs in-kernel (fori_loop over the
    per-direction sequence length read from SMEM).

    refs layout (after the scalar-prefetch `lens_ref`):
      refs[0]                x_ref    (T, Cin, M)            bf16  (dir slice)
      refs[1]                mask_ref (K*K, M)               f32   (resident)
      refs[2 + 2*l + 0]      wcat_l   (4*hid, K*K*cc16_l)    bf16
      refs[2 + 2*l + 1]      b_l      (4*hid, 1)             f32
      refs[2 + 2*L]          hout     (hid_last, M)          f32   output
      per layer scratch (3 each, after outputs):
        comb_l (cc16_l, M) f32   [rows 0:cin = x, cin:cin+hid = recurrent h]
        c_l    (hid_l, M)  f32
        slab_l (K*K*cc16_l, M) bf16   im2col staging for the deep matmul
    """
    L = num_layers
    x_ref, mask_ref = refs[0], refs[1]
    w_refs = [(refs[2 + 2 * l], refs[3 + 2 * l]) for l in range(L)]
    hout_ref = refs[2 + 2 * L]
    base = 3 + 2 * L
    lyr_refs = [(refs[base + 3 * l], refs[base + 3 * l + 1],
                 refs[base + 3 * l + 2]) for l in range(L)]

    cin0 = x_ref.shape[1]
    hids = [c_ref.shape[0] for _, c_ref, _ in lyr_refs]
    cins = [cin0] + hids[:-1]

    d = pl.program_id(0)
    pad = (K - 1) // 2
    # Static lane shifts per tap: out[:, p] must read comb[:, p + dy*W + dx].
    shifts = [(-((ky - pad) * W + (kx - pad))) % M
              for ky in range(K) for kx in range(K)]

    # Reset recurrent state at the start of each direction (h lives inside
    # comb_ref rows [cin:cin+hid]; pad rows cc..cc16 stay zero forever).
    for comb_ref, c_ref, _ in lyr_refs:
        comb_ref[...] = jnp.zeros_like(comb_ref)
        c_ref[...] = jnp.zeros_like(c_ref)

    def step(t, carry):
        inp = x_ref[t].astype(jnp.float32)               # (cin0, M)
        for l in range(L):
            wcat_ref, b_ref = w_refs[l]
            comb_ref, c_ref, slab_ref = lyr_refs[l]
            cin, hid = cins[l], hids[l]
            cc = cin + hid
            cc16 = comb_ref.shape[0]

            # combined = cat(x, h) in PyTorch channel order.
            comb_ref[0:cin, :] = inp
            comb = comb_ref[...]                          # (cc16, M) f32

            # im2col slab: tap-major, 16-row-aligned blocks, shift on XLU,
            # boundary mask from the precomputed table, bf16 for the MXU.
            for k in range(K * K):
                r = comb if shifts[k] == 0 else pltpu.roll(comb, shifts[k],
                                                           axis=1)
                slab_ref[k * cc16:(k + 1) * cc16, :] = (
                    r * mask_ref[k, :]).astype(jnp.bfloat16)

            # Single deep matmul: (4*hid, K*K*cc16) @ (K*K*cc16, M), f32 acc.
            a = jnp.dot(wcat_ref[...], slab_ref[...],
                        preferred_element_type=jnp.float32) + b_ref[...]

            # Gate order matches torch.split(A, hidden, dim=1): i, f, o, g.
            i = jax.nn.sigmoid(a[0 * hid:1 * hid])
            f = jax.nn.sigmoid(a[1 * hid:2 * hid])
            o = jax.nn.sigmoid(a[2 * hid:3 * hid])
            g = jnp.tanh(a[3 * hid:4 * hid])
            c_new = c_ref[...] * f + i * g
            h_new = o * jnp.tanh(c_new)
            c_ref[...] = c_new
            comb_ref[cin:cc, :] = h_new                   # recurrent h (f32)
            inp = h_new                                   # feeds next layer
        return carry

    jax.lax.fori_loop(0, lens_ref[d], step, 0)

    cin_l, hid_l = cins[-1], hids[-1]
    hout_ref[...] = lyr_refs[-1][0][cin_l:cin_l + hid_l, :]


def clstm_bidir_seq(lens, x_seq, masks, layer_params, *, W, K, lens_py):
    """Run both CLSTM directions in one pallas_call.

    lens:  (2,) int32     per-direction sequence length (scalar prefetch).
    x_seq: (2, T, Cin, M) bf16, right-padded per-frame inputs, M = B*H*W.
    masks: (K*K, M) f32   per-tap boundary-validity masks.
    Returns (2, hid_last, M) f32: last layer's h at the final timestep.
    """
    D, T, Cin, M = x_seq.shape
    L = len(layer_params)
    hid_last = layer_params[-1]["hidden"]

    in_specs = [
        pl.BlockSpec((None, T, Cin, M), lambda d, ln: (d, 0, 0, 0)),
        pl.BlockSpec(masks.shape, lambda d, ln: (0, 0)),
    ]
    flat_w = []
    scratch = []
    for p in layer_params:
        in_specs += [
            pl.BlockSpec((None,) + p["wcat"].shape[1:],
                         lambda d, ln: (d, 0, 0)),
            pl.BlockSpec((None,) + p["b"].shape[1:],
                         lambda d, ln: (d, 0, 0)),
        ]
        flat_w += [p["wcat"], p["b"]]
        scratch += [
            pltpu.VMEM((p["cc16"], M), jnp.float32),          # comb (x | h)
            pltpu.VMEM((p["hidden"], M), jnp.float32),        # c state
            pltpu.VMEM((K * K * p["cc16"], M), jnp.bfloat16),  # im2col slab
        ]
    out_spec = pl.BlockSpec((None, hid_last, M), lambda d, ln: (d, 0, 0))

    # Cost estimate with the ACTUAL number of timesteps (no padding steps).
    flops = 0
    trans = 0
    for d in range(D):
        n = int(lens_py[d])
        for p in layer_params:
            hid = p["hidden"]
            flops += 2 * n * (4 * hid) * (K * K * p["cc16"]) * M
            trans += 6 * n * hid * M
    bytes_accessed = (x_seq.size * x_seq.dtype.itemsize
                      + masks.size * masks.dtype.itemsize
                      + sum(int(w.size) * w.dtype.itemsize for w in flat_w)
                      + D * hid_last * M * 4)

    kern = functools.partial(_bdclstm_seq_kernel, num_layers=L, K=K, W=W, M=M)
    return pl.pallas_call(
        kern,
        grid_spec=pltpu.PrefetchScalarGridSpec(
            num_scalar_prefetch=1,
            grid=(D,),
            in_specs=in_specs,
            out_specs=out_spec,
            scratch_shapes=scratch),
        out_shape=jax.ShapeDtypeStruct((D, hid_last, M), jnp.float32),
        # "arbitrary": sequential grid => the shared VMEM scratch is safe.
        # (CORE_PARALLEL on v7x would need per-core scratch verification.)
        compiler_params=pltpu.CompilerParams(
            dimension_semantics=("arbitrary",)),
        cost_estimate=pl.CostEstimate(flops=int(flops),
                                      transcendentals=int(trans),
                                      bytes_accessed=int(bytes_accessed)),
    )(lens, x_seq, masks, *flat_w)


# ============================================================================
# Forward pass (NCHW in / NCHW out)
# ============================================================================
def bdclstm_forward(params, previous_list, current_frame, next_list):
    """BDCLSTM.forward.  Frame tensors are NCHW (B, C, H, W); output is NCHW."""
    B, C, H, W = current_frame.shape
    M = B * H * W
    K = params["kernel_size"]
    pad = (K - 1) // 2

    def to_cm(x):                     # (B, C, H, W) -> (C, B*H*W), lane-dense
        return jnp.transpose(x, (1, 0, 2, 3)).reshape(C, M)

    fwd = [to_cm(x) for x in previous_list] + [to_cm(current_frame)]
    rev = [to_cm(current_frame)] + [to_cm(x) for x in next_list]
    T = max(len(fwd), len(rev))

    def right_pad(frames):
        zero = jnp.zeros((C, M), jnp.float32)
        return jnp.stack(frames + [zero] * (T - len(frames)), axis=0)

    x_seq = jnp.stack([right_pad(fwd), right_pad(rev)],
                      axis=0).astype(jnp.bfloat16)          # (2, T, C, M)
    lens_py = (len(fwd), len(rev))
    lens = jnp.array(lens_py, dtype=jnp.int32)

    # Per-tap boundary-validity masks (hoisted out of the kernel hot loop).
    pos = jnp.arange(M, dtype=jnp.int32)
    yy = (pos // W) % H
    xx = pos % W
    rows = []
    for ky in range(K):
        for kx in range(K):
            dy, dx = ky - pad, kx - pad
            rows.append((yy + dy >= 0) & (yy + dy < H)
                        & (xx + dx >= 0) & (xx + dx < W))
    masks = jnp.stack(rows, axis=0).astype(jnp.float32)      # (K*K, M)

    hlast = clstm_bidir_seq(lens, x_seq, masks, params["layers"],
                            W=W, K=K, lens_py=lens_py)
    hid_last = params["layers"][-1]["hidden"]
    hcat = hlast.reshape(2 * hid_last, M)   # channel concat of (fwd, rev)

    # Final 1x1 conv: tiny (NC x 2*hid x M) GEMM -> done in the wrapper
    # instead of a second pallas_call (launch + roundtrip >> 16 KFLOP).
    y_t = jnp.dot(params["conv_w"], hcat,
                  precision=jax.lax.Precision.HIGHEST) + params["conv_b"]
    num_classes = params["conv_w"].shape[0]
    y = y_t.reshape(num_classes, B, H, W)
    return jnp.transpose(y, (1, 0, 2, 3))                    # NCHW
    # TODO(synk): self.soft (nn.Softmax2d) is unused in the reference forward,
    # so it is intentionally not applied here.


# ============================================================================
# Parameters (synthetic, PyTorch layout -> kernel layout)
# ============================================================================
def convert_clstm_conv_params(w_torch, b_torch, K):
    """PyTorch Conv2d params of one CLSTM layer (stacked over directions) ->
    fused im2col-matmul layout.

    w_torch: (2, 4*hid, cin + hid, K, K)   [input channels = cat(x, h) order]
    b_torch: (2, 4*hid)
    returns wcat (2, 4*hid, K*K*cc16) bf16 (tap-major; per tap the column
            block is [x channels, h channels, zero pad to cc16]),
            b (2, 4*hid, 1) f32, cc16.
    """
    D, c4h, cc = w_torch.shape[0], w_torch.shape[1], w_torch.shape[2]
    cc16 = _round_up(cc, 16)
    w = jnp.transpose(w_torch, (0, 3, 4, 1, 2)).reshape(D, K * K, c4h, cc)
    w = jnp.pad(w, ((0, 0), (0, 0), (0, 0), (0, cc16 - cc)))
    wcat = jnp.transpose(w, (0, 2, 1, 3)).reshape(D, c4h, K * K * cc16)
    return (wcat.astype(jnp.bfloat16),
            b_torch.astype(jnp.float32)[:, :, None], cc16)


def init_bdclstm_params(key, input_channels, hidden_channels, K, num_classes):
    """Deterministic synthetic parameters generated in the PyTorch layout and
    converted to the kernel layout (documents the permutation needed to load
    real checkpoints)."""
    in_chs = [input_channels] + list(hidden_channels)
    layers = []
    for li, hid in enumerate(hidden_channels):
        assert hid % 2 == 0
        c_l = in_chs[li]
        cc = c_l + hid
        bound = 1.0 / float(cc * K * K) ** 0.5
        key, kw_f, kw_r, kb_f, kb_r = jax.random.split(key, 5)
        w_torch = jnp.stack(
            [jax.random.uniform(kw_f, (4 * hid, cc, K, K), jnp.float32,
                                -bound, bound),
             jax.random.uniform(kw_r, (4 * hid, cc, K, K), jnp.float32,
                                -bound, bound)], axis=0)
        b_torch = jnp.stack(
            [jax.random.uniform(kb_f, (4 * hid,), jnp.float32, -bound, bound),
             jax.random.uniform(kb_r, (4 * hid,), jnp.float32, -bound, bound)],
            axis=0)
        wcat, b, cc16 = convert_clstm_conv_params(w_torch, b_torch, K)
        layers.append({"wcat": wcat, "b": b, "hidden": hid, "cin": c_l,
                       "cc16": cc16, "w_torch": w_torch, "b_torch": b_torch})
    key, kcw, kcb = jax.random.split(key, 3)
    c2 = 2 * hidden_channels[-1]
    bound = 1.0 / float(c2) ** 0.5
    conv_w = jax.random.uniform(kcw, (num_classes, c2), jnp.float32,
                                -bound, bound)
    conv_b = jax.random.uniform(kcb, (num_classes, 1), jnp.float32,
                                -bound, bound)
    return {"layers": layers, "conv_w": conv_w, "conv_b": conv_b,
            "kernel_size": K}


# ============================================================================
# Plain-JAX f32 reference (mirrors the PyTorch module), used for validation
# ============================================================================
def reference_bdclstm(params, previous_list, current_frame, next_list):
    def cell(x, h, c, w, b):
        comb = jnp.concatenate([x, h], axis=1)
        a = jax.lax.conv_general_dilated(
            comb, w, (1, 1), "SAME",
            dimension_numbers=("NCHW", "OIHW", "NCHW"),
            precision=jax.lax.Precision.HIGHEST) + b[None, :, None, None]
        ai, af, ao, ag = jnp.split(a, 4, axis=1)
        i, f = jax.nn.sigmoid(ai), jax.nn.sigmoid(af)
        o, g = jax.nn.sigmoid(ao), jnp.tanh(ag)
        c = c * f + i * g
        h = o * jnp.tanh(c)
        return h, c

    def clstm(frames, d):
        B, _, H, W = frames[0].shape
        states = [(jnp.zeros((B, p["hidden"], H, W), jnp.float32),
                   jnp.zeros((B, p["hidden"], H, W), jnp.float32))
                  for p in params["layers"]]
        out = None
        for x in frames:
            inp = x
            for li, p in enumerate(params["layers"]):
                h, c = states[li]
                h, c = cell(inp, h, c, p["w_torch"][d], p["b_torch"][d])
                states[li] = (h, c)
                inp = h
            out = inp
        return out

    yf = clstm(list(previous_list) + [current_frame], 0)
    yr = clstm([current_frame] + list(next_list), 1)
    ycat = jnp.concatenate([yf, yr], axis=1)
    y = jnp.einsum("oc,bchw->bohw", params["conv_w"], ycat,
                   precision=jax.lax.Precision.HIGHEST)
    return y + params["conv_b"].reshape(1, -1, 1, 1)


# ============================================================================
if __name__ == "__main__":
    key = jax.random.PRNGKey(0)

    B, C, H, W = 2, 4, 16, 16
    hidden_channels = [8]
    kernel_size = 5
    num_classes = 1
    n_prev, n_next = 2, 2

    key, kparam = jax.random.split(key)
    params = init_bdclstm_params(kparam, C, hidden_channels, kernel_size,
                                 num_classes)

    keys = jax.random.split(key, n_prev + n_next + 1)
    previous_list = [jax.random.normal(keys[i], (B, C, H, W), jnp.float32)
                     for i in range(n_prev)]
    next_list = [jax.random.normal(keys[n_prev + i], (B, C, H, W), jnp.float32)
                 for i in range(n_next)]
    current_frame = jax.random.normal(keys[-1], (B, C, H, W), jnp.float32)

    y = bdclstm_forward(params, previous_list, current_frame, next_list)
    y = jax.block_until_ready(y)
    assert y.shape == (B, num_classes, H, W), y.shape

    # Cross-check against the plain-JAX f32 reference (bf16 MXU inputs in the
    # kernel => loose tolerance).
    y_ref = reference_bdclstm(params, previous_list, current_frame, next_list)
    err = float(jnp.max(jnp.abs(y - y_ref)))
    assert err < 5e-2, f"kernel/reference mismatch: max abs err = {err}"

    print("KERNEL_OK")
</pallas_src>

<mosaic_0001>
module attributes {stable_mosaic.version = 11 : i64} {
  func.func @_bdclstm_seq_kernel(%arg0: i32, %arg1: memref<2xi32, #tpu.memory_space<smem>>, %arg2: memref<1x3x4x512xbf16, #tpu.memory_space<vmem>>, %arg3: memref<25x512xf32, #tpu.memory_space<vmem>>, %arg4: memref<1x32x400xbf16, #tpu.memory_space<vmem>>, %arg5: memref<1x32x1xf32, #tpu.memory_space<vmem>>, %arg6: memref<1x8x512xf32, #tpu.memory_space<vmem>>, %arg7: memref<16x512xf32, #tpu.memory_space<vmem>>, %arg8: memref<8x512xf32, #tpu.memory_space<vmem>>, %arg9: memref<400x512xbf16, #tpu.memory_space<vmem>>) attributes {dimension_semantics = [#tpu.dimension_semantics<arbitrary>], iteration_bounds = array<i64: 2>, scalar_prefetch = 1 : i64, scratch_operands = 3 : i64, tpu.core_type = #tpu.core_type<tc>, window_params = [{transform_indices = @transform_0, window_bounds = array<i64: 1, 3, 4, 512>}, {pipeline_mode = #tpu.pipeline_mode<synchronous>, transform_indices = @transform_1, window_bounds = array<i64: 25, 512>}, {transform_indices = @transform_2, window_bounds = array<i64: 1, 32, 400>}, {transform_indices = @transform_3, window_bounds = array<i64: 1, 32, 1>}, {transform_indices = @transform_4, window_bounds = array<i64: 1, 8, 512>}]} {
    %cst = arith.constant 0.000000e+00 : f32
    %0 = vector.broadcast %cst : f32 to vector<16x512xf32>
    %c0 = arith.constant 0 : index
    %c0_0 = arith.constant 0 : index
    %1 = vector.load %arg7[%c0, %c0_0] : memref<16x512xf32, #tpu.memory_space<vmem>>, vector<16x512xf32>
    tpu.vector_store %arg7[%c0, %c0_0], %0 {strides = array<i32>} : memref<16x512xf32, #tpu.memory_space<vmem>>, vector<16x512xf32>,
    %cst_1 = arith.constant 0.000000e+00 : f32
    %2 = vector.broadcast %cst_1 : f32 to vector<8x512xf32>
    %c0_2 = arith.constant 0 : index
    %c0_3 = arith.constant 0 : index
    %3 = vector.load %arg8[%c0_2, %c0_3] : memref<8x512xf32, #tpu.memory_space<vmem>>, vector<8x512xf32>
    tpu.vector_store %arg8[%c0_2, %c0_3], %2 {strides = array<i32>} : memref<8x512xf32, #tpu.memory_space<vmem>>, vector<8x512xf32>,
    %4 = arith.index_cast %arg0 : i32 to index
    %5 = memref.load %arg1[%4] : memref<2xi32, #tpu.memory_space<smem>>
    %c0_i32 = arith.constant 0 : i32
    %c0_i32_4 = arith.constant 0 : i32
    %6 = arith.subi %5, %c0_i32_4 : i32
    %7 = arith.addi %c0_i32_4, %6 : i32
    %c1_i32 = arith.constant 1 : i32
    scf.for %arg10 = %c0_i32_4 to %7 step %c1_i32  : i32 {
      %c0_9 = arith.constant 0 : index
      %12 = arith.index_cast %arg10 : i32 to index
      %c0_10 = arith.constant 0 : index
      %c0_11 = arith.constant 0 : index
      %13 = vector.load %arg2[%c0_9, %12, %c0_10, %c0_11] : memref<1x3x4x512xbf16, #tpu.memory_space<vmem>>, vector<1x1x4x512xbf16>
      %14 = vector.shape_cast %13 : vector<1x1x4x512xbf16> to vector<4x512xbf16>
      %15 = arith.extf %14 : vector<4x512xbf16> to vector<4x512xf32>
      %c0_12 = arith.constant 0 : index
      %c0_13 = arith.constant 0 : index
      %16 = vector.load %arg7[%c0_12, %c0_13] : memref<16x512xf32, #tpu.memory_space<vmem>>, vector<4x512xf32>
      tpu.vector_store %arg7[%c0_12, %c0_13], %15 {strides = array<i32>} : memref<16x512xf32, #tpu.memory_space<vmem>>, vector<4x512xf32>,
      %c0_14 = arith.constant 0 : index
      %c0_15 = arith.constant 0 : index
      %17 = vector.load %arg7[%c0_14, %c0_15] : memref<16x512xf32, #tpu.memory_space<vmem>>, vector<16x512xf32>
      %c34_i32 = arith.constant 34 : i32
      %18 = tpu.dynamic_rotate %17 by %c34_i32 dim 1 : vector<16x512xf32>, i32 -> vector<16x512xf32>
      %c0_16 = arith.constant 0 : index
      %c0_17 = arith.constant 0 : index
      %19 = vector.load %arg3[%c0_16, %c0_17] : memref<25x512xf32, #tpu.memory_space<vmem>>, vector<1x512xf32>
      %20 = vector.shape_cast %19 : vector<1x512xf32> to vector<512xf32>
      %21 = vector.shape_cast %20 : vector<512xf32> to vector<1x512xf32>
      %22 = vector.broadcast %21 : vector<1x512xf32> to vector<16x512xf32>
      %23 = arith.mulf %18, %22 : vector<16x512xf32>
      %24 = arith.truncf %23 : vector<16x512xf32> to vector<16x512xbf16>
      %c0_18 = arith.constant 0 : index
      %c0_19 = arith.constant 0 : index
      %25 = vector.load %arg9[%c0_18, %c0_19] : memref<400x512xbf16, #tpu.memory_space<vmem>>, vector<16x512xbf16>
      tpu.vector_store %arg9[%c0_18, %c0_19], %24 {strides = array<i32>} : memref<400x512xbf16, #tpu.memory_space<vmem>>, vector<16x512xbf16>,
      %c33_i32 = arith.constant 33 : i32
      %26 = tpu.dynamic_rotate %17 by %c33_i32 dim 1 : vector<16x512xf32>, i32 -> vector<16x512xf32>
      %c1 = arith.constant 1 : index
      %c0_20 = arith.constant 0 : index
      %27 = vector.load %arg3[%c1, %c0_20] : memref<25x512xf32, #tpu.memory_space<vmem>>, vector<1x512xf32>
      %28 = vector.shape_cast %27 : vector<1x512xf32> to vector<512xf32>
      %29 = vector.shape_cast %28 : vector<512xf32> to vector<1x512xf32>
      %30 = vector.broadcast %29 : vector<1x512xf32> to vector<16x512xf32>
      %31 = arith.mulf %26, %30 : vector<16x512xf32>
      %32 = arith.truncf %31 : vector<16x512xf32> to vector<16x512xbf16>
      %c16 = arith.constant 16 : index
      %c0_21 = arith.constant 0 : index
      %33 = vector.load %arg9[%c16, %c0_21] : memref<400x512xbf16, #tpu.memory_space<vmem>>, vector<16x512xbf16>
      tpu.vector_store %arg9[%c16, %c0_21], %32 {strides = array<i32>} : memref<400x512xbf16, #tpu.memory_space<vmem>>, vector<16x512xbf16>,
      %c32_i32 = arith.constant 32 : i32
      %34 = tpu.dynamic_rotate %17 by %c32_i32 dim 1 : vector<16x512xf32>, i32 -> vector<16x512xf32>
      %c2 = arith.constant 2 : index
      %c0_22 = arith.constant 0 : index
      %35 = vector.load %arg3[%c2, %c0_22] : memref<25x512xf32, #tpu.memory_space<vmem>>, vector<1x512xf32>
      %36 = vector.shape_cast %35 : vector<1x512xf32> to vector<512xf32>
      %37 = vector.shape_cast %36 : vector<512xf32> to vector<1x512xf32>
      %38 = vector.broadcast %37 : vector<1x512xf32> to vector<16x512xf32>
      %39 = arith.mulf %34, %38 : vector<16x512xf32>
      %40 = arith.truncf %39 : vector<16x512xf32> to vector<16x512xbf16>
      %c32 = arith.constant 32 : index
      %c0_23 = arith.constant 0 : index
      %41 = vector.load %arg9[%c32, %c0_23] : memref<400x512xbf16, #tpu.memory_space<vmem>>, vector<16x512xbf16>
      tpu.vector_store %arg9[%c32, %c0_23], %40 {strides = array<i32>} : memref<400x512xbf16, #tpu.memory_space<vmem>>, vector<16x512xbf16>,
      %c31_i32 = arith.constant 31 : i32
      %42 = tpu.dynamic_rotate %17 by %c31_i32 dim 1 : vector<16x512xf32>, i32 -> vector<16x512xf32>
      %c3 = arith.constant 3 : index
      %c0_24 = arith.constant 0 : index
      %43 = vector.load %arg3[%c3, %c0_24] : memref<25x512xf32, #tpu.memory_space<vmem>>, vector<1x512xf32>
      %44 = vector.shape_cast %43 : vector<1x512xf32> to vector<512xf32>
      %45 = vector.shape_cast %44 : vector<512xf32> to vector<1x512xf32>
      %46 = vector.broadcast %45 : vector<1x512xf32> to vector<16x512xf32>
      %47 = arith.mulf %42, %46 : vector<16x512xf32>
      %48 = arith.truncf %47 : vector<16x512xf32> to vector<16x512xbf16>
      %c48 = arith.constant 48 : index
      %c0_25 = arith.constant 0 : index
      %49 = vector.load %arg9[%c48, %c0_25] : memref<400x512xbf16, #tpu.memory_space<vmem>>, vector<16x512xbf16>
      tpu.vector_store %arg9[%c48, %c0_25], %48 {strides = array<i32>} : memref<400x512xbf16, #tpu.memory_space<vmem>>, vector<16x512xbf16>,
      %c30_i32 = arith.constant 30 : i32
      %50 = tpu.dynamic_rotate %17 by %c30_i32 dim 1 : vector<16x512xf32>, i32 -> vector<16x512xf32>
      %c4_26 = arith.constant 4 : index
      %c0_27 = arith.constant 0 : index
      %51 = vector.load %arg3[%c4_26, %c0_27] : memref<25x512xf32, #tpu.memory_space<vmem>>, vector<1x512xf32>
      %52 = vector.shape_cast %51 : vector<1x512xf32> to vector<512xf32>
      %53 = vector.shape_cast %52 : vector<512xf32> to vector<1x512xf32>
      %54 = vector.broadcast %53 : vector<1x512xf32> to vector<16x512xf32>
      %55 = arith.mulf %50, %54 : vector<16x512xf32>
      %56 = arith.truncf %55 : vector<16x512xf32> to vector<16x512xbf16>
      %c64 = arith.constant 64 : index
      %c0_28 = arith.constant 0 : index
      %57 = vector.load %arg9[%c64, %c0_28] : memref<400x512xbf16, #tpu.memory_space<vmem>>, vector<16x512xbf16>
      tpu.vector_store %arg9[%c64, %c0_28], %56 {strides = array<i32>} : memref<400x512xbf16, #tpu.memory_space<vmem>>, vector<16x512xbf16>,
      %c18_i32 = arith.constant 18 : i32
      %58 = tpu.dynamic_rotate %17 by %c18_i32 dim 1 : vector<16x512xf32>, i32 -> vector<16x512xf32>
      %c5 = arith.constant 5 : index
      %c0_29 = arith.constant 0 : index
      %59 = vector.load %arg3[%c5, %c0_29] : memref<25x512xf32, #tpu.memory_space<vmem>>, vector<1x512xf32>
      %60 = vector.shape_cast %59 : vector<1x512xf32> to vector<512xf32>
      %61 = vector.shape_cast %60 : vector<512xf32> to vector<1x512xf32>
      %62 = vector.broadcast %61 : vector<1x512xf32> to vector<16x512xf32>
      %63 = arith.mulf %58, %62 : vector<16x512xf32>
      %64 = arith.truncf %63 : vector<16x512xf32> to vector<16x512xbf16>
      %c80 = arith.constant 80 : index
      %c0_30 = arith.constant 0 : index
      %65 = vector.load %arg9[%c80, %c0_30] : memref<400x512xbf16, #tpu.memory_space<vmem>>, vector<16x512xbf16>
      tpu.vector_store %arg9[%c80, %c0_30], %64 {strides = array<i32>} : memref<400x512xbf16, #tpu.memory_space<vmem>>, vector<16x512xbf16>,
      %c17_i32 = arith.constant 17 : i32
      %66 = tpu.dynamic_rotate %17 by %c17_i32 dim 1 : vector<16x512xf32>, i32 -> vector<16x512xf32>
      %c6 = arith.constant 6 : index
      %c0_31 = arith.constant 0 : index
      %67 = vector.load %arg3[%c6, %c0_31] : memref<25x512xf32, #tpu.memory_space<vmem>>, vector<1x512xf32>
      %68 = vector.shape_cast %67 : vector<1x512xf32> to vector<512xf32>
      %69 = vector.shape_cast %68 : vector<512xf32> to vector<1x512xf32>
      %70 = vector.broadcast %69 : vector<1x512xf32> to vector<16x512xf32>
      %71 = arith.mulf %66, %70 : vector<16x512xf32>
      %72 = arith.truncf %71 : vector<16x512xf32> to vector<16x512xbf16>
      %c96 = arith.constant 96 : index
      %c0_32 = arith.constant 0 : index
      %73 = vector.load %arg9[%c96, %c0_32] : memref<400x512xbf16, #tpu.memory_space<vmem>>, vector<16x512xbf16>
      tpu.vector_store %arg9[%c96, %c0_32], %72 {strides = array<i32>} : memref<400x512xbf16, #tpu.memory_space<vmem>>, vector<16x512xbf16>,
      %c16_i32 = arith.constant 16 : i32
      %74 = tpu.dynamic_rotate %17 by %c16_i32 dim 1 : vector<16x512xf32>, i32 -> vector<16x512xf32>
      %c7 = arith.constant 7 : index
      %c0_33 = arith.constant 0 : index
      %75 = vector.load %arg3[%c7, %c0_33] : memref<25x512xf32, #tpu.memory_space<vmem>>, vector<1x512xf32>
      %76 = vector.shape_cast %75 : vector<1x512xf32> to vector<512xf32>
      %77 = vector.shape_cast %76 : vector<512xf32> to vector<1x512xf32>
      %78 = vector.broadcast %77 : vector<1x512xf32> to vector<16x512xf32>
      %79 = arith.mulf %74, %78 : vector<16x512xf32>
      %80 = arith.truncf %79 : vector<16x512xf32> to vector<16x512xbf16>
      %c112 = arith.constant 112 : index
      %c0_34 = arith.constant 0 : index
      %81 = vector.load %arg9[%c112, %c0_34] : memref<400x512xbf16, #tpu.memory_space<vmem>>, vector<16x512xbf16>
      tpu.vector_store %arg9[%c112, %c0_34], %80 {strides = array<i32>} : memref<400x512xbf16, #tpu.memory_space<vmem>>, vector<16x512xbf16>,
      %c15_i32 = arith.constant 15 : i32
      %82 = tpu.dynamic_rotate %17 by %c15_i32 dim 1 : vector<16x512xf32>, i32 -> vector<16x512xf32>
      %c8 = arith.constant 8 : index
      %c0_35 = arith.constant 0 : index
      %83 = vector.load %arg3[%c8, %c0_35] : memref<25x512xf32, #tpu.memory_space<vmem>>, vector<1x512xf32>
      %84 = vector.shape_cast %83 : vector<1x512xf32> to vector<512xf32>
      %85 = vector.shape_cast %84 : vector<512xf32> to vector<1x512xf32>
      %86 = vector.broadcast %85 : vector<1x512xf32> to vector<16x512xf32>
      %87 = arith.mulf %82, %86 : vector<16x512xf32>
      %88 = arith.truncf %87 : vector<16x512xf32> to vector<16x512xbf16>
      %c128 = arith.constant 128 : index
      %c0_36 = arith.constant 0 : index
      %89 = vector.load %arg9[%c128, %c0_36] : memref<400x512xbf16, #tpu.memory_space<vmem>>, vector<16x512xbf16>
      tpu.vector_store %arg9[%c128, %c0_36], %88 {strides = array<i32>} : memref<400x512xbf16, #tpu.memory_space<vmem>>, vector<16x512xbf16>,
      %c14_i32 = arith.constant 14 : i32
      %90 = tpu.dynamic_rotate %17 by %c14_i32 dim 1 : vector<16x512xf32>, i32 -> vector<16x512xf32>
      %c9 = arith.constant 9 : index
      %c0_37 = arith.constant 0 : index
      %91 = vector.load %arg3[%c9, %c0_37] : memref<25x512xf32, #tpu.memory_space<vmem>>, vector<1x512xf32>
      %92 = vector.shape_cast %91 : vector<1x512xf32> to vector<512xf32>
      %93 = vector.shape_cast %92 : vector<512xf32> to vector<1x512xf32>
      %94 = vector.broadcast %93 : vector<1x512xf32> to vector<16x512xf32>
      %95 = arith.mulf %90, %94 : vector<16x512xf32>
      %96 = arith.truncf %95 : vector<16x512xf32> to vector<16x512xbf16>
      %c144 = arith.constant 144 : index
      %c0_38 = arith.constant 0 : index
      %97 = vector.load %arg9[%c144, %c0_38] : memref<400x512xbf16, #tpu.memory_space<vmem>>, vector<16x512xbf16>
      tpu.vector_store %arg9[%c144, %c0_38], %96 {strides = array<i32>} : memref<400x512xbf16, #tpu.memory_space<vmem>>, vector<16x512xbf16>,
      %c2_i32 = arith.constant 2 : i32
      %98 = tpu.dynamic_rotate %17 by %c2_i32 dim 1 : vector<16x512xf32>, i32 -> vector<16x512xf32>
      %c10 = arith.constant 10 : index
      %c0_39 = arith.constant 0 : index
      %99 = vector.load %arg3[%c10, %c0_39] : memref<25x512xf32, #tpu.memory_space<vmem>>, vector<1x512xf32>
      %100 = vector.shape_cast %99 : vector<1x512xf32> to vector<512xf32>
      %101 = vector.shape_cast %100 : vector<512xf32> to vector<1x512xf32>
      %102 = vector.broadcast %101 : vector<1x512xf32> to vector<16x512xf32>
      %103 = arith.mulf %98, %102 : vector<16x512xf32>
      %104 = arith.truncf %103 : vector<16x512xf32> to vector<16x512xbf16>
      %c160 = arith.constant 160 : index
      %c0_40 = arith.constant 0 : index
      %105 = vector.load %arg9[%c160, %c0_40] : memref<400x512xbf16, #tpu.memory_space<vmem>>, vector<16x512xbf16>
      tpu.vector_store %arg9[%c160, %c0_40], %104 {strides = array<i32>} : memref<400x512xbf16, #tpu.memory_space<vmem>>, vector<16x512xbf16>,
      %c1_i32_41 = arith.constant 1 : i32
      %106 = tpu.dynamic_rotate %17 by %c1_i32_41 dim 1 : vector<16x512xf32>, i32 -> vector<16x512xf32>
      %c11 = arith.constant 11 : index
      %c0_42 = arith.constant 0 : index
      %107 = vector.load %arg3[%c11, %c0_42] : memref<25x512xf32, #tpu.memory_space<vmem>>, vector<1x512xf32>
      %108 = vector.shape_cast %107 : vector<1x512xf32> to vector<512xf32>
      %109 = vector.shape_cast %108 : vector<512xf32> to vector<1x512xf32>
      %110 = vector.broadcast %109 : vector<1x512xf32> to vector<16x512xf32>
      %111 = arith.mulf %106, %110 : vector<16x512xf32>
      %112 = arith.truncf %111 : vector<16x512xf32> to vector<16x512xbf16>
      %c176 = arith.constant 176 : index
      %c0_43 = arith.constant 0 : index
      %113 = vector.load %arg9[%c176, %c0_43] : memref<400x512xbf16, #tpu.memory_space<vmem>>, vector<16x512xbf16>
      tpu.vector_store %arg9[%c176, %c0_43], %112 {strides = array<i32>} : memref<400x512xbf16, #tpu.memory_space<vmem>>, vector<16x512xbf16>,
      %c12 = arith.constant 12 : index
      %c0_44 = arith.constant 0 : index
      %114 = vector.load %arg3[%c12, %c0_44] : memref<25x512xf32, #tpu.memory_space<vmem>>, vector<1x512xf32>
      %115 = vector.shape_cast %114 : vector<1x512xf32> to vector<512xf32>
      %116 = vector.shape_cast %115 : vector<512xf32> to vector<1x512xf32>
      %117 = vector.broadcast %116 : vector<1x512xf32> to vector<16x512xf32>
      %118 = arith.mulf %17, %117 : vector<16x512xf32>
      %119 = arith.truncf %118 : vector<16x512xf32> to vector<16x512xbf16>
      %c192 = arith.constant 192 : index
      %c0_45 = arith.constant 0 : index
      %120 = vector.load %arg9[%c192, %c0_45] : memref<400x512xbf16, #tpu.memory_space<vmem>>, vector<16x512xbf16>
      tpu.vector_store %arg9[%c192, %c0_45], %119 {strides = array<i32>} : memref<400x512xbf16, #tpu.memory_space<vmem>>, vector<16x512xbf16>,
      %c511_i32 = arith.constant 511 : i32
      %121 = tpu.dynamic_rotate %17 by %c511_i32 dim 1 : vector<16x512xf32>, i32 -> vector<16x512xf32>
      %c13 = arith.constant 13 : index
      %c0_46 = arith.constant 0 : index
      %122 = vector.load %arg3[%c13, %c0_46] : memref<25x512xf32, #tpu.memory_space<vmem>>, vector<1x512xf32>
      %123 = vector.shape_cast %122 : vector<1x512xf32> to vector<512xf32>
      %124 = vector.shape_cast %123 : vector<512xf32> to vector<1x512xf32>
      %125 = vector.broadcast %124 : vector<1x512xf32> to vector<16x512xf32>
      %126 = arith.mulf %121, %125 : vector<16x512xf32>
      %127 = arith.truncf %126 : vector<16x512xf32> to vector<16x512xbf16>
      %c208 = arith.constant 208 : index
      %c0_47 = arith.constant 0 : index
      %128 = vector.load %arg9[%c208, %c0_47] : memref<400x512xbf16, #tpu.memory_space<vmem>>, vector<16x512xbf16>
      tpu.vector_store %arg9[%c208, %c0_47], %127 {strides = array<i32>} : memref<400x512xbf16, #tpu.memory_space<vmem>>, vector<16x512xbf16>,
      %c510_i32 = arith.constant 510 : i32
      %129 = tpu.dynamic_rotate %17 by %c510_i32 dim 1 : vector<16x512xf32>, i32 -> vector<16x512xf32>
      %c14 = arith.constant 14 : index
      %c0_48 = arith.constant 0 : index
      %130 = vector.load %arg3[%c14, %c0_48] : memref<25x512xf32, #tpu.memory_space<vmem>>, vector<1x512xf32>
      %131 = vector.shape_cast %130 : vector<1x512xf32> to vector<512xf32>
      %132 = vector.shape_cast %131 : vector<512xf32> to vector<1x512xf32>
      %133 = vector.broadcast %132 : vector<1x512xf32> to vector<16x512xf32>
      %134 = arith.mulf %129, %133 : vector<16x512xf32>
      %135 = arith.truncf %134 : vector<16x512xf32> to vector<16x512xbf16>
      %c224 = arith.constant 224 : index
      %c0_49 = arith.constant 0 : index
      %136 = vector.load %arg9[%c224, %c0_49] : memref<400x512xbf16, #tpu.memory_space<vmem>>, vector<16x512xbf16>
      tpu.vector_store %arg9[%c224, %c0_49], %135 {strides = array<i32>} : memref<400x512xbf16, #tpu.memory_space<vmem>>, vector<16x512xbf16>,
      %c498_i32 = arith.constant 498 : i32
      %137 = tpu.dynamic_rotate %17 by %c498_i32 dim 1 : vector<16x512xf32>, i32 -> vector<16x512xf32>
      %c15 = arith.constant 15 : index
      %c0_50 = arith.constant 0 : index
      %138 = vector.load %arg3[%c15, %c0_50] : memref<25x512xf32, #tpu.memory_space<vmem>>, vector<1x512xf32>
      %139 = vector.shape_cast %138 : vector<1x512xf32> to vector<512xf32>
      %140 = vector.shape_cast %139 : vector<512xf32> to vector<1x512xf32>
      %141 = vector.broadcast %140 : vector<1x512xf32> to vector<16x512xf32>
      %142 = arith.mulf %137, %141 : vector<16x512xf32>
      %143 = arith.truncf %142 : vector<16x512xf32> to vector<16x512xbf16>
      %c240 = arith.constant 240 : index
      %c0_51 = arith.constant 0 : index
      %144 = vector.load %arg9[%c240, %c0_51] : memref<400x512xbf16, #tpu.memory_space<vmem>>, vector<16x512xbf16>
      tpu.vector_store %arg9[%c240, %c0_51], %143 {strides = array<i32>} : memref<400x512xbf16, #tpu.memory_space<vmem>>, vector<16x512xbf16>,
      %c497_i32 = arith.constant 497 : i32
      %145 = tpu.dynamic_rotate %17 by %c497_i32 dim 1 : vector<16x512xf32>, i32 -> vector<16x512xf32>
      %c16_52 = arith.constant 16 : index
      %c0_53 = arith.constant 0 : index
      %146 = vector.load %arg3[%c16_52, %c0_53] : memref<25x512xf32, #tpu.memory_space<vmem>>, vector<1x512xf32>
      %147 = vector.shape_cast %146 : vector<1x512xf32> to vector<512xf32>
      %148 = vector.shape_cast %147 : vector<512xf32> to vector<1x512xf32>
      %149 = vector.broadcast %148 : vector<1x512xf32> to vector<16x512xf32>
      %150 = arith.mulf %145, %149 : vector<16x512xf32>
      %151 = arith.truncf %150 : vector<16x512xf32> to vector<16x512xbf16>
      %c256 = arith.constant 256 : index
      %c0_54 = arith.constant 0 : index
      %152 = vector.load %arg9[%c256, %c0_54] : memref<400x512xbf16, #tpu.memory_space<vmem>>, vector<16x512xbf16>
      tpu.vector_store %arg9[%c256, %c0_54], %151 {strides = array<i32>} : memref<400x512xbf16, #tpu.memory_space<vmem>>, vector<16x512xbf16>,
      %c496_i32 = arith.constant 496 : i32
      %153 = tpu.dynamic_rotate %17 by %c496_i32 dim 1 : vector<16x512xf32>, i32 -> vector<16x512xf32>
      %c17 = arith.constant 17 : index
      %c0_55 = arith.constant 0 : index
      %154 = vector.load %arg3[%c17, %c0_55] : memref<25x512xf32, #tpu.memory_space<vmem>>, vector<1x512xf32>
      %155 = vector.shape_cast %154 : vector<1x512xf32> to vector<512xf32>
      %156 = vector.shape_cast %155 : vector<512xf32> to vector<1x512xf32>
      %157 = vector.broadcast %156 : vector<1x512xf32> to vector<16x512xf32>
      %158 = arith.mulf %153, %157 : vector<16x512xf32>
      %159 = arith.truncf %158 : vector<16x512xf32> to vector<16x512xbf16>
      %c272 = arith.constant 272 : index
      %c0_56 = arith.constant 0 : index
      %160 = vector.load %arg9[%c272, %c0_56] : memref<400x512xbf16, #tpu.memory_space<vmem>>, vector<16x512xbf16>
      tpu.vector_store %arg9[%c272, %c0_56], %159 {strides = array<i32>} : memref<400x512xbf16, #tpu.memory_space<vmem>>, vector<16x512xbf16>,
      %c495_i32 = arith.constant 495 : i32
      %161 = tpu.dynamic_rotate %17 by %c495_i32 dim 1 : vector<16x512xf32>, i32 -> vector<16x512xf32>
      %c18 = arith.constant 18 : index
      %c0_57 = arith.constant 0 : index
      %162 = vector.load %arg3[%c18, %c0_57] : memref<25x512xf32, #tpu.memory_space<vmem>>, vector<1x512xf32>
      %163 = vector.shape_cast %162 : vector<1x512xf32> to vector<512xf32>
      %164 = vector.shape_cast %163 : vector<512xf32> to vector<1x512xf32>
      %165 = vector.broadcast %164 : vector<1x512xf32> to vector<16x512xf32>
      %166 = arith.mulf %161, %165 : vector<16x512xf32>
      %167 = arith.truncf %166 : vector<16x512xf32> to vector<16x512xbf16>
      %c288 = arith.constant 288 : index
      %c0_58 = arith.constant 0 : index
      %168 = vector.load %arg9[%c288, %c0_58] : memref<400x512xbf16, #tpu.memory_space<vmem>>, vector<16x512xbf16>
      tpu.vector_store %arg9[%c288, %c0_58], %167 {strides = array<i32>} : memref<400x512xbf16, #tpu.memory_space<vmem>>, vector<16x512xbf16>,
      %c494_i32 = arith.constant 494 : i32
      %169 = tpu.dynamic_rotate %17 by %c494_i32 dim 1 : vector<16x512xf32>, i32 -> vector<16x512xf32>
      %c19 = arith.constant 19 : index
      %c0_59 = arith.constant 0 : index
      %170 = vector.load %arg3[%c19, %c0_59] : memref<25x512xf32, #tpu.memory_space<vmem>>, vector<1x512xf32>
      %171 = vector.shape_cast %170 : vector<1x512xf32> to vector<512xf32>
      %172 = vector.shape_cast %171 : vector<512xf32> to vector<1x512xf32>
      %173 = vector.broadcast %172 : vector<1x512xf32> to vector<16x512xf32>
      %174 = arith.mulf %169, %173 : vector<16x512xf32>
      %175 = arith.truncf %174 : vector<16x512xf32> to vector<16x512xbf16>
      %c304 = arith.constant 304 : index
      %c0_60 = arith.constant 0 : index
      %176 = vector.load %arg9[%c304, %c0_60] : memref<400x512xbf16, #tpu.memory_space<vmem>>, vector<16x512xbf16>
      tpu.vector_store %arg9[%c304, %c0_60], %175 {strides = array<i32>} : memref<400x512xbf16, #tpu.memory_space<vmem>>, vector<16x512xbf16>,
      %c482_i32 = arith.constant 482 : i32
      %177 = tpu.dynamic_rotate %17 by %c482_i32 dim 1 : vector<16x512xf32>, i32 -> vector<16x512xf32>
      %c20 = arith.constant 20 : index
      %c0_61 = arith.constant 0 : index
      %178 = vector.load %arg3[%c20, %c0_61] : memref<25x512xf32, #tpu.memory_space<vmem>>, vector<1x512xf32>
      %179 = vector.shape_cast %178 : vector<1x512xf32> to vector<512xf32>
      %180 = vector.shape_cast %179 : vector<512xf32> to vector<1x512xf32>
      %181 = vector.broadcast %180 : vector<1x512xf32> to vector<16x512xf32>
      %182 = arith.mulf %177, %181 : vector<16x512xf32>
      %183 = arith.truncf %182 : vector<16x512xf32> to vector<16x512xbf16>
      %c320 = arith.constant 320 : index
      %c0_62 = arith.constant 0 : index
      %184 = vector.load %arg9[%c320, %c0_62] : memref<400x512xbf16, #tpu.memory_space<vmem>>, vector<16x512xbf16>
      tpu.vector_store %arg9[%c320, %c0_62], %183 {strides = array<i32>} : memref<400x512xbf16, #tpu.memory_space<vmem>>, vector<16x512xbf16>,
      %c481_i32 = arith.constant 481 : i32
      %185 = tpu.dynamic_rotate %17 by %c481_i32 dim 1 : vector<16x512xf32>, i32 -> vector<16x512xf32>
      %c21 = arith.constant 21 : index
      %c0_63 = arith.constant 0 : index
      %186 = vector.load %arg3[%c21, %c0_63] : memref<25x512xf32, #tpu.memory_space<vmem>>, vector<1x512xf32>
      %187 = vector.shape_cast %186 : vector<1x512xf32> to vector<512xf32>
      %188 = vector.shape_cast %187 : vector<512xf32> to vector<1x512xf32>
      %189 = vector.broadcast %188 : vector<1x512xf32> to vector<16x512xf32>
      %190 = arith.mulf %185, %189 : vector<16x512xf32>
      %191 = arith.truncf %190 : vector<16x512xf32> to vector<16x512xbf16>
      %c336 = arith.constant 336 : index
      %c0_64 = arith.constant 0 : index
      %192 = vector.load %arg9[%c336, %c0_64] : memref<400x512xbf16, #tpu.memory_space<vmem>>, vector<16x512xbf16>
      tpu.vector_store %arg9[%c336, %c0_64], %191 {strides = array<i32>} : memref<400x512xbf16, #tpu.memory_space<vmem>>, vector<16x512xbf16>,
      %c480_i32 = arith.constant 480 : i32
      %193 = tpu.dynamic_rotate %17 by %c480_i32 dim 1 : vector<16x512xf32>, i32 -> vector<16x512xf32>
      %c22 = arith.constant 22 : index
      %c0_65 = arith.constant 0 : index
      %194 = vector.load %arg3[%c22, %c0_65] : memref<25x512xf32, #tpu.memory_space<vmem>>, vector<1x512xf32>
      %195 = vector.shape_cast %194 : vector<1x512xf32> to vector<512xf32>
      %196 = vector.shape_cast %195 : vector<512xf32> to vector<1x512xf32>
      %197 = vector.broadcast %196 : vector<1x512xf32> to vector<16x512xf32>
      %198 = arith.mulf %193, %197 : vector<16x512xf32>
      %199 = arith.truncf %198 : vector<16x512xf32> to vector<16x512xbf16>
      %c352 = arith.constant 352 : index
      %c0_66 = arith.constant 0 : index
      %200 = vector.load %arg9[%c352, %c0_66] : memref<400x512xbf16, #tpu.memory_space<vmem>>, vector<16x512xbf16>
      tpu.vector_store %arg9[%c352, %c0_66], %199 {strides = array<i32>} : memref<400x512xbf16, #tpu.memory_space<vmem>>, vector<16x512xbf16>,
      %c479_i32 = arith.constant 479 : i32
      %201 = tpu.dynamic_rotate %17 by %c479_i32 dim 1 : vector<16x512xf32>, i32 -> vector<16x512xf32>
      %c23 = arith.constant 23 : index
      %c0_67 = arith.constant 0 : index
      %202 = vector.load %arg3[%c23, %c0_67] : memref<25x512xf32, #tpu.memory_space<vmem>>, vector<1x512xf32>
      %203 = vector.shape_cast %202 : vector<1x512xf32> to vector<512xf32>
      %204 = vector.shape_cast %203 : vector<512xf32> to vector<1x512xf32>
      %205 = vector.broadcast %204 : vector<1x512xf32> to vector<16x512xf32>
      %206 = arith.mulf %201, %205 : vector<16x512xf32>
      %207 = arith.truncf %206 : vector<16x512xf32> to vector<16x512xbf16>
      %c368 = arith.constant 368 : index
      %c0_68 = arith.constant 0 : index
      %208 = vector.load %arg9[%c368, %c0_68] : memref<400x512xbf16, #tpu.memory_space<vmem>>, vector<16x512xbf16>
      tpu.vector_store %arg9[%c368, %c0_68], %207 {strides = array<i32>} : memref<400x512xbf16, #tpu.memory_space<vmem>>, vector<16x512xbf16>,
      %c478_i32 = arith.constant 478 : i32
      %209 = tpu.dynamic_rotate %17 by %c478_i32 dim 1 : vector<16x512xf32>, i32 -> vector<16x512xf32>
      %c24 = arith.constant 24 : index
      %c0_69 = arith.constant 0 : index
      %210 = vector.load %arg3[%c24, %c0_69] : memref<25x512xf32, #tpu.memory_space<vmem>>, vector<1x512xf32>
      %211 = vector.shape_cast %210 : vector<1x512xf32> to vector<512xf32>
      %212 = vector.shape_cast %211 : vector<512xf32> to vector<1x512xf32>
      %213 = vector.broadcast %212 : vector<1x512xf32> to vector<16x512xf32>
      %214 = arith.mulf %209, %213 : vector<16x512xf32>
      %215 = arith.truncf %214 : vector<16x512xf32> to vector<16x512xbf16>
      %c384 = arith.constant 384 : index
      %c0_70 = arith.constant 0 : index
      %216 = vector.load %arg9[%c384, %c0_70] : memref<400x512xbf16, #tpu.memory_space<vmem>>, vector<16x512xbf16>
      tpu.vector_store %arg9[%c384, %c0_70], %215 {strides = array<i32>} : memref<400x512xbf16, #tpu.memory_space<vmem>>, vector<16x512xbf16>,
      %c0_71 = arith.constant 0 : index
      %c0_72 = arith.constant 0 : index
      %c0_73 = arith.constant 0 : index
      %217 = vector.load %arg4[%c0_71, %c0_72, %c0_73] : memref<1x32x400xbf16, #tpu.memory_space<vmem>>, vector<1x32x400xbf16>
      %218 = vector.shape_cast %217 : vector<1x32x400xbf16> to vector<32x400xbf16>
      %c0_74 = arith.constant 0 : index
      %c0_75 = arith.constant 0 : index
      %219 = vector.load %arg9[%c0_74, %c0_75] : memref<400x512xbf16, #tpu.memory_space<vmem>>, vector<400x512xbf16>
      %cst_76 = arith.constant dense<0.000000e+00> : vector<32x512xf32>
      %220 = tpu.matmul %218, %219, %cst_76 {dimension_numbers = #tpu.dot_dimension_numbers<[1], [0], [0], [1], [0, 0, 1, 1], [], []>} : vector<32x400xbf16>, vector<400x512xbf16>, vector<32x512xf32> -> vector<32x512xf32>
      %c0_77 = arith.constant 0 : index
      %c0_78 = arith.constant 0 : index
      %c0_79 = arith.constant 0 : index
      %221 = vector.load %arg5[%c0_77, %c0_78, %c0_79] : memref<1x32x1xf32, #tpu.memory_space<vmem>>, vector<1x32x1xf32>
      %222 = vector.shape_cast %221 : vector<1x32x1xf32> to vector<32x1xf32>
      %223 = vector.broadcast %222 : vector<32x1xf32> to vector<32x512xf32>
      %224 = arith.addf %220, %223 : vector<32x512xf32>
      %225 = vector.extract_strided_slice %224 {offsets = [0, 0], sizes = [8, 512], strides = [1, 1]} : vector<32x512xf32> to vector<8x512xf32>
      %226 = arith.negf %225 : vector<8x512xf32>
      %227 = math.exp %226 : vector<8x512xf32>
      %cst_80 = arith.constant 1.000000e+00 : f32
      %228 = vector.broadcast %cst_80 : f32 to vector<8x512xf32>
      %229 = arith.addf %228, %227 : vector<8x512xf32>
      %230 = arith.divf %228, %229 : vector<8x512xf32>
      %231 = vector.extract_strided_slice %224 {offsets = [8, 0], sizes = [8, 512], strides = [1, 1]} : vector<32x512xf32> to vector<8x512xf32>
      %232 = arith.negf %231 : vector<8x512xf32>
      %233 = math.exp %232 : vector<8x512xf32>
      %cst_81 = arith.constant 1.000000e+00 : f32
      %234 = vector.broadcast %cst_81 : f32 to vector<8x512xf32>
      %235 = arith.addf %234, %233 : vector<8x512xf32>
      %236 = arith.divf %234, %235 : vector<8x512xf32>
      %237 = vector.extract_strided_slice %224 {offsets = [16, 0], sizes = [8, 512], strides = [1, 1]} : vector<32x512xf32> to vector<8x512xf32>
      %238 = arith.negf %237 : vector<8x512xf32>
      %239 = math.exp %238 : vector<8x512xf32>
      %cst_82 = arith.constant 1.000000e+00 : f32
      %240 = vector.broadcast %cst_82 : f32 to vector<8x512xf32>
      %241 = arith.addf %240, %239 : vector<8x512xf32>
      %242 = arith.divf %240, %241 : vector<8x512xf32>
      %243 = vector.extract_strided_slice %224 {offsets = [24, 0], sizes = [8, 512], strides = [1, 1]} : vector<32x512xf32> to vector<8x512xf32>
      %244 = math.tanh %243 : vector<8x512xf32>
      %c0_83 = arith.constant 0 : index
      %c0_84 = arith.constant 0 : index
      %245 = vector.load %arg8[%c0_83, %c0_84] : memref<8x512xf32, #tpu.memory_space<vmem>>, vector<8x512xf32>
      %246 = arith.mulf %245, %236 : vector<8x512xf32>
      %247 = arith.mulf %230, %244 : vector<8x512xf32>
      %248 = arith.addf %246, %247 : vector<8x512xf32>
      %249 = math.tanh %248 : vector<8x512xf32>
      %250 = arith.mulf %242, %249 : vector<8x512xf32>
      %c0_85 = arith.constant 0 : index
      %c0_86 = arith.constant 0 : index
      %251 = vector.load %arg8[%c0_85, %c0_86] : memref<8x512xf32, #tpu.memory_space<vmem>>, vector<8x512xf32>
      tpu.vector_store %arg8[%c0_85, %c0_86], %248 {strides = array<i32>} : memref<8x512xf32, #tpu.memory_space<vmem>>, vector<8x512xf32>,
      %c4_87 = arith.constant 4 : index
      %c0_88 = arith.constant 0 : index
      %252 = vector.load %arg7[%c4_87, %c0_88] : memref<16x512xf32, #tpu.memory_space<vmem>>, vector<8x512xf32>
      tpu.vector_store %arg7[%c4_87, %c0_88], %250 {strides = array<i32>} : memref<16x512xf32, #tpu.memory_space<vmem>>, vector<8x512xf32>,
    }
    %c4 = arith.constant 4 : index
    %c0_5 = arith.constant 0 : index
    %8 = vector.load %arg7[%c4, %c0_5] : memref<16x512xf32, #tpu.memory_space<vmem>>, vector<8x512xf32>
    %c0_6 = arith.constant 0 : index
    %c0_7 = arith.constant 0 : index
    %c0_8 = arith.constant 0 : index
    %9 = vector.load %arg6[%c0_6, %c0_7, %c0_8] : memref<1x8x512xf32, #tpu.memory_space<vmem>>, vector<1x8x512xf32>
    %10 = vector.shape_cast %9 : vector<1x8x512xf32> to vector<8x512xf32>
    %11 = vector.shape_cast %8 : vector<8x512xf32> to vector<1x8x512xf32>
    tpu.vector_store %arg6[%c0_6, %c0_7, %c0_8], %11 {strides = array<i32>} : memref<1x8x512xf32, #tpu.memory_space<vmem>>, vector<1x8x512xf32>,
    return
  }
  func.func @transform_0(%arg0: i32, %arg1: memref<2xi32, #tpu.memory_space<smem>>) -> (i32, i32, i32, i32) {
    %c0_i32 = arith.constant 0 : i32
    %c0_i32_0 = arith.constant 0 : i32
    %c0_i32_1 = arith.constant 0 : i32
    %c0_i32_2 = arith.constant 0 : i32
    return %arg0, %c0_i32, %c0_i32_0, %c0_i32_1 : i32, i32, i32, i32
  }
  func.func @transform_1(%arg0: i32, %arg1: memref<2xi32, #tpu.memory_space<smem>>) -> (i32, i32) {
    %c0_i32 = arith.constant 0 : i32
    %c0_i32_0 = arith.constant 0 : i32
    %c0_i32_1 = arith.constant 0 : i32
    return %c0_i32, %c0_i32_0 : i32, i32
  }
  func.func @transform_2(%arg0: i32, %arg1: memref<2xi32, #tpu.memory_space<smem>>) -> (i32, i32, i32) {
    %c0_i32 = arith.constant 0 : i32
    %c0_i32_0 = arith.constant 0 : i32
    %c0_i32_1 = arith.constant 0 : i32
    return %arg0, %c0_i32, %c0_i32_0 : i32, i32, i32
  }
  func.func @transform_3(%arg0: i32, %arg1: memref<2xi32, #tpu.memory_space<smem>>) -> (i32, i32, i32) {
    %c0_i32 = arith.constant 0 : i32
    %c0_i32_0 = arith.constant 0 : i32
    %c0_i32_1 = arith.constant 0 : i32
    return %arg0, %c0_i32, %c0_i32_0 : i32, i32, i32
  }
  func.func @transform_4(%arg0: i32, %arg1: memref<2xi32, #tpu.memory_space<smem>>) -> (i32, i32, i32) {
    %c0_i32 = arith.constant 0 : i32
    %c0_i32_0 = arith.constant 0 : i32
    %c0_i32_1 = arith.constant 0 : i32
    return %arg0, %c0_i32, %c0_i32_0 : i32, i32, i32
  }
}

</mosaic_0001>

<bundles_post_ra>
// kernel: tpu_custom_call.1
= control target key start
LH: loop header
LB: loop body
LE: loop exit
PB: predicated region body
PF: predicated region fallthrough
CT: control target
= control target key end

     0   :  { %s3970_s21 = smov [#allocation6]   ;;  %s5799_s0 = inlined_call_operand.vmem [shape: s32[2], index: 0, kind: input, shape index: {}]   ;;  %s5800_s1 = inlined_call_operand.vmem [shape: bf16[2,3,4,512], index: 1, kind: input, shape index: {}]   ;;  %s5801_s2 = inlined_call_operand.hbm [shape: f32[25,512], index: 2, kind: input, shape index: {}]   ;;  %s5802_s3 = inlined_call_operand.hbm [shape: bf16[2,32,400], index: 3, kind: input, shape index: {}]   ;;  %s5803_s4 = inlined_call_operand.vmem [shape: f32[2,32,1], index: 4, kind: input, shape index: {}]   ;;  %s5804_s5 = inlined_call_operand.hbm [shape: f32[2,8,512], index: 5, kind: output, shape index: {}]  }
   0x1   :  { %s11_s20 = sshll.u32 %s5799_s0, 4  ;;  %s12_s20 = int_to_ptr.vmem [resolvable:$true] %s11_s20 }
   0x2   :  { %14 = dma.vmem_to_smem %s12_s20, 16, %s3970_s21, [#allocation5] }
   0x3   :  { %3936 = dma.done.wait [#allocation5], 16 }
   0x4   :  { %3937 = vsyncadd [#allocation5], 4294967280 }
   0x5   :  { %17 = sfence }
   0x6   :  { %18 = vsyncpa [#allocation8], 0 }
   0x7   :  { %19 = vsyncpa [#allocation11], 0 }
   0x8   :  { %21 = vsyncpa [#allocation11 + $0x1], 0 }
   0x9   :  { %22 = vsyncpa [#allocation9], 0 }
   0xa   :  { %24 = vsyncpa [#allocation9 + $0x1], 0  ;;  %s4035_s22 = smov 0   ;;  %s4037_s23 = smov 0  }
   0xb   :  { %s4039_s24 = smov 0   ;;  %s4041_s25 = smov 0  }
   0xc LB: > { %s4056_s0 = sadd.s32 4294967295, %s3964_s25   ;;  %s3039_s26 = sadd.s32 4294967294, %s3964_s25   ;;  %s3964_s25 = sphi %s4041_s25, %s5938_s25   ;;  %s3960_s24 = sphi %s4039_s24, %s5937_s24   ;;  %s3956_s23 = sphi %s4037_s23, %s5936_s23   ;;  %s3952_s22 = sphi %s4035_s22, %s5935_s22  }
   0xd   : > { %p97_p0 = scmp.ne.s32.totalorder %s3956_s23, %s3952_s22  ;;  %p98_p1 = scmp.eq.s32.totalorder %s4056_s0, 0 }
   0xe   : > { %p147_p2 = scmp.eq.s32.totalorder %s4056_s0, 1  ;;  %p153_p3 = scmp.eq.s32.totalorder %s3039_s26, 1 }
   0xf   : > { %p4065_p4 = por %p98_p1, %p97_p0  ;;  %p3040_p5 = scmp.ge.s32.totalorder %s3964_s25, 1 }
  0x10   : > { %p4070_p6 = por %p153_p3, %p97_p0  ;;  %p160_p7 = scmp.lt.s32.totalorder %s3964_s25, 3 }
  0x11   : > { %s171_s6 = sshll.u32 %s5801_s2, 4  ;;  %s3971_s8 = smov [#allocation7]   ;;  %s172_s6 = int_to_ptr.hbm [resolvable:$true] %s171_s6 }
  0x12   : > { %p4078_p8 = pnand %p3040_p5, %p160_p7  ;;  %s173_s9 = sshll.u32 %s3971_s8, 4  ;;  %s174_s9 = int_to_ptr.vmem [resolvable:$true] %s173_s9 }
  0x13   : > { %s4088_s10 = sadd.s32 1, %s3964_s25   ;;  %s3972_s11 = smov 512  }
  0x14   : > { %p3642_p9 = pneg %p4078_p8  ;;  %s3973_s12 = smov 32  }
  0x15   : > { %s81_s13 = ssub.s32 %s3964_s25, %s4088_s10  ;;  %s84_s14 = sadd.s32 1, %s3960_s24 }
  0x16   : > { %p3643_p10 = pnand %p3642_p9, %p98_p1  ;;  %p82_p12 = scmp.eq.s32.totalorder %s81_s13, 0 }
  0x17   : > { %p91_p13 = scmp.ne.s32.totalorder %s3960_s24, %s3956_s23  ;;  %p92_p0 = scmp.eq.s32.totalorder %s3964_s25, 0 }
  0x18   : > { %3645 = dma.hbm_to_vmem [thread:$0]  (!%p3643_p10), %s172_s6, 2048, %s174_s9, [#allocation8], %s3972_s11, %s3972_s11, %s3973_s12  }
  0x19   : > { %p3655_p3 = scmp.lt.s32.totalorder %s3964_s25, 2  ;;  %p93_p5 = por %p92_p0, %p91_p13 }
  0x1a   : > { %s4098_s15 = scalar_select %p82_p12, %s3960_s24, %s84_s14  }
  0x1b   : > { %p4102_p7 = por %p147_p2, %p91_p13  ;;  %s195_s17 = sand.u32 1, %s3960_s24  }
  0x1c   : > { %s3513_s18 = sshll.u32 %s3964_s25, 6  ;;  %s3043_s19 = sshll.u32 %s195_s17, 6 }
  0x1d   : > { %s204_s26 = scalar_lea.hbm %s5802_s3, %s3513_s18  ;;  %s199_s30 = scalar_lea.vmem [#allocation10], %s3043_s19 }
  0x1e   : > { %s205_s29 = sshll.u32 %s204_s26, 4  ;;  %s207_s6 = sshll.u32 %s199_s30, 4  ;;  %s206_s29 = int_to_ptr.hbm [resolvable:$true] %s205_s29  ;;  %s208_s6 = int_to_ptr.vmem [resolvable:$true] %s207_s6 }
  0x1f   : > { %p4113_p9 = pnand %p3655_p3, %p93_p5  ;;  %s196_s9 = scalar_lea.sflag [#allocation11], %s195_s17 }
  0x20   : > { %s3858_s11 = sshra.s32 %s206_s29, 4  ;;  %s3865_s18 = scalar_lea.hbm %s5802_s3, 128  ;;  %s3859_s11 = int_to_ptr.hbm [resolvable:$true] %s3858_s11 }
  0x21   : > { %s3860_s12 = scalar_lea.hbm %s3859_s11, 64  ;;  %p3862_p10 = pneg %p4113_p9 }
  0x22   : > { %p3861_p2 = scmp.ne.s32.totalorder %s3859_s11, %s3860_s12  ;;  %p3866_p0 = scmp.lt.s32.totalorder %s3859_s11, %s5802_s3 }
  0x23   : > { %p3867_p3 = scmp.lt.s32.totalorder %s3865_s18, %s3860_s12 }
  0x24   : > { %p3863_p12 = pnand %p3862_p10, %p3861_p2 }
  0x25   : > { %p3868_p5 = por %p3867_p3, %p3866_p0 }
  0x26   : > { %p3864_p13 = pneg %p3863_p12 }
  0x28   : > { %p3869_p11 = pnand %p3868_p5, %p3864_p13 }
  0x2a   : > { %3872 = shalt.err (!%p3869_p11)
}
  0x2b   : > { %s3974_s17 = smov 256   ;;  %s3975_s21 = smov 16  }
  0x2c   : > { %3649 = dma.hbm_to_vmem [thread:$0]  (!%p4113_p9), %s206_s29, 1024, %s208_s6, %s196_s9, %s3974_s17, %s3974_s17, %s3975_s21  }
  0x2d   : > { %227 = sbr.rel (%p4078_p8) target bundleno = 956 (0x3bc), region = 36 }
  0x32   : > { %3939 = dma.done.wait (%p98_p1), [#allocation8], 2048  }
  0x33   : > { %3941 = vsyncadd (%p98_p1), [#allocation8], 4294965248  ;;  %s4134_s26 = sand.u32 1, %s3956_s23  }
  0x34   : > { %s3048_s30 = sshll.u32 %s4134_s26, 6  ;;  %s235_s11 = scalar_lea.sflag [#allocation11], %s4134_s26 }
  0x35   : > { %s4138_s12 = scalar_lea.vmem [#allocation10], %s3048_s30 }
  0x36   : > { %3943 = dma.done.wait (%p4065_p4), %s235_s11, 1024  }
  0x37   : > { %3945 = vsyncadd (%p4065_p4), %s235_s11, 4294966272  ;;  %s3049_s7 = sshll.u32 %s4134_s26, 5  ;;  %p274_p1 = scmp.lt.s32.totalorder %s4056_s0, 1  ;;  %v3976_v0 = vmov 0.0  }
  0x38   : > { %s4147_s29 = sld [smem:[#allocation6 + %s4056_s0]]  ;;  %285 = vst [vmem:[#allocation2 + $0x30] sm:$0xff] %v3976_v0  ;;  %s4160_s17 = scalar_lea.vmem [#allocation12], %s3049_s7 }
  0x39   : > { %s275_s6 = scalar_select %p274_p1, %s4056_s0, 1  ;;  %286 = vst [vmem:[#allocation2] sm:$0xff] %v3976_v0 }
  0x3a   : > { %287 = vst [vmem:[#allocation2 + $0x18] sm:$0xff] %v3976_v0 }
  0x3b   : > { %s3633_s8 = smul.u32 24, %s275_s6  ;;  %s3514_s9 = sshll.u32 %s275_s6, 5  ;;  %288 = vst [vmem:[#allocation2 + $0x10] sm:$0xff] %v3976_v0 }
  0x3c   : > { %s4153_s27 = scalar_lea.vmem %s5803_s4, %s3514_s9  ;;  %289 = vst [vmem:[#allocation2 + $0x8] sm:$0xff] %v3976_v0 }
  0x3d   : > { %s4158_s20 = scalar_lea.vmem %s5800_s1, %s3633_s8  ;;  %290 = vst [vmem:[#allocation2 + $0x20] sm:$0xff] %v3976_v0 }
  0x3e   : > { %291 = vst [vmem:[#allocation2 + $0x28] sm:$0xff] %v3976_v0  ;;  %p3053_p4 = scmp.le.s32.totalorder %s4147_s29, 0 }
  0x3f   : > { %292 = vst [vmem:[#allocation2 + $0x38] sm:$0xff] %v3976_v0  ;;  %s4163_s21 = smov (!%p3053_p4), 0  }
  0x40   : > { %293 = vst [vmem:[#allocation3] sm:$0xff] %v3976_v0  ;;  %2991 = sbr.rel (%p3053_p4) target bundleno = 940 (0x3ac), region = 119 }
  0x41   : > { %294 = vst [vmem:[#allocation3 + $0x18] sm:$0xff] %v3976_v0 }
  0x42   : > { %295 = vst [vmem:[#allocation3 + $0x10] sm:$0xff] %v3976_v0 }
  0x43   : > { %296 = vst [vmem:[#allocation3 + $0x8] sm:$0xff] %v3976_v0 }
  0x45 LB: >> { %v4168_v1 = vld [vmem:[#allocation2 + $0x20] sm:$0xff]  ;;  %v4170_v2 = vld [vmem:[#allocation2 + $0x28] sm:$0xff]  ;;  %s3977_s30 = smov 34   ;;  %s3515_s11 = sshll.u32 %s3968_s21, 3  ;;  %v351_v17 = vlaneseq  ;;  %s3968_s21 = sphi %s4163_s21, %s301_s21  }
  0x46   : >> { %341 = vrot.lane.b32.xlu1 %v4168_v1, %s3977_s30  ;;  %345 = vrot.lane.b32.xlu2 %v4170_v2, %s3977_s30  ;;  %v4176_v3 = vld [vmem:[#allocation2 + $0x8] sm:$0xff]  ;;  %s306_s7 = scalar_lea.vmem %s4158_s20, %s3515_s11  ;;  %v4182_v7 = vld [vmem:[#allocation2 + $0x38] sm:$0xff]  ;;  %s3978_s6 = smov 33  }
  0x47   : >> { %337 = vrot.lane.b32.xlu0 %v4176_v3, %s3977_s30  ;;  %v307_v4 = vld [vmem:[%s306_s7] sm:$0xff]  ;;  %s3979_s8 = smov 32   ;;  %s3980_s9 = smov 31   ;;  %v4235_v19 = vand.u32 127, %v351_v17 }
  0x48   : >> { %v309_v5 = vunpack.c.h.bf16 %v307_v4  ;;  %v308_v6 = vunpack.c.l.bf16 %v307_v4  ;;  %s3981_s13 = smov 30   ;;  %s3982_s14 = smov 18   ;;  %v362_v21 = vld [vmem:[#allocation7] ss:$8 sm:$0xf] }
  0x49   : >> { %vm353_vm0 = vcmp.lt.s32.totalorder %v4235_v19, 34  ;;  %v366_v23 = vperm.slane %v362_v21, 2  ;;  %v365_v24 = vperm.slane %v362_v21, 1  ;;  %v367_v28 = vperm.slane %v362_v21, 3  ;;  %s3983_s18 = smov 17   ;;  %s3984_s19 = smov 16  }
  0x4a   : >> { %314 = vst [vmem:[#allocation1 + $0x10] ss:$2 sm:$0xff] %v309_v5  ;;  %v364_v29 = vperm.slane %v362_v21, 0  ;;  %v4265_v42 = vld [vmem:[#allocation7 + $0x1] ss:$8 sm:$0xf] }
  0x4b   : >> { %312 = vst [vmem:[#allocation1] ss:$2 sm:$0xff] %v308_v6  ;;  %vm404_vm1 = vcmp.lt.s32.totalorder %v4235_v19, 33  ;;  %v416_v44 = vperm.slane %v4265_v42, 0  ;;  %v417_v46 = vperm.slane %v4265_v42, 1  ;;  %vm456_vm2 = vcmp.lt.s32.totalorder %v4235_v19, 32 }
  0x4c   : >> { %s3986_s11 = smov 14   ;;  %vm508_vm3 = vcmp.lt.s32.totalorder %v4235_v19, 31  ;;  %vm560_vm4 = vcmp.lt.s32.totalorder %v4235_v19, 30  ;;  %s3987_s7 = smov 95   ;;  %vm612_vm5 = vcmp.lt.s32.totalorder %v4235_v19, 18  ;;  %vm664_vm6 = vcmp.lt.s32.totalorder %v4235_v19, 17 }
  0x4d   : >> { %vm716_vm7 = vcmp.lt.s32.totalorder %v4235_v19, 16  ;;  %vm768_vm8 = vcmp.lt.s32.totalorder %v4235_v19, 15  ;;  %vm1523_vm9 = vcmp.lt.s32.totalorder %v4235_v19, 95  ;;  %vm1107_vm10 = vcmp.lt.s32.totalorder %v4235_v19, 114  ;;  %s301_s21 = sadd.s32 1, %s3968_s21  }
  0x4e   : >> { %349 = vrot.lane.b32.xlu1 %v4182_v7, %s3977_s30  ;;  %vm1471_vm11 = vcmp.lt.s32.totalorder %v4235_v19, 96  ;;  %vm1055_vm12 = vcmp.lt.s32.totalorder %v4235_v19, 126  ;;  %vm1419_vm13 = vcmp.lt.s32.totalorder %v4235_v19, 97  ;;  %vm1575_vm14 = vcmp.lt.s32.totalorder %v4235_v19, 94  ;;  %p300_p8 = scmp.ge.s32.totalorder %s301_s21, %s4147_s29 }
  0x4f   : >> { %vm1003_vm15 = vcmp.lt.s32.totalorder %v4235_v19, 127 }
  0x51   : >> { %v317_v8 = vld.sshfl [vmem:[#allocation1 + $0x10] sm:$0xff pattern:$0x75316420]  ;;  %v318_v9 = vld.sshfl [vmem:[#allocation1 + $0x18] sm:$0xff pattern:$0x75316420] }
  0x52   : >> { %325 = vst [vmem:[#allocation2 + $0x18] sm:$0xf] %v317_v8  ;;  %v316_v10 = vld.sshfl [vmem:[#allocation1 + $0x8] sm:$0xff pattern:$0x75316420]  ;;  %v419_v8 = vperm.slane %v4265_v42, 3 }
  0x53   : >> { %324 = vst [vmem:[#allocation2] sm:$0xf] %v316_v10  ;;  %v315_v11 = vld.sshfl [vmem:[#allocation1] sm:$0xff pattern:$0x75316420]  ;;  %v418_v10 = vperm.slane %v4265_v42, 2 }
  0x54   : >> { %323 = vst [vmem:[#allocation2 + $0x30] sm:$0xf] %v315_v11  ;;  %v4306_v11 = vld [vmem:[#allocation7 + $0x2] ss:$8 sm:$0xf] }
  0x55   : >> { %326 = vst [vmem:[#allocation2 + $0x10] sm:$0xf] %v318_v9 }
  0x59   : >> { %v4186_v12 = vld [vmem:[#allocation2 + $0x18] sm:$0xff] }
  0x5a   : >> { %343 = vrot.lane.b32.xlu2 %v4186_v12, %s3977_s30  ;;  %v4190_v13 = vld [vmem:[#allocation2] sm:$0xff] }
  0x5b   : >> { %339 = vrot.lane.b32.xlu1 %v4190_v13, %s3977_s30  ;;  %v4194_v14 = vld [vmem:[#allocation2 + $0x30] sm:$0xff] }
  0x5c   : >> { %335 = vrot.lane.b32.xlu0 %v4194_v14, %s3977_s30  ;;  %v4198_v15 = vld [vmem:[#allocation2 + $0x10] sm:$0xff] }
  0x62   : >> { %388 = vrot.lane.b32.xlu2 %v4194_v14, %s3978_s6 }
  0x63   : >> { %392 = vrot.lane.b32.xlu1 %v4190_v13, %s3978_s6 }
  0x64   : >> { %347 = vrot.lane.b32.xlu0 %v4198_v15, %s3977_s30  ;;  %s3985_s30 = smov 15  }
  0x6a   : >> { %394 = vrot.lane.b32.xlu2 %v4168_v1, %s3978_s6 }
  0x6b   : >> { %398 = vrot.lane.b32.xlu1 %v4170_v2, %s3978_s6 }
  0x6c   : >> { %390 = vrot.lane.b32.xlu0 %v4176_v3, %s3978_s6 }
  0x72   : >> { %400 = vrot.lane.b32.xlu2 %v4198_v15, %s3978_s6 }
  0x73   : >> { %440 = vrot.lane.b32.xlu1 %v4194_v14, %s3979_s8 }
  0x74   : >> { %396 = vrot.lane.b32.xlu0 %v4186_v12, %s3978_s6 }
  0x7a   : >> { %442 = vrot.lane.b32.xlu2 %v4176_v3, %s3979_s8 }
  0x7b   : >> { %446 = vrot.lane.b32.xlu1 %v4168_v1, %s3979_s8 }
  0x7c   : >> { %402 = vrot.lane.b32.xlu0 %v4182_v7, %s3978_s6  ;;  %s3988_s6 = smov 114  }
  0x82   : >> { %448 = vrot.lane.b32.xlu2 %v4186_v12, %s3979_s8 }
  0x83   : >> { %452 = vrot.lane.b32.xlu1 %v4198_v15, %s3979_s8 }
  0x84   : >> { %444 = vrot.lane.b32.xlu0 %v4190_v13, %s3979_s8 }
  0x8a   : >> { %454 = vrot.lane.b32.xlu2 %v4182_v7, %s3979_s8 }
  0x8b   : >> { %494 = vrot.lane.b32.xlu1 %v4176_v3, %s3980_s9 }
  0x8c   : >> { %450 = vrot.lane.b32.xlu0 %v4170_v2, %s3979_s8  ;;  %s3989_s8 = smov 96  }
  0x92   : >> { %496 = vrot.lane.b32.xlu2 %v4190_v13, %s3980_s9 }
  0x93   : >> { %500 = vrot.lane.b32.xlu1 %v4186_v12, %s3980_s9 }
  0x94   : >> { %492 = vrot.lane.b32.xlu0 %v4194_v14, %s3980_s9 }
  0x9a   : >> { %502 = vrot.lane.b32.xlu2 %v4170_v2, %s3980_s9 }
  0x9b   : >> { %506 = vrot.lane.b32.xlu1 %v4182_v7, %s3980_s9 }
  0x9c   : >> { %498 = vrot.lane.b32.xlu0 %v4168_v1, %s3980_s9 }
  0xa0   : >> { %v346_v16 = vpop.permute.xlu2 %345 }
  0xa2   : >> { %544 = vrot.lane.b32.xlu2 %v4194_v14, %s3981_s13 }
  0xa3   : >> { %548 = vrot.lane.b32.xlu1 %v4190_v13, %s3981_s13 }
  0xa4   : >> { %504 = vrot.lane.b32.xlu0 %v4198_v15, %s3980_s9  ;;  %s3990_s9 = smov 126  }
  0xaa   : >> { %550 = vrot.lane.b32.xlu2 %v4168_v1, %s3981_s13 }
  0xab   : >> { %554 = vrot.lane.b32.xlu1 %v4170_v2, %s3981_s13 }
  0xac   : >> { %546 = vrot.lane.b32.xlu0 %v4176_v3, %s3981_s13 }
  0xb2   : >> { %556 = vrot.lane.b32.xlu2 %v4198_v15, %s3981_s13 }
  0xb3   : >> { %596 = vrot.lane.b32.xlu1 %v4194_v14, %s3982_s14 }
  0xb4   : >> { %552 = vrot.lane.b32.xlu0 %v4186_v12, %s3981_s13  ;;  %v344_v18 = vpop.permute.xlu2 %343 }
  0xb8   : >> { %v342_v20 = vpop.permute.xlu1 %341 }
  0xb9   : >> { %v338_v22 = vpop.permute.xlu0 %337  ;;  %v357_v25 = vsel %vm353_vm0, %v342_v20, %v346_v16 }
  0xba   : >> { %598 = vrot.lane.b32.xlu2 %v4176_v3, %s3982_s14  ;;  %v359_v26 = vsel %vm353_vm0, %v338_v22, %v342_v20  ;;  %v378_v30 = vmul.f32 %v366_v23, %v357_v25  ;;  %v469_v25 = vperm.slane %v4306_v11, 1 }
  0xbb   : >> { %602 = vrot.lane.b32.xlu1 %v4168_v1, %s3982_s14  ;;  %v377_v32 = vmul.f32 %v365_v24, %v359_v26 }
  0xbc   : >> { %558 = vrot.lane.b32.xlu0 %v4182_v7, %s3981_s13  ;;  %v389_v27 = vpop.permute.xlu2 %388  ;;  %s3991_s13 = smov 97  }
  0xc0   : >> { %v350_v31 = vpop.permute.xlu1 %349 }
  0xc1   : >> { %v355_v33 = vsel %vm353_vm0, %v346_v16, %v350_v31  ;;  %v361_v34 = vsel %vm353_vm0, %v350_v31, %v338_v22  ;;  %v468_v22 = vperm.slane %v4306_v11, 0 }
  0xc2   : >> { %v379_v35 = vmul.f32 %v367_v28, %v355_v33  ;;  %v376_v36 = vmul.f32 %v364_v29, %v361_v34  ;;  %604 = vrot.lane.b32.xlu2 %v4186_v12, %s3982_s14 }
  0xc3   : >> { %608 = vrot.lane.b32.xlu1 %v4198_v15, %s3982_s14 }
  0xc4   : >> { %v383_v37 = vpack.c.bf16 %v379_v35, %v378_v30  ;;  %v382_v38 = vpack.c.bf16 %v377_v32, %v376_v36  ;;  %600 = vrot.lane.b32.xlu0 %v4190_v13, %s3982_s14  ;;  %v4257_v39 = vpop.permute.xlu2 %394 }
  0xc6   : >> { %387 = vst [vmem:[#allocation4 + $0x18] sm:$0xff] %v383_v37 }
  0xc7   : >> { %386 = vst [vmem:[#allocation4 + $0x10] sm:$0xff] %v382_v38 }
  0xca   : >> { %610 = vrot.lane.b32.xlu2 %v4182_v7, %s3982_s14 }
  0xcb   : >> { %650 = vrot.lane.b32.xlu1 %v4176_v3, %s3983_s18 }
  0xcc   : >> { %606 = vrot.lane.b32.xlu0 %v4170_v2, %s3982_s14  ;;  %v401_v40 = vpop.permute.xlu2 %400  ;;  %s5805_s14 = smov 94  }
  0xcd   : >> { %v340_v41 = vpop.permute.xlu1 %339  ;;  %v411_v45 = vsel %vm404_vm1, %v401_v40, %v389_v27 }
  0xce   : >> { %v336_v43 = vpop.permute.xlu0 %335  ;;  %v356_v48 = vsel %vm353_vm0, %v340_v41, %v344_v18  ;;  %v424_v49 = vmul.f32 %v416_v44, %v411_v45  ;;  %v471_v45 = vperm.slane %v4306_v11, 3 }
  0xcf   : >> { %v358_v50 = vsel %vm353_vm0, %v336_v43, %v340_v41  ;;  %v374_v57 = vmul.f32 %v366_v23, %v356_v48 }
  0xd0   : >> { %v373_v58 = vmul.f32 %v365_v24, %v358_v50 }
  0xd2   : >> { %652 = vrot.lane.b32.xlu2 %v4190_v13, %s3983_s18 }
  0xd3   : >> { %656 = vrot.lane.b32.xlu1 %v4186_v12, %s3983_s18 }
  0xd4   : >> { %648 = vrot.lane.b32.xlu0 %v4194_v14, %s3983_s18  ;;  %v443_v47 = vpop.permute.xlu2 %442 }
  0xd5   : >> { %v393_v51 = vpop.permute.xlu1 %392 }
  0xd6   : >> { %v409_v52 = vsel %vm404_vm1, %v389_v27, %v393_v51  ;;  %v348_v53 = vpop.permute.xlu0 %347 }
  0xd7   : >> { %v425_v54 = vmul.f32 %v417_v46, %v409_v52  ;;  %v354_v55 = vsel %vm353_vm0, %v344_v18, %v348_v53  ;;  %v360_v56 = vsel %vm353_vm0, %v348_v53, %v336_v43  ;;  %vm2281_vm0 = vcmask 130048  }
  0xd8   : >> { %v372_v59 = vmul.f32 %v364_v29, %v360_v56  ;;  %v375_v60 = vmul.f32 %v367_v28, %v354_v55 }
  0xd9   : >> { %v432_v61 = vpack.c.bf16 %v425_v54, %v424_v49 }
  0xda   : >> { %v380_v62 = vpack.c.bf16 %v373_v58, %v372_v59  ;;  %v381_v63 = vpack.c.bf16 %v375_v60, %v374_v57  ;;  %658 = vrot.lane.b32.xlu2 %v4170_v2, %s3983_s18 }
  0xdb   : >> { %436 = vst [vmem:[#allocation4 + $0x20] sm:$0xff] %v432_v61  ;;  %662 = vrot.lane.b32.xlu1 %v4182_v7, %s3983_s18 }
  0xdc   : >> { %384 = vst [vmem:[#allocation4] sm:$0xff] %v380_v62  ;;  %654 = vrot.lane.b32.xlu0 %v4168_v1, %s3983_s18  ;;  %v449_v0 = vpop.permute.xlu2 %448 }
  0xdd   : >> { %385 = vst [vmem:[#allocation4 + $0x8] sm:$0xff] %v381_v63  ;;  %v399_v4 = vpop.permute.xlu1 %398 }
  0xde   : >> { %v391_v5 = vpop.permute.xlu0 %390  ;;  %v408_v27 = vsel %vm404_vm1, %v4257_v39, %v399_v4 }
  0xdf   : >> { %v410_v28 = vsel %vm404_vm1, %v391_v5, %v4257_v39  ;;  %v430_v36 = vmul.f32 %v418_v10, %v408_v27 }
  0xe0   : >> { %v429_v37 = vmul.f32 %v417_v46, %v410_v28 }
  0xe2   : >> { %700 = vrot.lane.b32.xlu2 %v4194_v14, %s3984_s19 }
  0xe3   : >> { %704 = vrot.lane.b32.xlu1 %v4190_v13, %s3984_s19 }
  0xe4   : >> { %660 = vrot.lane.b32.xlu0 %v4198_v15, %s3983_s18  ;;  %v4302_v6 = vpop.permute.xlu2 %454  ;;  %s3993_s18 = smov 127  }
  0xe5   : >> { %v441_v9 = vpop.permute.xlu1 %440  ;;  %v464_v23 = vsel %vm456_vm2, %v4302_v6, %v443_v47 }
  0xe6   : >> { %v397_v16 = vpop.permute.xlu0 %396  ;;  %v480_v29 = vmul.f32 %v468_v22, %v464_v23 }
  0xe7   : >> { %v405_v17 = vsel %vm404_vm1, %v397_v16, %v401_v40  ;;  %v407_v18 = vsel %vm404_vm1, %v393_v51, %v397_v16 }
  0xe8   : >> { %v426_v20 = vmul.f32 %v418_v10, %v407_v18  ;;  %v427_v21 = vmul.f32 %v419_v8, %v405_v17 }
  0xea   : >> { %v433_v24 = vpack.c.bf16 %v427_v21, %v426_v20  ;;  %706 = vrot.lane.b32.xlu2 %v4168_v1, %s3984_s19  ;;  %v4389_v21 = vld [vmem:[#allocation7 + $0x4] ss:$8 sm:$0xf] }
  0xeb   : >> { %710 = vrot.lane.b32.xlu1 %v4170_v2, %s3984_s19 }
  0xec   : >> { %437 = vst [vmem:[#allocation4 + $0x28] sm:$0xff] %v433_v24  ;;  %702 = vrot.lane.b32.xlu0 %v4176_v3, %s3984_s19  ;;  %v4324_v26 = vpop.permute.xlu2 %496 }
  0xed   : >> { %v447_v30 = vpop.permute.xlu1 %446 }
  0xee   : >> { %v462_v31 = vsel %vm456_vm2, %v443_v47, %v447_v30  ;;  %v403_v32 = vpop.permute.xlu0 %402 }
  0xef   : >> { %v481_v33 = vmul.f32 %v469_v25, %v462_v31  ;;  %v406_v34 = vsel %vm404_vm1, %v399_v4, %v403_v32  ;;  %v412_v35 = vsel %vm404_vm1, %v403_v32, %v391_v5  ;;  %vm1367_vm1 = vcmp.lt.s32.totalorder %v4235_v19, 98 }
  0xf0   : >> { %v428_v38 = vmul.f32 %v416_v44, %v412_v35  ;;  %v431_v40 = vmul.f32 %v419_v8, %v406_v34  ;;  %v470_v44 = vperm.slane %v4306_v11, 2  ;;  %v573_v34 = vperm.slane %v4389_v21, 1 }
  0xf1   : >> { %v486_v39 = vpack.c.bf16 %v481_v33, %v480_v29 }
  0xf2   : >> { %v434_v41 = vpack.c.bf16 %v429_v37, %v428_v38  ;;  %v435_v43 = vpack.c.bf16 %v431_v40, %v430_v36  ;;  %712 = vrot.lane.b32.xlu2 %v4198_v15, %s3984_s19 }
  0xf3   : >> { %490 = vst [vmem:[#allocation4 + $0x50] sm:$0xff] %v486_v39  ;;  %752 = vrot.lane.b32.xlu1 %v4194_v14, %s3985_s30 }
  0xf4   : >> { %438 = vst [vmem:[#allocation4 + $0x30] sm:$0xff] %v434_v41  ;;  %708 = vrot.lane.b32.xlu0 %v4186_v12, %s3984_s19  ;;  %v503_v42 = vpop.permute.xlu2 %502 }
  0xf5   : >> { %439 = vst [vmem:[#allocation4 + $0x38] sm:$0xff] %v435_v43  ;;  %v453_v46 = vpop.permute.xlu1 %452 }
  0xf6   : >> { %v457_v47 = vsel %vm456_vm2, %v449_v0, %v453_v46  ;;  %v463_v48 = vsel %vm456_vm2, %v453_v46, %v441_v9  ;;  %v445_v49 = vpop.permute.xlu0 %444 }
  0xf7   : >> { %v476_v50 = vmul.f32 %v468_v22, %v463_v48  ;;  %v479_v51 = vmul.f32 %v471_v45, %v457_v47  ;;  %v459_v52 = vsel %vm456_vm2, %v445_v49, %v449_v0  ;;  %v461_v53 = vsel %vm456_vm2, %v441_v9, %v445_v49  ;;  %v518_v9 = vld [vmem:[#allocation7 + $0x3] ss:$8 sm:$0xf] }
  0xf8   : >> { %v477_v54 = vmul.f32 %v469_v25, %v461_v53  ;;  %v478_v55 = vmul.f32 %v470_v44, %v459_v52  ;;  %v520_v10 = vperm.slane %v518_v9, 0  ;;  %v523_v11 = vperm.slane %v518_v9, 3 }
  0xf9   : >> { %v522_v16 = vperm.slane %v518_v9, 2  ;;  %v521_v18 = vperm.slane %v518_v9, 1 }
  0xfa   : >> { %v484_v56 = vpack.c.bf16 %v477_v54, %v476_v50  ;;  %v485_v57 = vpack.c.bf16 %v479_v51, %v478_v55  ;;  %754 = vrot.lane.b32.xlu2 %v4176_v3, %s3985_s30  ;;  %v575_v55 = vperm.slane %v4389_v21, 3 }
  0xfb   : >> { %758 = vrot.lane.b32.xlu1 %v4168_v1, %s3985_s30 }
  0xfc   : >> { %488 = vst [vmem:[#allocation4 + $0x40] sm:$0xff] %v484_v56  ;;  %714 = vrot.lane.b32.xlu0 %v4182_v7, %s3984_s19  ;;  %v545_v58 = vpop.permute.xlu2 %544  ;;  %s3994_s19 = smov 98  }
  0xfd   : >> { %489 = vst [vmem:[#allocation4 + $0x48] sm:$0xff] %v485_v57  ;;  %v495_v59 = vpop.permute.xlu1 %494  ;;  %v574_v57 = vperm.slane %v4389_v21, 2 }
  0xfe   : >> { %v451_v60 = vpop.permute.xlu0 %450 }
  0xff   : >> { %v458_v61 = vsel %vm456_vm2, %v451_v60, %v4302_v6  ;;  %v460_v62 = vsel %vm456_vm2, %v447_v30, %v451_v60  ;;  %v572_v30 = vperm.slane %v4389_v21, 0  ;;  %vm1315_vm2 = vcmp.lt.s32.totalorder %v4235_v19, 110 }
 0x100   : >> { %v482_v63 = vmul.f32 %v470_v44, %v460_v62  ;;  %v483_v0 = vmul.f32 %v471_v45, %v458_v61 }
 0x102   : >> { %v487_v4 = vpack.c.bf16 %v483_v0, %v482_v63  ;;  %760 = vrot.lane.b32.xlu2 %v4186_v12, %s3985_s30 }
 0x103   : >> { %764 = vrot.lane.b32.xlu1 %v4198_v15, %s3985_s30 }
 0x104   : >> { %491 = vst [vmem:[#allocation4 + $0x58] sm:$0xff] %v487_v4  ;;  %756 = vrot.lane.b32.xlu0 %v4190_v13, %s3985_s30  ;;  %v4373_v5 = vpop.permute.xlu2 %550 }
 0x105   : >> { %v501_v8 = vpop.permute.xlu1 %500 }
 0x106   : >> { %v493_v6 = vpop.permute.xlu0 %492  ;;  %v511_v36 = vsel %vm508_vm3, %v4324_v26, %v501_v8 }
 0x107   : >> { %v513_v37 = vsel %vm508_vm3, %v493_v6, %v4324_v26  ;;  %v530_v44 = vmul.f32 %v522_v16, %v511_v36 }
 0x108   : >> { %v529_v26 = vmul.f32 %v521_v18, %v513_v37 }
 0x10a   : >> { %766 = vrot.lane.b32.xlu2 %v4182_v7, %s3985_s30 }
 0x10b   : >> { %806 = vrot.lane.b32.xlu1 %v4176_v3, %s3986_s11 }
 0x10c   : >> { %762 = vrot.lane.b32.xlu0 %v4170_v2, %s3985_s30  ;;  %v4381_v15 = vpop.permute.xlu2 %556  ;;  %s5807_s30 = smov 110  }
 0x10d   : >> { %v507_v17 = vpop.permute.xlu1 %506  ;;  %v567_v31 = vsel %vm560_vm4, %v4381_v15, %v545_v58 }
 0x10e   : >> { %v510_v20 = vsel %vm508_vm3, %v503_v42, %v507_v17  ;;  %v516_v7 = vsel %vm508_vm3, %v507_v17, %v495_v59  ;;  %v499_v22 = vpop.permute.xlu0 %498  ;;  %v580_v38 = vmul.f32 %v572_v30, %v567_v31 }
 0x10f   : >> { %v532_v23 = vmul.f32 %v520_v10, %v516_v7  ;;  %v535_v24 = vmul.f32 %v523_v11, %v510_v20  ;;  %v512_v25 = vsel %vm508_vm3, %v499_v22, %v503_v42  ;;  %v514_v27 = vsel %vm508_vm3, %v495_v59, %v499_v22 }
 0x110   : >> { %v533_v28 = vmul.f32 %v521_v18, %v514_v27  ;;  %v534_v29 = vmul.f32 %v522_v16, %v512_v25 }
 0x112   : >> { %v538_v32 = vpack.c.bf16 %v533_v28, %v532_v23  ;;  %v539_v33 = vpack.c.bf16 %v535_v24, %v534_v29  ;;  %808 = vrot.lane.b32.xlu2 %v4190_v13, %s3986_s11 }
 0x113   : >> { %812 = vrot.lane.b32.xlu1 %v4186_v12, %s3986_s11 }
 0x114   : >> { %542 = vst [vmem:[#allocation4 + $0x70] sm:$0xff] %v538_v32  ;;  %804 = vrot.lane.b32.xlu0 %v4194_v14, %s3986_s11  ;;  %v599_v35 = vpop.permute.xlu2 %598 }
 0x115   : >> { %543 = vst [vmem:[#allocation4 + $0x78] sm:$0xff] %v539_v33  ;;  %v549_v40 = vpop.permute.xlu1 %548 }
 0x116   : >> { %v565_v39 = vsel %vm560_vm4, %v545_v58, %v549_v40  ;;  %v505_v41 = vpop.permute.xlu0 %504  ;;  %v4438_v58 = vld [vmem:[#allocation7 + $0x5] ss:$8 sm:$0xf] }
 0x117   : >> { %v581_v43 = vmul.f32 %v573_v34, %v565_v39  ;;  %v509_v45 = vsel %vm508_vm3, %v501_v8, %v505_v41  ;;  %v515_v42 = vsel %vm508_vm3, %v505_v41, %v493_v6  ;;  %v624_v0 = vperm.slane %v4438_v58, 0 }
 0x118   : >> { %v528_v46 = vmul.f32 %v520_v10, %v515_v42  ;;  %v531_v47 = vmul.f32 %v523_v11, %v509_v45  ;;  %v625_v6 = vperm.slane %v4438_v58, 1  ;;  %v627_v31 = vperm.slane %v4438_v58, 3 }
 0x119   : >> { %v588_v48 = vpack.c.bf16 %v581_v43, %v580_v38  ;;  %v626_v21 = vperm.slane %v4438_v58, 2  ;;  %vm924_vm3 = vcmp.lt.s32.totalorder %v4235_v19, 1 }
 0x11a   : >> { %v536_v49 = vpack.c.bf16 %v529_v26, %v528_v46  ;;  %v537_v50 = vpack.c.bf16 %v531_v47, %v530_v44  ;;  %814 = vrot.lane.b32.xlu2 %v4170_v2, %s3986_s11 }
 0x11b   : >> { %592 = vst [vmem:[#allocation4 + $0x80] sm:$0xff] %v588_v48  ;;  %1509 = vrot.lane.b32.xlu1 %v4176_v3, %s3987_s7 }
 0x11c   : >> { %540 = vst [vmem:[#allocation4 + $0x60] sm:$0xff] %v536_v49  ;;  %810 = vrot.lane.b32.xlu0 %v4168_v1, %s3986_s11  ;;  %v605_v51 = vpop.permute.xlu2 %604 }
 0x11d   : >> { %541 = vst [vmem:[#allocation4 + $0x68] sm:$0xff] %v537_v50  ;;  %v555_v52 = vpop.permute.xlu1 %554 }
 0x11e   : >> { %v547_v53 = vpop.permute.xlu0 %546  ;;  %v564_v10 = vsel %vm560_vm4, %v4373_v5, %v555_v52 }
 0x11f   : >> { %v566_v11 = vsel %vm560_vm4, %v547_v53, %v4373_v5  ;;  %v586_v23 = vmul.f32 %v574_v57, %v564_v10 }
 0x120   : >> { %v585_v24 = vmul.f32 %v573_v34, %v566_v11 }
 0x122   : >> { %1511 = vrot.lane.b32.xlu2 %v4190_v13, %s3987_s7 }
 0x123   : >> { %1515 = vrot.lane.b32.xlu1 %v4186_v12, %s3987_s7 }
 0x124   : >> { %1507 = vrot.lane.b32.xlu0 %v4194_v14, %s3987_s7  ;;  %v4434_v54 = vpop.permute.xlu2 %610 }
 0x125   : >> { %v597_v56 = vpop.permute.xlu1 %596  ;;  %v620_v4 = vsel %vm612_vm5, %v4434_v54, %v599_v35 }
 0x126   : >> { %v553_v59 = vpop.permute.xlu0 %552 }
 0x127   : >> { %v561_v60 = vsel %vm560_vm4, %v553_v59, %v4381_v15  ;;  %v563_v61 = vsel %vm560_vm4, %v549_v40, %v553_v59  ;;  %v636_v15 = vmul.f32 %v624_v0, %v620_v4 }
 0x128   : >> { %v582_v62 = vmul.f32 %v574_v57, %v563_v61  ;;  %v583_v63 = vmul.f32 %v575_v55, %v561_v60 }
 0x12a   : >> { %v589_v8 = vpack.c.bf16 %v583_v63, %v582_v62  ;;  %1517 = vrot.lane.b32.xlu2 %v4170_v2, %s3987_s7  ;;  %v4524_v63 = vld [vmem:[#allocation7 + $0x7] ss:$8 sm:$0xf] }
 0x12b   : >> { %1093 = vrot.lane.b32.xlu1 %v4176_v3, %s3988_s6 }
 0x12c   : >> { %593 = vst [vmem:[#allocation4 + $0x88] sm:$0xff] %v589_v8  ;;  %1513 = vrot.lane.b32.xlu0 %v4168_v1, %s3987_s7  ;;  %v4457_v9 = vpop.permute.xlu2 %652 }
 0x12d   : >> { %v603_v16 = vpop.permute.xlu1 %602 }
 0x12e   : >> { %v618_v17 = vsel %vm612_vm5, %v599_v35, %v603_v16  ;;  %v559_v18 = vpop.permute.xlu0 %558 }
 0x12f   : >> { %v637_v20 = vmul.f32 %v625_v6, %v618_v17  ;;  %v562_v7 = vsel %vm560_vm4, %v555_v52, %v559_v18  ;;  %v568_v22 = vsel %vm560_vm4, %v559_v18, %v547_v53  ;;  %vm1263_vm4 = vcmp.lt.s32.totalorder %v4235_v19, 111 }
 0x130   : >> { %v584_v5 = vmul.f32 %v572_v30, %v568_v22  ;;  %v587_v25 = vmul.f32 %v575_v55, %v562_v7  ;;  %v729_v7 = vperm.slane %v4524_v63, 1 }
 0x131   : >> { %v642_v27 = vpack.c.bf16 %v637_v20, %v636_v15 }
 0x132   : >> { %v590_v28 = vpack.c.bf16 %v585_v24, %v584_v5  ;;  %v591_v29 = vpack.c.bf16 %v587_v25, %v586_v23  ;;  %1095 = vrot.lane.b32.xlu2 %v4190_v13, %s3988_s6 }
 0x133   : >> { %646 = vst [vmem:[#allocation4 + $0xb0] sm:$0xff] %v642_v27  ;;  %1099 = vrot.lane.b32.xlu1 %v4186_v12, %s3988_s6 }
 0x134   : >> { %594 = vst [vmem:[#allocation4 + $0x90] sm:$0xff] %v590_v28  ;;  %1091 = vrot.lane.b32.xlu0 %v4194_v14, %s3988_s6  ;;  %v659_v32 = vpop.permute.xlu2 %658 }
 0x135   : >> { %595 = vst [vmem:[#allocation4 + $0x98] sm:$0xff] %v591_v29  ;;  %v609_v30 = vpop.permute.xlu1 %608 }
 0x136   : >> { %v613_v33 = vsel %vm612_vm5, %v605_v51, %v609_v30  ;;  %v619_v34 = vsel %vm612_vm5, %v609_v30, %v597_v56  ;;  %v601_v35 = vpop.permute.xlu0 %600 }
 0x137   : >> { %v632_v36 = vmul.f32 %v624_v0, %v619_v34  ;;  %v635_v37 = vmul.f32 %v627_v31, %v613_v33  ;;  %v615_v38 = vsel %vm612_vm5, %v601_v35, %v605_v51  ;;  %v617_v40 = vsel %vm612_vm5, %v597_v56, %v601_v35 }
 0x138   : >> { %v633_v39 = vmul.f32 %v625_v6, %v617_v40  ;;  %v634_v41 = vmul.f32 %v626_v21, %v615_v38 }
 0x13a   : >> { %v640_v43 = vpack.c.bf16 %v633_v39, %v632_v36  ;;  %v641_v45 = vpack.c.bf16 %v635_v37, %v634_v41  ;;  %1101 = vrot.lane.b32.xlu2 %v4170_v2, %s3988_s6  ;;  %v731_v41 = vperm.slane %v4524_v63, 3 }
 0x13b   : >> { %1457 = vrot.lane.b32.xlu1 %v4176_v3, %s3989_s8 }
 0x13c   : >> { %644 = vst [vmem:[#allocation4 + $0xa0] sm:$0xff] %v640_v43  ;;  %1097 = vrot.lane.b32.xlu0 %v4168_v1, %s3988_s6  ;;  %v701_v42 = vpop.permute.xlu2 %700 }
 0x13d   : >> { %645 = vst [vmem:[#allocation4 + $0xa8] sm:$0xff] %v641_v45  ;;  %v651_v44 = vpop.permute.xlu1 %650  ;;  %v730_v45 = vperm.slane %v4524_v63, 2 }
 0x13e   : >> { %v607_v26 = vpop.permute.xlu0 %606 }
 0x13f   : >> { %v614_v46 = vsel %vm612_vm5, %v607_v26, %v4434_v54  ;;  %v616_v47 = vsel %vm612_vm5, %v603_v16, %v607_v26  ;;  %v674_v54 = vld [vmem:[#allocation7 + $0x6] ss:$8 sm:$0xf]  ;;  %v728_v16 = vperm.slane %v4524_v63, 0  ;;  %vm872_vm5 = vcmp.lt.s32.totalorder %v4235_v19, 2 }
 0x140   : >> { %v638_v48 = vmul.f32 %v626_v21, %v616_v47  ;;  %v639_v49 = vmul.f32 %v627_v31, %v614_v46  ;;  %v676_v55 = vperm.slane %v674_v54, 0  ;;  %v679_v56 = vperm.slane %v674_v54, 3 }
 0x141   : >> { %v678_v58 = vperm.slane %v674_v54, 2  ;;  %v677_v60 = vperm.slane %v674_v54, 1 }
 0x142   : >> { %v643_v50 = vpack.c.bf16 %v639_v49, %v638_v48  ;;  %1459 = vrot.lane.b32.xlu2 %v4190_v13, %s3989_s8 }
 0x143   : >> { %1463 = vrot.lane.b32.xlu1 %v4186_v12, %s3989_s8 }
 0x144   : >> { %647 = vst [vmem:[#allocation4 + $0xb8] sm:$0xff] %v643_v50  ;;  %1455 = vrot.lane.b32.xlu0 %v4194_v14, %s3989_s8  ;;  %v4508_v51 = vpop.permute.xlu2 %706 }
 0x145   : >> { %v657_v52 = vpop.permute.xlu1 %656 }
 0x146   : >> { %v649_v53 = vpop.permute.xlu0 %648  ;;  %v667_v23 = vsel %vm664_vm6, %v4457_v9, %v657_v52 }
 0x147   : >> { %v669_v24 = vsel %vm664_vm6, %v649_v53, %v4457_v9  ;;  %v686_v21 = vmul.f32 %v678_v58, %v667_v23 }
 0x148   : >> { %v685_v9 = vmul.f32 %v677_v60, %v669_v24 }
 0x14a   : >> { %1465 = vrot.lane.b32.xlu2 %v4170_v2, %s3989_s8 }
 0x14b   : >> { %1041 = vrot.lane.b32.xlu1 %v4176_v3, %s3990_s9 }
 0x14c   : >> { %1461 = vrot.lane.b32.xlu0 %v4168_v1, %s3989_s8  ;;  %v4516_v57 = vpop.permute.xlu2 %712 }
 0x14d   : >> { %v663_v59 = vpop.permute.xlu1 %662  ;;  %v723_v17 = vsel %vm716_vm7, %v4516_v57, %v701_v42 }
 0x14e   : >> { %v666_v61 = vsel %vm664_vm6, %v659_v32, %v663_v59  ;;  %v672_v62 = vsel %vm664_vm6, %v663_v59, %v651_v44  ;;  %v655_v0 = vpop.permute.xlu0 %654  ;;  %v736_v5 = vmul.f32 %v728_v16, %v723_v17 }
 0x14f   : >> { %v688_v4 = vmul.f32 %v676_v55, %v672_v62  ;;  %v691_v8 = vmul.f32 %v679_v56, %v666_v61  ;;  %v668_v6 = vsel %vm664_vm6, %v655_v0, %v659_v32  ;;  %v670_v10 = vsel %vm664_vm6, %v651_v44, %v655_v0 }
 0x150   : >> { %v689_v11 = vmul.f32 %v677_v60, %v670_v10  ;;  %v690_v15 = vmul.f32 %v678_v58, %v668_v6 }
 0x152   : >> { %v694_v18 = vpack.c.bf16 %v689_v11, %v688_v4  ;;  %v695_v20 = vpack.c.bf16 %v691_v8, %v690_v15  ;;  %1043 = vrot.lane.b32.xlu2 %v4190_v13, %s3990_s9 }
 0x153   : >> { %1047 = vrot.lane.b32.xlu1 %v4186_v12, %s3990_s9 }
 0x154   : >> { %698 = vst [vmem:[#allocation4 + $0xd0] sm:$0xff] %v694_v18  ;;  %1039 = vrot.lane.b32.xlu0 %v4194_v14, %s3990_s9  ;;  %v755_v22 = vpop.permute.xlu2 %754 }
 0x155   : >> { %699 = vst [vmem:[#allocation4 + $0xd8] sm:$0xff] %v695_v20  ;;  %v705_v25 = vpop.permute.xlu1 %704 }
 0x156   : >> { %v721_v27 = vsel %vm716_vm7, %v701_v42, %v705_v25  ;;  %v661_v28 = vpop.permute.xlu0 %660  ;;  %v4573_v42 = vld [vmem:[#allocation7 + $0x20] ss:$8 sm:$0xf] }
 0x157   : >> { %v737_v29 = vmul.f32 %v729_v7, %v721_v27  ;;  %v665_v31 = vsel %vm664_vm6, %v657_v52, %v661_v28  ;;  %v671_v32 = vsel %vm664_vm6, %v661_v28, %v649_v53  ;;  %v780_v49 = vperm.slane %v4573_v42, 0 }
 0x158   : >> { %v684_v30 = vmul.f32 %v676_v55, %v671_v32  ;;  %v687_v33 = vmul.f32 %v679_v56, %v665_v31  ;;  %v781_v53 = vperm.slane %v4573_v42, 1  ;;  %v783_v17 = vperm.slane %v4573_v42, 3 }
 0x159   : >> { %v744_v34 = vpack.c.bf16 %v737_v29, %v736_v5  ;;  %v782_v63 = vperm.slane %v4573_v42, 2  ;;  %vm1211_vm6 = vcmp.lt.s32.totalorder %v4235_v19, 112 }
 0x15a   : >> { %v692_v35 = vpack.c.bf16 %v685_v9, %v684_v30  ;;  %v693_v36 = vpack.c.bf16 %v687_v33, %v686_v21  ;;  %1049 = vrot.lane.b32.xlu2 %v4170_v2, %s3990_s9 }
 0x15b   : >> { %748 = vst [vmem:[#allocation4 + $0xe0] sm:$0xff] %v744_v34  ;;  %1405 = vrot.lane.b32.xlu1 %v4176_v3, %s3991_s13 }
 0x15c   : >> { %696 = vst [vmem:[#allocation4 + $0xc0] sm:$0xff] %v692_v35  ;;  %1045 = vrot.lane.b32.xlu0 %v4168_v1, %s3990_s9  ;;  %v761_v37 = vpop.permute.xlu2 %760 }
 0x15d   : >> { %697 = vst [vmem:[#allocation4 + $0xc8] sm:$0xff] %v693_v36  ;;  %v711_v38 = vpop.permute.xlu1 %710  ;;  %v3550_v36 = vld [vmem:[#allocation4 + $0xcc] sm:$0xf0] }
 0x15e   : >> { %v703_v40 = vpop.permute.xlu0 %702  ;;  %v720_v55 = vsel %vm716_vm7, %v4508_v51, %v711_v38 }
 0x15f   : >> { %v722_v56 = vsel %vm716_vm7, %v703_v40, %v4508_v51  ;;  %v742_v4 = vmul.f32 %v730_v45, %v720_v55  ;;  %v3122_v55 = vld [vmem:[#allocation4 + $0x40] sm:$0xf] }
 0x160   : >> { %v741_v8 = vmul.f32 %v729_v7, %v722_v56 }
 0x162   : >> { %1407 = vrot.lane.b32.xlu2 %v4190_v13, %s3991_s13  ;;  %v3202_v32 = vld [vmem:[#allocation4 + $0xe0] sm:$0xf] }
 0x163   : >> { %1411 = vrot.lane.b32.xlu1 %v4186_v12, %s3991_s13  ;;  %v3186_v34 = vld [vmem:[#allocation4 + $0xc0] sm:$0xf] }
 0x164   : >> { %1403 = vrot.lane.b32.xlu0 %v4194_v14, %s3991_s13  ;;  %v4569_v39 = vpop.permute.xlu2 %766 }
 0x165   : >> { %v753_v43 = vpop.permute.xlu1 %752  ;;  %v776_v50 = vsel %vm768_vm8, %v4569_v39, %v755_v22 }
 0x166   : >> { %v709_v44 = vpop.permute.xlu0 %708 }
 0x167   : >> { %v717_v26 = vsel %vm716_vm7, %v709_v44, %v4516_v57  ;;  %v719_v46 = vsel %vm716_vm7, %v705_v25, %v709_v44  ;;  %v792_v57 = vmul.f32 %v780_v49, %v776_v50  ;;  %v3542_v44 = vld [vmem:[#allocation4 + $0x8c] sm:$0xf0] }
 0x168   : >> { %v738_v47 = vmul.f32 %v730_v45, %v719_v46  ;;  %v739_v48 = vmul.f32 %v731_v41, %v717_v26  ;;  %v3154_v46 = vld [vmem:[#allocation4 + $0x80] sm:$0xf] }
 0x16a   : >> { %v745_v52 = vpack.c.bf16 %v739_v48, %v738_v47  ;;  %1413 = vrot.lane.b32.xlu2 %v4170_v2, %s3991_s13  ;;  %v3155_v47 = vor.u32 %v3542_v44, %v3154_v46  ;;  %v4655_v48 = vld [vmem:[#allocation2 + $0x28] sm:$0xff] }
 0x16b   : >> { %1561 = vrot.lane.b32.xlu1 %v4176_v3, %s5805_s14 }
 0x16c   : >> { %749 = vst [vmem:[#allocation4 + $0xe8] sm:$0xff] %v745_v52  ;;  %1409 = vrot.lane.b32.xlu0 %v4168_v1, %s3991_s13  ;;  %v4592_v54 = vpop.permute.xlu2 %808 }
 0x16d   : >> { %v759_v58 = vpop.permute.xlu1 %758 }
 0x16e   : >> { %v774_v59 = vsel %vm768_vm8, %v755_v22, %v759_v58  ;;  %v715_v60 = vpop.permute.xlu0 %714 }
 0x16f   : >> { %v793_v61 = vmul.f32 %v781_v53, %v774_v59  ;;  %v718_v62 = vsel %vm716_vm7, %v711_v38, %v715_v60  ;;  %v724_v0 = vsel %vm716_vm7, %v715_v60, %v703_v40  ;;  %v3170_v40 = vld [vmem:[#allocation4 + $0xa0] sm:$0xf]  ;;  %v1533_v59 = vld [vmem:[#allocation7 + $0x47] ss:$8 sm:$0xf]  ;;  %vm820_vm7 = vcmp.lt.s32.totalorder %v4235_v19, 14 }
 0x170   : >> { %v740_v51 = vmul.f32 %v728_v16, %v724_v0  ;;  %v743_v6 = vmul.f32 %v731_v41, %v718_v62  ;;  %v3530_v60 = vld [vmem:[#allocation4 + $0x2c] sm:$0xf0]  ;;  %v4675_v62 = vld [vmem:[#allocation2 + $0x18] sm:$0xff]  ;;  %v1536_v0 = vperm.slane %v1533_v59, 1 }
 0x171   : >> { %v798_v10 = vpack.c.bf16 %v793_v61, %v792_v57  ;;  %v3534_v57 = vld [vmem:[#allocation4 + $0x4c] sm:$0xf0]  ;;  %v4671_v61 = vld [vmem:[#allocation2] sm:$0xff] }
 0x172   : >> { %v746_v11 = vpack.c.bf16 %v741_v8, %v740_v51  ;;  %v747_v15 = vpack.c.bf16 %v743_v6, %v742_v4  ;;  %1563 = vrot.lane.b32.xlu2 %v4190_v13, %s5805_s14  ;;  %v3106_v4 = vld [vmem:[#allocation4 + $0x20] sm:$0xf]  ;;  %v4680_v8 = vld [vmem:[#allocation2 + $0x30] sm:$0xff] }
 0x173   : >> { %802 = vst [vmem:[#allocation4 + $0x110] sm:$0xff] %v798_v10  ;;  %1567 = vrot.lane.b32.xlu1 %v4186_v12, %s5805_s14  ;;  %v3107_v6 = vor.u32 %v3530_v60, %v3106_v4  ;;  %v1535_v10 = vperm.slane %v1533_v59, 0 }
 0x174   : >> { %750 = vst [vmem:[#allocation4 + $0xf0] sm:$0xff] %v746_v11  ;;  %1559 = vrot.lane.b32.xlu0 %v4194_v14, %s5805_s14  ;;  %v4617_v18 = vpop.permute.xlu2 %814 }
 0x175   : >> { %751 = vst [vmem:[#allocation4 + $0xf8] sm:$0xff] %v747_v15  ;;  %v765_v16 = vpop.permute.xlu1 %764  ;;  %v3090_v15 = vld [vmem:[#allocation4] sm:$0xf] }
 0x176   : >> { %v769_v20 = vsel %vm768_vm8, %v761_v37, %v765_v16  ;;  %v775_v7 = vsel %vm768_vm8, %v765_v16, %v753_v43  ;;  %v757_v22 = vpop.permute.xlu0 %756 }
 0x177   : >> { %v788_v23 = vmul.f32 %v780_v49, %v775_v7  ;;  %v791_v24 = vmul.f32 %v783_v17, %v769_v20  ;;  %v771_v5 = vsel %vm768_vm8, %v757_v22, %v761_v37  ;;  %v773_v25 = vsel %vm768_vm8, %v753_v43, %v757_v22  ;;  %v3546_v43 = vld [vmem:[#allocation4 + $0xac] sm:$0xf0]  ;;  %v4663_v49 = vld [vmem:[#allocation2 + $0x20] sm:$0xff] }
 0x178   : >> { %v789_v27 = vmul.f32 %v781_v53, %v773_v25  ;;  %v790_v28 = vmul.f32 %v782_v63, %v771_v5  ;;  %v3171_v45 = vor.u32 %v3546_v43, %v3170_v40  ;;  %v3526_v7 = vld [vmem:[#allocation4 + $0xc] sm:$0xf0] }
 0x17a   : >> { %v796_v29 = vpack.c.bf16 %v789_v27, %v788_v23  ;;  %v797_v31 = vpack.c.bf16 %v791_v24, %v790_v28  ;;  %1569 = vrot.lane.b32.xlu2 %v4170_v2, %s5805_s14  ;;  %v3091_v23 = vor.u32 %v3526_v7, %v3090_v15  ;;  %v4768_v7 = vld [vmem:[#allocation2 + $0x38] sm:$0xff] }
 0x17b   : >> { %989 = vrot.lane.b32.xlu1 %v4176_v3, %s3993_s18  ;;  %v3554_v21 = vld [vmem:[#allocation4 + $0xec] sm:$0xf0] }
 0x17c   : >> { %800 = vst [vmem:[#allocation4 + $0x100] sm:$0xff] %v796_v29  ;;  %1565 = vrot.lane.b32.xlu0 %v4168_v1, %s5805_s14  ;;  %v4634_v9 = vpop.permute.xlu2 %1511  ;;  %v3203_v30 = vor.u32 %v3554_v21, %v3202_v32  ;;  %v3187_v1 = vor.u32 %v3550_v36, %v3186_v34  ;;  %v1117_v21 = vld [vmem:[#allocation7 + $0x27] ss:$8 sm:$0xf]  ;;  %s5809_s14 = smov 1  }
 0x17d   : >> { %801 = vst [vmem:[#allocation4 + $0x108] sm:$0xff] %v797_v31  ;;  %v4636_v33 = vpop.permute.xlu1 %806 }
 0x17e   : >> { %2288 = vmatpush.bf16.msra.mxu0 %v3203_v30  ;;  %v763_v35 = vpop.permute.xlu0 %762  ;;  %v1120_v30 = vperm.slane %v1117_v21, 1 }
 0x17f   : >> { %v770_v2 = vsel %vm768_vm8, %v763_v35, %v4569_v39  ;;  %v772_v3 = vsel %vm768_vm8, %v759_v58, %v763_v35  ;;  %v3123_v58 = vor.u32 %v3534_v57, %v3122_v55  ;;  %v1119_v35 = vperm.slane %v1117_v21, 0  ;;  %v1481_v55 = vld [vmem:[#allocation7 + $0x46] ss:$8 sm:$0xf] }
 0x180   : >> { %v794_v37 = vmul.f32 %v782_v63, %v772_v3  ;;  %v795_v38 = vmul.f32 %v783_v17, %v770_v2  ;;  %v1484_v59 = vperm.slane %v1481_v55, 1  ;;  %vm1159_vm8 = vcmp.lt.s32.totalorder %v4235_v19, 113 }
 0x182   : >> { %v799_v41 = vpack.c.bf16 %v795_v38, %v794_v37  ;;  %2289 = vmatpush.bf16.msra.mxu0 %v3187_v1  ;;  %991 = vrot.lane.b32.xlu2 %v4190_v13, %s3993_s18  ;;  %v3138_v13 = vld [vmem:[#allocation4 + $0x60] sm:$0xf] }
 0x183   : >> { %995 = vrot.lane.b32.xlu1 %v4186_v12, %s3993_s18  ;;  %v4659_v12 = vld [vmem:[#allocation2 + $0x8] sm:$0xff] }
 0x184   : >> { %803 = vst [vmem:[#allocation4 + $0x118] sm:$0xff] %v799_v41  ;;  %987 = vrot.lane.b32.xlu0 %v4194_v14, %s3993_s18  ;;  %v4649_v39 = vpop.permute.xlu2 %1517  ;;  %v3538_v14 = vld [vmem:[#allocation4 + $0x6c] sm:$0xf0] }
 0x185   : >> { %v4651_v42 = vpop.permute.xlu1 %812  ;;  %v3139_v52 = vor.u32 %v3538_v14, %v3138_v13 }
 0x186   : >> { %2290 = vmatpush.bf16.msra.mxu0 %v3171_v45  ;;  %v4653_v26 = vpop.permute.xlu0 %804 }
 0x18a   : >> { %2291 = vmatpush.bf16.msra.mxu0 %v3155_v47  ;;  %997 = vrot.lane.b32.xlu2 %v4655_v48, %s3993_s18 }
 0x18b   : >> { %1353 = vrot.lane.b32.xlu1 %v4659_v12, %s3994_s19 }
 0x18c   : >> { %993 = vrot.lane.b32.xlu0 %v4663_v49, %s3993_s18  ;;  %v1096_v50 = vpop.permute.xlu2 %1095 }
 0x18d   : >> { %v4667_v53 = vpop.permute.xlu1 %1509 }
 0x18e   : >> { %2292 = vmatpush.bf16.msra.mxu0 %v3139_v52  ;;  %v4669_v56 = vpop.permute.xlu0 %810 }
 0x192   : >> { %2293 = vmatpush.bf16.msra.mxu0 %v3123_v58  ;;  %1355 = vrot.lane.b32.xlu2 %v4671_v61, %s3994_s19  ;;  %v4749_v58 = vld [vmem:[#allocation2 + $0x10] sm:$0xff] }
 0x193   : >> { %1359 = vrot.lane.b32.xlu1 %v4675_v62, %s3994_s19 }
 0x194   : >> { %1351 = vrot.lane.b32.xlu0 %v4680_v8, %s3994_s19  ;;  %v4684_v51 = vpop.permute.xlu2 %1101 }
 0x195   : >> { %v4686_v11 = vpop.permute.xlu1 %1515 }
 0x196   : >> { %v1526_v17 = vsel %vm1523_vm9, %v4634_v9, %v4686_v11  ;;  %2294 = vmatpush.bf16.msra.mxu0 %v3107_v6  ;;  %v4692_v63 = vpop.permute.xlu0 %1507 }
 0x197   : >> { %v1544_v16 = vmul.f32 %v1536_v0, %v1526_v17  ;;  %v1528_v20 = vsel %vm1523_vm9, %v4692_v63, %v4634_v9 }
 0x198   : >> { %v1543_v22 = vmul.f32 %v1535_v10, %v1528_v20 }
 0x19a   : >> { %v1551_v24 = vpack.c.bf16 %v1544_v16, %v1543_v22  ;;  %2295 = vmatpush.bf16.msra.mxu0 %v3091_v23  ;;  %1361 = vrot.lane.b32.xlu2 %v4655_v48, %s3994_s19 }
 0x19b   : >> { %1301 = vrot.lane.b32.xlu1 %v4659_v12, %s5807_s30 }
 0x19c   : >> { %1555 = vst [vmem:[#allocation4 + $0x2e0] sm:$0xff] %v1551_v24  ;;  %1357 = vrot.lane.b32.xlu0 %v4663_v49, %s3994_s19  ;;  %v1460_v5 = vpop.permute.xlu2 %1459 }
 0x19d   : >> { %v4704_v25 = vpop.permute.xlu1 %1093 }
 0x19e   : >> { %v1514_v27 = vpop.permute.xlu0 %1513 }
 0x19f   : >> { %v1527_v28 = vsel %vm1523_vm9, %v1514_v27, %v4649_v39  ;;  %v1529_v29 = vsel %vm1523_vm9, %v4667_v53, %v1514_v27 }
 0x1a0   : >> { %v1547_v31 = vmul.f32 %v1535_v10, %v1529_v29  ;;  %v1548_v32 = vmul.f32 %v1536_v0, %v1527_v28  ;;  %v1483_v0 = vperm.slane %v1481_v55, 0 }
 0x1a2   : >> { %v1553_v9 = vpack.c.bf16 %v1548_v32, %v1547_v31  ;;  %1303 = vrot.lane.b32.xlu2 %v4671_v61, %s5807_s30 }
 0x1a3   : >> { %1307 = vrot.lane.b32.xlu1 %v4675_v62, %s5807_s30  ;;  %v3458_v41 = vld [vmem:[#allocation4 + $0x2e0] sm:$0xf] }
 0x1a4   : >> { %1557 = vst [vmem:[#allocation4 + $0x2f0] sm:$0xff] %v1553_v9  ;;  %1299 = vrot.lane.b32.xlu0 %v4680_v8, %s5807_s30  ;;  %v4719_v34 = vpop.permute.xlu2 %1465 }
 0x1a5   : >> { %5855 = vst [vmem:[#allocation17_spill] sm:$0xff] %v4719_v34  ;;  %v4721_v2 = vpop.permute.xlu1 %1099 }
 0x1a6   : >> { %v1110_v3 = vsel %vm1107_vm10, %v1096_v50, %v4721_v2  ;;  %v4726_v36 = vpop.permute.xlu0 %1091 }
 0x1a7   : >> { %v1128_v37 = vmul.f32 %v1120_v30, %v1110_v3  ;;  %v1112_v38 = vsel %vm1107_vm10, %v4726_v36, %v1096_v50  ;;  %v1065_v3 = vld [vmem:[#allocation7 + $0x26] ss:$8 sm:$0xf] }
 0x1a8   : >> { %v1127_v1 = vmul.f32 %v1119_v35, %v1112_v38  ;;  %v1068_v38 = vperm.slane %v1065_v3, 1 }
 0x1aa   : >> { %v1135_v40 = vpack.c.bf16 %v1128_v37, %v1127_v1  ;;  %1309 = vrot.lane.b32.xlu2 %v4655_v48, %s5807_s30 }
 0x1ab   : >> { %910 = vrot.lane.b32.xlu1 %v4659_v12, %s5809_s14  ;;  %v3618_v43 = vld [vmem:[#allocation4 + $0x2ec] sm:$0xf0] }
 0x1ac   : >> { %1139 = vst [vmem:[#allocation4 + $0x1e0] sm:$0xff] %v1135_v40  ;;  %1305 = vrot.lane.b32.xlu0 %v4663_v49, %s5807_s30  ;;  %v4737_v45 = vpop.permute.xlu2 %1043  ;;  %v3459_v44 = vor.u32 %v3618_v43, %v3458_v41  ;;  %s5811_s30 = smov 111   ;;  %v1067_v40 = vperm.slane %v1065_v3, 0 }
 0x1ad   : >> { %v4739_v46 = vpop.permute.xlu1 %1457 }
 0x1ae   : >> { %5856 = vst [vmem:[#allocation18_spill] sm:$0xff] %v4739_v46  ;;  %2326 = vmatpush.bf16.msra.mxu2 %v3459_v44  ;;  %v1098_v47 = vpop.permute.xlu0 %1097 }
 0x1af   : >> { %v1111_v13 = vsel %vm1107_vm10, %v1098_v47, %v4684_v51  ;;  %v1113_v14 = vsel %vm1107_vm10, %v4704_v25, %v1098_v47 }
 0x1b0   : >> { %v1131_v50 = vmul.f32 %v1119_v35, %v1113_v14  ;;  %v1132_v52 = vmul.f32 %v1120_v30, %v1111_v13 }
 0x1b2   : >> { %v1137_v57 = vpack.c.bf16 %v1132_v52, %v1131_v50  ;;  %912 = vrot.lane.b32.xlu2 %v4671_v61, %s5809_s14 }
 0x1b3   : >> { %920 = vrot.lane.b32.xlu1 %v4749_v58, %s5809_s14  ;;  %v3330_v22 = vld [vmem:[#allocation4 + $0x1e0] sm:$0xf]  ;;  %v3584_v24 = vld [vmem:[#allocation4 + $0x1e4] sm:$0xf] }
 0x1b4   : >> { %1141 = vst [vmem:[#allocation4 + $0x1f0] sm:$0xff] %v1137_v57  ;;  %908 = vrot.lane.b32.xlu0 %v4680_v8, %s5809_s14  ;;  %v4756_v60 = vpop.permute.xlu2 %1049 }
 0x1b5   : >> { %v4758_v4 = vpop.permute.xlu1 %1463 }
 0x1b6   : >> { %v1474_v6 = vsel %vm1471_vm11, %v1460_v5, %v4758_v4  ;;  %v4763_v10 = vpop.permute.xlu0 %1455 }
 0x1b7   : >> { %v1492_v15 = vmul.f32 %v1484_v59, %v1474_v6  ;;  %v1476_v17 = vsel %vm1471_vm11, %v4763_v10, %v1460_v5 }
 0x1b8   : >> { %v1491_v16 = vmul.f32 %v1483_v0, %v1476_v17 }
 0x1ba   : >> { %v1499_v20 = vpack.c.bf16 %v1492_v15, %v1491_v16  ;;  %922 = vrot.lane.b32.xlu2 %v4768_v7, %s5809_s14 }
 0x1bb   : >> { %1249 = vrot.lane.b32.xlu1 %v4659_v12, %s5811_s30  ;;  %v3586_v23 = vld [vmem:[#allocation4 + $0x1ec] sm:$0xf0]  ;;  %v3332_v27 = vld [vmem:[#allocation4 + $0x1f0] sm:$0xf0] }
 0x1bc   : >> { %1503 = vst [vmem:[#allocation4 + $0x2c0] sm:$0xff] %v1499_v20  ;;  %914 = vrot.lane.b32.xlu0 %v4663_v49, %s5809_s14  ;;  %v1408_v5 = vpop.permute.xlu2 %1407  ;;  %v3331_v28 = vor.u32 %v3586_v23, %v3330_v22  ;;  %v3335_v29 = vor.u32 %v3584_v24, %v3332_v27  ;;  %s3998_s14 = smov 2   ;;  %v1429_v20 = vld [vmem:[#allocation7 + $0x45] ss:$8 sm:$0xf] }
 0x1bd   : >> { %v4776_v31 = vpop.permute.xlu1 %1041  ;;  %v1432_v23 = vperm.slane %v1429_v20, 1  ;;  %v1431_v27 = vperm.slane %v1429_v20, 0 }
 0x1be   : >> { %2307 = vmatpush.bf16.msra.mxu1 %v3331_v28  ;;  %2383 = vmatpush.bf16.msrb.mxu0 %v3335_v29  ;;  %v1462_v32 = vpop.permute.xlu0 %1461 }
 0x1bf   : >> { %v1475_v21 = vsel %vm1471_vm11, %v1462_v32, %v4719_v34  ;;  %v1477_v9 = vsel %vm1471_vm11, %v4739_v46, %v1462_v32 }
 0x1c0   : >> { %v1495_v30 = vmul.f32 %v1483_v0, %v1477_v9  ;;  %v1496_v35 = vmul.f32 %v1484_v59, %v1475_v21 }
 0x1c2   : >> { %v1501_v37 = vpack.c.bf16 %v1496_v35, %v1495_v30  ;;  %1251 = vrot.lane.b32.xlu2 %v4671_v61, %s5811_s30 }
 0x1c3   : >> { %1255 = vrot.lane.b32.xlu1 %v4675_v62, %s5811_s30  ;;  %v3442_v52 = vld [vmem:[#allocation4 + $0x2c0] sm:$0xf] }
 0x1c4   : >> { %1505 = vst [vmem:[#allocation4 + $0x2d0] sm:$0xff] %v1501_v37  ;;  %1247 = vrot.lane.b32.xlu0 %v4680_v8, %s5811_s30  ;;  %v4791_v1 = vpop.permute.xlu2 %1413 }
 0x1c5   : >> { %5857 = vst [vmem:[#allocation19_spill] sm:$0xff] %v4791_v1  ;;  %v4793_v41 = vpop.permute.xlu1 %1047 }
 0x1c6   : >> { %v1058_v43 = vsel %vm1055_vm12, %v4737_v45, %v4793_v41  ;;  %v4799_v44 = vpop.permute.xlu0 %1039 }
 0x1c7   : >> { %v1076_v47 = vmul.f32 %v1068_v38, %v1058_v43  ;;  %v1060_v13 = vsel %vm1055_vm12, %v4799_v44, %v4737_v45 }
 0x1c8   : >> { %v1075_v14 = vmul.f32 %v1067_v40, %v1060_v13 }
 0x1ca   : >> { %v1083_v50 = vpack.c.bf16 %v1076_v47, %v1075_v14  ;;  %1257 = vrot.lane.b32.xlu2 %v4655_v48, %s5811_s30 }
 0x1cb   : >> { %858 = vrot.lane.b32.xlu1 %v4659_v12, %s3998_s14  ;;  %v3614_v55 = vld [vmem:[#allocation4 + $0x2cc] sm:$0xf0] }
 0x1cc   : >> { %1087 = vst [vmem:[#allocation4 + $0x1c0] sm:$0xff] %v1083_v50  ;;  %1253 = vrot.lane.b32.xlu0 %v4663_v49, %s5811_s30  ;;  %v1564_v57 = vpop.permute.xlu2 %1563  ;;  %v3443_v59 = vor.u32 %v3614_v55, %v3442_v52  ;;  %s5813_s30 = smov 112  }
 0x1cd   : >> { %v4811_v0 = vpop.permute.xlu1 %1405 }
 0x1ce   : >> { %5858 = vst [vmem:[#allocation20_spill] sm:$0xff] %v4811_v0  ;;  %2327 = vmatpush.bf16.msra.mxu2 %v3443_v59  ;;  %v1046_v45 = vpop.permute.xlu0 %1045 }
 0x1cf   : >> { %v1059_v6 = vsel %vm1055_vm12, %v1046_v45, %v4756_v60  ;;  %v1061_v15 = vsel %vm1055_vm12, %v4776_v31, %v1046_v45  ;;  %v1585_v45 = vld [vmem:[#allocation7 + $0x60] ss:$8 sm:$0xf] }
 0x1d0   : >> { %v1079_v17 = vmul.f32 %v1067_v40, %v1061_v15  ;;  %v1080_v16 = vmul.f32 %v1068_v38, %v1059_v6  ;;  %v1588_v15 = vperm.slane %v1585_v45, 1 }
 0x1d2   : >> { %v1085_v22 = vpack.c.bf16 %v1080_v16, %v1079_v17  ;;  %860 = vrot.lane.b32.xlu2 %v4671_v61, %s3998_s14  ;;  %v1587_v16 = vperm.slane %v1585_v45, 0 }
 0x1d3   : >> { %868 = vrot.lane.b32.xlu1 %v4749_v58, %s3998_s14  ;;  %v3314_v3 = vld [vmem:[#allocation4 + $0x1c0] sm:$0xf]  ;;  %v3580_v38 = vld [vmem:[#allocation4 + $0x1c4] sm:$0xf] }
 0x1d4   : >> { %1089 = vst [vmem:[#allocation4 + $0x1d0] sm:$0xff] %v1085_v22  ;;  %856 = vrot.lane.b32.xlu0 %v4680_v8, %s3998_s14  ;;  %v4826_v24 = vpop.permute.xlu2 %1569 }
 0x1d5   : >> { %5859 = vst [vmem:[#allocation21_spill] sm:$0xff] %v4826_v24  ;;  %v4828_v28 = vpop.permute.xlu1 %1411 }
 0x1d6   : >> { %5860 = vst [vmem:[#allocation22_spill] sm:$0xff] %v4828_v28  ;;  %v1422_v29 = vsel %vm1419_vm13, %v1408_v5, %v4828_v28  ;;  %v4833_v32 = vpop.permute.xlu0 %1403 }
 0x1d7   : >> { %5861 = vst [vmem:[#allocation23_spill] sm:$0xff] %v4833_v32  ;;  %v1440_v21 = vmul.f32 %v1432_v23, %v1422_v29  ;;  %v1424_v9 = vsel %vm1419_vm13, %v4833_v32, %v1408_v5 }
 0x1d8   : >> { %v1439_v30 = vmul.f32 %v1431_v27, %v1424_v9 }
 0x1da   : >> { %v1447_v35 = vpack.c.bf16 %v1440_v21, %v1439_v30  ;;  %870 = vrot.lane.b32.xlu2 %v4768_v7, %s3998_s14 }
 0x1db   : >> { %1197 = vrot.lane.b32.xlu1 %v4659_v12, %s5813_s30  ;;  %v3582_v37 = vld [vmem:[#allocation4 + $0x1cc] sm:$0xf0]  ;;  %v3316_v40 = vld [vmem:[#allocation4 + $0x1d0] sm:$0xf0] }
 0x1dc   : >> { %1451 = vst [vmem:[#allocation4 + $0x2a0] sm:$0xff] %v1447_v35  ;;  %862 = vrot.lane.b32.xlu0 %v4663_v49, %s3998_s14  ;;  %v992_v43 = vpop.permute.xlu2 %991  ;;  %v3315_v47 = vor.u32 %v3582_v37, %v3314_v3  ;;  %v3319_v5 = vor.u32 %v3580_v38, %v3316_v40 }
 0x1dd   : >> { %v4844_v13 = vpop.permute.xlu1 %1561 }
 0x1de   : >> { %5862 = vst [vmem:[#allocation24_spill] sm:$0xff] %v4844_v13  ;;  %2308 = vmatpush.bf16.msra.mxu1 %v3315_v47  ;;  %2384 = vmatpush.bf16.msrb.mxu0 %v3319_v5  ;;  %v1410_v14 = vpop.permute.xlu0 %1409 }
 0x1df   : >> { %v1423_v50 = vsel %vm1419_vm13, %v1410_v14, %v4791_v1  ;;  %v1425_v52 = vsel %vm1419_vm13, %v4811_v0, %v1410_v14  ;;  %v3532_v1 = vld [vmem:[#allocation4 + $0x44] sm:$0xf] }
 0x1e0   : >> { %v1443_v55 = vmul.f32 %v1431_v27, %v1425_v52  ;;  %v1444_v59 = vmul.f32 %v1432_v23, %v1423_v50  ;;  %v4887_v50 = vld [vmem:[#allocation7 + $0x25] ss:$8 sm:$0xf] }
 0x1e1   : >> { %v1015_v45 = vperm.slane %v4887_v50, 0 }
 0x1e2   : >> { %v1449_v6 = vpack.c.bf16 %v1444_v59, %v1443_v55  ;;  %1199 = vrot.lane.b32.xlu2 %v4671_v61, %s5813_s30  ;;  %v1016_v55 = vperm.slane %v4887_v50, 1 }
 0x1e3   : >> { %1203 = vrot.lane.b32.xlu1 %v4675_v62, %s5813_s30  ;;  %v3426_v30 = vld [vmem:[#allocation4 + $0x2a0] sm:$0xf] }
 0x1e4   : >> { %1453 = vst [vmem:[#allocation4 + $0x2b0] sm:$0xff] %v1449_v6  ;;  %1195 = vrot.lane.b32.xlu0 %v4680_v8, %s5813_s30  ;;  %v4859_v17 = vpop.permute.xlu2 %997 }
 0x1e5   : >> { %v4861_v20 = vpop.permute.xlu1 %1567 }
 0x1e6   : >> { %5863 = vst [vmem:[#allocation25_spill] sm:$0xff] %v4861_v20  ;;  %v1578_v22 = vsel %vm1575_vm14, %v1564_v57, %v4861_v20  ;;  %v4866_v23 = vpop.permute.xlu0 %1559 }
 0x1e7   : >> { %5864 = vst [vmem:[#allocation26_spill] sm:$0xff] %v4866_v23  ;;  %v1596_v27 = vmul.f32 %v1588_v15, %v1578_v22  ;;  %v1580_v29 = vsel %vm1575_vm14, %v4866_v23, %v1564_v57  ;;  %v3084_v23 = vld [vmem:[%s4138_s12 + $0x38] sm:$0xf0] }
 0x1e8   : >> { %v1595_v21 = vmul.f32 %v1587_v16, %v1580_v29 }
 0x1ea   : >> { %v1603_v9 = vpack.c.bf16 %v1596_v27, %v1595_v21  ;;  %1205 = vrot.lane.b32.xlu2 %v4655_v48, %s5813_s30 }
 0x1eb   : >> { %818 = vrot.lane.b32.xlu1 %v4768_v7, %s3986_s11  ;;  %v3610_v35 = vld [vmem:[#allocation4 + $0x2ac] sm:$0xf0] }
 0x1ec   : >> { %1607 = vst [vmem:[#allocation4 + $0x300] sm:$0xff] %v1603_v9  ;;  %1201 = vrot.lane.b32.xlu0 %v4663_v49, %s5813_s30  ;;  %v4877_v3 = vpop.permute.xlu2 %1355  ;;  %v3427_v37 = vor.u32 %v3610_v35, %v3426_v30  ;;  %s4000_s30 = smov 113   ;;  %v3204_v9 = vld [vmem:[#allocation4 + $0xf0] sm:$0xf0]  ;;  %v3517_v30 = vld [vmem:[%s4138_s12 + $0xc] sm:$0xf] }
 0x1ed   : >> { %v4879_v38 = vpop.permute.xlu1 %989  ;;  %v3068_v35 = vld [vmem:[%s4138_s12 + $0x18] sm:$0xf0] }
 0x1ee   : >> { %2328 = vmatpush.bf16.msra.mxu2 %v3427_v37  ;;  %v1566_v57 = vpop.permute.xlu0 %1565 }
 0x1ef   : >> { %v1579_v40 = vsel %vm1575_vm14, %v1566_v57, %v4826_v24  ;;  %v1581_v47 = vsel %vm1575_vm14, %v4844_v13, %v1566_v57  ;;  %v4930_v13 = vld [vmem:[#allocation7 + $0x44] ss:$8 sm:$0xf] }
 0x1f0   : >> { %v1599_v5 = vmul.f32 %v1587_v16, %v1581_v47  ;;  %v1600_v14 = vmul.f32 %v1588_v15, %v1579_v40  ;;  %v3552_v47 = vld [vmem:[#allocation4 + $0xe4] sm:$0xf]  ;;  %v3140_v24 = vld [vmem:[#allocation4 + $0x70] sm:$0xf0] }
 0x1f2   : >> { %v1605_v52 = vpack.c.bf16 %v1600_v14, %v1599_v5  ;;  %1143 = vrot.lane.b32.xlu2 %v4680_v8, %s4000_s30  ;;  %v3207_v14 = vor.u32 %v3552_v47, %v3204_v9  ;;  %v3172_v47 = vld [vmem:[#allocation4 + $0xb0] sm:$0xf0] }
 0x1f3   : >> { %1147 = vrot.lane.b32.xlu1 %v4671_v61, %s4000_s30  ;;  %v3474_v37 = vld [vmem:[#allocation4 + $0x300] sm:$0xf] }
 0x1f4   : >> { %1609 = vst [vmem:[#allocation4 + $0x310] sm:$0xff] %v1605_v52  ;;  %816 = vrot.lane.b32.xlu0 %v4749_v58, %s3986_s11  ;;  %v4897_v59 = vpop.permute.xlu2 %1361  ;;  %v4922_v52 = vor.u32 %v3517_v30, %v3068_v35  ;;  %v3544_v35 = vld [vmem:[#allocation4 + $0xa4] sm:$0xf]  ;;  %s5874_s11 = smov 1  }
 0x1f5   : >> { %5865 = vst [vmem:[#allocation27_spill] sm:$0xff] %v4897_v59  ;;  %v4900_v6 = vpop.permute.xlu1 %995 }
 0x1f6   : >> { %v1006_v15 = vsel %vm1003_vm15, %v992_v43, %v4900_v6  ;;  %v4905_v16 = vpop.permute.xlu0 %987  ;;  %5867 = vst [vmem:[#allocation29_spill] sm:$0xff] %v4922_v52 }
 0x1f7   : >> { %v1024_v22 = vmul.f32 %v1016_v55, %v1006_v15  ;;  %v1008_v27 = vsel %vm1003_vm15, %v4905_v16, %v992_v43 }
 0x1f8   : >> { %v1023_v29 = vmul.f32 %v1015_v45, %v1008_v27 }
 0x1fa   : >> { %v1031_v21 = vpack.c.bf16 %v1024_v22, %v1023_v29  ;;  %1149 = vrot.lane.b32.xlu2 %v4663_v49, %s4000_s30  ;;  %v3548_v22 = vld [vmem:[#allocation4 + $0xc4] sm:$0xf] }
 0x1fb   : >> { %1153 = vrot.lane.b32.xlu1 %v4655_v48, %s4000_s30  ;;  %v3622_v57 = vld [vmem:[#allocation4 + $0x30c] sm:$0xf0] }
 0x1fc   : >> { %1035 = vst [vmem:[#allocation4 + $0x1a0] sm:$0xff] %v1031_v21  ;;  %1145 = vrot.lane.b32.xlu0 %v4659_v12, %s4000_s30  ;;  %v4918_v40 = vpop.permute.xlu2 %1303  ;;  %v3475_v43 = vor.u32 %v3622_v57, %v3474_v37  ;;  %v3188_v57 = vld [vmem:[#allocation4 + $0xd0] sm:$0xf0] }
 0x1fd   : >> { %v4920_v5 = vpop.permute.xlu1 %1353  ;;  %v3191_v9 = vor.u32 %v3548_v22, %v3188_v57 }
 0x1fe   : >> { %5866 = vst [vmem:[#allocation28_spill] sm:$0xff] %v4920_v5  ;;  %2352 = vmatpush.bf16.msra.mxu3 %v3475_v43  ;;  %v994_v15 = vpop.permute.xlu0 %993  ;;  %v1379_v43 = vperm.slane %v4930_v13, 0 }
 0x1ff   : >> { %v1007_v27 = vsel %vm1003_vm15, %v994_v15, %v4859_v17  ;;  %v1009_v29 = vsel %vm1003_vm15, %v4879_v38, %v994_v15  ;;  %v3175_v15 = vor.u32 %v3544_v35, %v3172_v47 }
 0x200   : >> { %v1027_v21 = vmul.f32 %v1015_v45, %v1009_v29  ;;  %v1028_v37 = vmul.f32 %v1016_v55, %v1007_v27  ;;  %v1380_v55 = vperm.slane %v4930_v13, 1  ;;  %v3156_v29 = vld [vmem:[#allocation4 + $0x90] sm:$0xf0] }
 0x201   : >> { %3488 = vmatmul.msk.bf16.vlgmr.msra.gmra.mxu3 %vm2281_vm0, %v4922_v52  ;;  %v3521_v52 = vld [vmem:[%s4138_s12 + $0x2c] sm:$0xf] }
 0x202   : >> { %2364 = vmatpush.bf16.msrb.mxu3 %v3207_v14  ;;  %v1033_v30 = vpack.c.bf16 %v1028_v37, %v1027_v21  ;;  %1103 = vrot.lane.b32.xlu2 %v4749_v58, %s3988_s6  ;;  %v4971_v46 = vor.u32 %v3521_v52, %v3084_v23 }
 0x203   : >> { %1519 = vrot.lane.b32.xlu1 %v4749_v58, %s3987_s7  ;;  %v3298_v47 = vld [vmem:[#allocation4 + $0x1a0] sm:$0xf]  ;;  %v3576_v32 = vld [vmem:[#allocation4 + $0x1a4] sm:$0xf] }
 0x204   : >> { %1037 = vst [vmem:[#allocation4 + $0x1b0] sm:$0xff] %v1033_v30  ;;  %1151 = vrot.lane.b32.xlu0 %v4675_v62, %s4000_s30  ;;  %v4942_v45 = vpop.permute.xlu2 %1309  ;;  %v3536_v30 = vld [vmem:[#allocation4 + $0x64] sm:$0xf] }
 0x205   : >> { %5868 = vst [vmem:[#allocation30_spill] sm:$0xff] %v4942_v45  ;;  %v4945_v14 = vpop.permute.xlu1 %1359 }
 0x206   : >> { %2365 = vmatpush.bf16.msrb.mxu3 %v3191_v9  ;;  %v1370_v22 = vsel %vm1367_vm1, %v4877_v3, %v4945_v14  ;;  %v4951_v27 = vpop.permute.xlu0 %1351  ;;  %v3540_v9 = vld [vmem:[#allocation4 + $0x84] sm:$0xf]  ;;  %5870 = vst [vmem:[#allocation32_spill] sm:$0xff] %v4971_v46 }
 0x207   : >> { %v1388_v21 = vmul.f32 %v1380_v55, %v1370_v22  ;;  %v1372_v37 = vsel %vm1367_vm1, %v4951_v27, %v4877_v3  ;;  %v3159_v35 = vor.u32 %v3540_v9, %v3156_v29  ;;  %v4961_v22 = vld [vmem:[#allocation7 + $0x24] ss:$8 sm:$0xf] }
 0x208   : >> { %v1387_v57 = vmul.f32 %v1379_v43, %v1372_v37  ;;  %v3143_v37 = vor.u32 %v3536_v30, %v3140_v24  ;;  %v963_v28 = vperm.slane %v4961_v22, 0  ;;  %v964_v29 = vperm.slane %v4961_v22, 1 }
 0x20a   : >> { %2366 = vmatpush.bf16.msrb.mxu3 %v3175_v15  ;;  %v1395_v20 = vpack.c.bf16 %v1388_v21, %v1387_v57  ;;  %1521 = vrot.lane.b32.xlu2 %v4768_v7, %s3987_s7  ;;  %v971_v34 = vmul.f32 %v4680_v8, %v963_v28  ;;  %v972_v24 = vmul.f32 %v4671_v61, %v964_v29  ;;  %s5877_s7 = smov 110  }
 0x20b   : >> { %1053 = vrot.lane.b32.xlu1 %v4768_v7, %s3990_s9  ;;  %v3578_v3 = vld [vmem:[#allocation4 + $0x1ac] sm:$0xf0]  ;;  %v3300_v15 = vld [vmem:[#allocation4 + $0x1b0] sm:$0xf0]  ;;  %v975_v30 = vmul.f32 %v4659_v12, %v963_v28  ;;  %v976_v0 = vmul.f32 %v4663_v49, %v964_v29 }
 0x20c   : >> { %1399 = vst [vmem:[#allocation4 + $0x280] sm:$0xff] %v1395_v20  ;;  %1105 = vrot.lane.b32.xlu0 %v4768_v7, %s3988_s6  ;;  %v4969_v21 = vpop.permute.xlu2 %912  ;;  %v3299_v57 = vor.u32 %v3578_v3, %v3298_v47  ;;  %v3303_v9 = vor.u32 %v3576_v32, %v3300_v15  ;;  %v979_v8 = vpack.c.bf16 %v972_v24, %v971_v34  ;;  %v3124_v12 = vld [vmem:[#allocation4 + $0x50] sm:$0xf0]  ;;  %v4985_v28 = vld [vmem:[#allocation7 + $0x43] ss:$8 sm:$0xf] }
 0x20d   : >> { %5869 = vst [vmem:[#allocation31_spill] sm:$0xff] %v4969_v21  ;;  %v981_v52 = vpack.c.bf16 %v976_v0, %v975_v30  ;;  %v3127_v49 = vor.u32 %v3532_v1, %v3124_v12  ;;  %v3108_v15 = vld [vmem:[#allocation4 + $0x30] sm:$0xf0]  ;;  %v1328_v34 = vperm.slane %v4985_v28, 1  ;;  %v1327_v0 = vperm.slane %v4985_v28, 0  ;;  %s5880_s6 = smov 111  }
 0x20e   : >> { %2367 = vmatpush.bf16.msrb.mxu3 %v3159_v35  ;;  %v4973_v35 = vpop.permute.xlu1 %1301  ;;  %2309 = vmatpush.bf16.msra.mxu1 %v3299_v57  ;;  %v1358_v20 = vpop.permute.xlu0 %1357  ;;  %983 = vst [vmem:[#allocation4 + $0x180] sm:$0xff] %v979_v8  ;;  %v3555_v24 = vld [vmem:[#allocation4 + $0xf4] sm:$0xf0]  ;;  %v3518_v8 = vld [vmem:[%s4138_s12 + $0xc] sm:$0xf0] }
 0x20f   : >> { %5871 = vst [vmem:[#allocation33_spill] sm:$0xff] %v4973_v35  ;;  %2385 = vmatpush.bf16.msrb.mxu0 %v3303_v9  ;;  %v1371_v32 = vsel %vm1367_vm1, %v1358_v20, %v4897_v59  ;;  %v1373_v23 = vsel %vm1367_vm1, %v4920_v5, %v1358_v20  ;;  %v3524_v9 = vld [vmem:[#allocation4 + $0x4] sm:$0xf] }
 0x210   : >> { %v1391_v61 = vmul.f32 %v1379_v43, %v1373_v23  ;;  %v1392_v47 = vmul.f32 %v1380_v55, %v1371_v32  ;;  %985 = vst [vmem:[#allocation4 + $0x190] sm:$0xff] %v981_v52  ;;  %v3528_v55 = vld [vmem:[#allocation4 + $0x24] sm:$0xf]  ;;  %v3092_v32 = vld [vmem:[#allocation4 + $0x10] sm:$0xf0] }
 0x211   : >> { %3489 = vmatmul.msk.bf16.gmra.mxu3 %vm2281_vm0, %v4971_v46  ;;  %v3058_v23 = vld [vmem:[%s4138_s12] sm:$0xf] }
 0x212   : >> { %2368 = vmatpush.bf16.msrb.mxu3 %v3143_v37  ;;  %v1397_v3 = vpack.c.bf16 %v1392_v47, %v1391_v61  ;;  %1467 = vrot.lane.b32.xlu2 %v4749_v58, %s3989_s8  ;;  %v3111_v37 = vor.u32 %v3528_v55, %v3108_v15  ;;  %v3210_v61 = vld [vmem:[#allocation4 + $0xe8] sm:$0xf]  ;;  %v5014_v47 = vor.u32 %v3518_v8, %v3058_v23 }
 0x213   : >> { %999 = vrot.lane.b32.xlu1 %v4749_v58, %s3993_s18  ;;  %v3194_v23 = vld [vmem:[#allocation4 + $0xc8] sm:$0xf] }
 0x214   : >> { %1401 = vst [vmem:[#allocation4 + $0x290] sm:$0xff] %v1397_v3  ;;  %1051 = vrot.lane.b32.xlu0 %v4749_v58, %s3990_s9  ;;  %v4997_v1 = vpop.permute.xlu2 %922  ;;  %v3211_v3 = vor.u32 %v3555_v24, %v3210_v61  ;;  %2296 = vmatmul.bf16.vlgmr.msra.gmra.mxu0 %v5014_v47  ;;  %s5885_s9 = smov 94  }
 0x215   : >> { %v3282_v12 = vld [vmem:[#allocation4 + $0x180] sm:$0xf]  ;;  %v3572_v28 = vld [vmem:[#allocation4 + $0x184] sm:$0xf] }
 0x216   : >> { %2369 = vmatpush.bf16.msrb.mxu3 %v3127_v49  ;;  %v5000_v43 = vpop.permute.xlu1 %1307  ;;  %v5006_v57 = vpop.permute.xlu0 %1299  ;;  %v3095_v49 = vor.u32 %v3524_v9, %v3092_v32  ;;  %v3551_v32 = vld [vmem:[#allocation4 + $0xd4] sm:$0xf0] }
 0x217   : >> { %5872 = vst [vmem:[#allocation34_spill] sm:$0xff] %v5000_v43  ;;  %v1318_v29 = vsel %vm1315_vm2, %v4918_v40, %v5000_v43  ;;  %v1320_v20 = vsel %vm1315_vm2, %v5006_v57, %v4918_v40  ;;  %v3574_v15 = vld [vmem:[#allocation4 + $0x18c] sm:$0xf0]  ;;  %v3284_v55 = vld [vmem:[#allocation4 + $0x190] sm:$0xf0] }
 0x218   : >> { %5873 = vst [vmem:[#allocation35_spill] sm:$0xff] %v5006_v57  ;;  %v1336_v30 = vmul.f32 %v1328_v34, %v1318_v29  ;;  %v1335_v52 = vmul.f32 %v1327_v0, %v1320_v20  ;;  %v3283_v46 = vor.u32 %v3574_v15, %v3282_v12  ;;  %v3287_v40 = vor.u32 %v3572_v28, %v3284_v55  ;;  %v3547_v28 = vld [vmem:[#allocation4 + $0xb4] sm:$0xf0]  ;;  %v3178_v55 = vld [vmem:[#allocation4 + $0xa8] sm:$0xf] }
 0x219   : >> { %v5031_v15 = vld [vmem:[#allocation7 + $0x23] ss:$8 sm:$0xf] }
 0x21a   : >> { %2370 = vmatpush.bf16.msrb.mxu3 %v3111_v37  ;;  %v1343_v29 = vpack.c.bf16 %v1336_v30, %v1335_v52  ;;  %1001 = vrot.lane.b32.xlu2 %v4768_v7, %s3993_s18  ;;  %v3410_v37 = vld [vmem:[#allocation4 + $0x280] sm:$0xf]  ;;  %v3195_v52 = vor.u32 %v3551_v32, %v3194_v23  ;;  %v3162_v23 = vld [vmem:[#allocation4 + $0x88] sm:$0xf] }
 0x21b   : >> { %1417 = vrot.lane.b32.xlu1 %v4768_v7, %s3991_s13  ;;  %v3606_v20 = vld [vmem:[#allocation4 + $0x28c] sm:$0xf0]  ;;  %2310 = vmatpush.bf16.msra.mxu1 %v3283_v46 }
 0x21c   : >> { %1347 = vst [vmem:[#allocation4 + $0x260] sm:$0xff] %v1343_v29  ;;  %1469 = vrot.lane.b32.xlu0 %v4768_v7, %s3989_s8  ;;  %v5023_v9 = vpop.permute.xlu2 %1251  ;;  %v3411_v24 = vor.u32 %v3606_v20, %v3410_v37  ;;  %2386 = vmatpush.bf16.msrb.mxu0 %v3287_v40  ;;  %v3179_v29 = vor.u32 %v3547_v28, %v3178_v55  ;;  %v3543_v40 = vld [vmem:[#allocation4 + $0x94] sm:$0xf0]  ;;  %v937_v37 = vperm.slane %v5031_v15, 1  ;;  %s5884_s8 = smov 112  }
 0x21d   : >> { %v3163_v32 = vor.u32 %v3543_v40, %v3162_v23  ;;  %v3535_v40 = vld [vmem:[#allocation4 + $0x54] sm:$0xf0] }
 0x21e   : >> { %2371 = vmatpush.bf16.msrb.mxu3 %v3095_v49  ;;  %v911_v30 = vpop.permute.xlu1 %910  ;;  %2329 = vmatpush.bf16.msra.mxu2 %v3411_v24  ;;  %v1306_v8 = vpop.permute.xlu0 %1305 }
 0x21f   : >> { %v1319_v61 = vsel %vm1315_vm2, %v1306_v8, %v4942_v45  ;;  %v1321_v12 = vsel %vm1315_vm2, %v4973_v35, %v1306_v8 }
 0x220   : >> { %v1339_v49 = vmul.f32 %v1327_v0, %v1321_v12  ;;  %v936_v0 = vperm.slane %v5031_v15, 0 }
 0x221   : >> { %2372 = vmatmul.bf16.vlgmr.msrb.gmra.mxu3 %v5014_v47 }
 0x222   : >> { %2440 = vmatpush.bf16.msra.mxu3 %v3211_v3  ;;  %v1340_v3 = vmul.f32 %v1328_v34, %v1319_v61  ;;  %1363 = vrot.lane.b32.xlu2 %v4749_v58, %s3994_s19  ;;  %v3146_v61 = vld [vmem:[#allocation4 + $0x68] sm:$0xf] }
 0x223   : >> { %916 = vrot.lane.b32.xlu1 %v4675_v62, %s5874_s11 }
 0x224   : >> { %v1345_v46 = vpack.c.bf16 %v1340_v3, %v1339_v49  ;;  %1415 = vrot.lane.b32.xlu0 %v4749_v58, %s3991_s13  ;;  %v5042_v34 = vpop.permute.xlu2 %1257  ;;  %v3539_v49 = vld [vmem:[#allocation4 + $0x74] sm:$0xf0] }
 0x225   : >> { %5875 = vst [vmem:[#allocation36_spill] sm:$0xff] %v5042_v34  ;;  %v3147_v55 = vor.u32 %v3539_v49, %v3146_v61  ;;  %v3531_v49 = vld [vmem:[#allocation4 + $0x34] sm:$0xf0] }
 0x226   : >> { %2441 = vmatpush.bf16.msra.mxu3 %v3195_v52  ;;  %1349 = vst [vmem:[#allocation4 + $0x270] sm:$0xff] %v1345_v46  ;;  %v5045_v20 = vpop.permute.xlu1 %920  ;;  %v909_v24 = vpop.permute.xlu0 %908  ;;  %v3394_v46 = vld [vmem:[#allocation4 + $0x260] sm:$0xf] }
 0x227   : >> { %5876 = vst [vmem:[#allocation37_spill] sm:$0xff] %v5045_v20  ;;  %v929_v8 = vsel %vm924_vm3, %v909_v24, %v4969_v21  ;;  %v931_v52 = vsel %vm924_vm3, %v5045_v20, %v909_v24 }
 0x228   : >> { %v944_v12 = vmul.f32 %v936_v0, %v931_v52  ;;  %v945_v28 = vmul.f32 %v937_v37, %v929_v8  ;;  %v3130_v52 = vld [vmem:[#allocation4 + $0x48] sm:$0xf] }
 0x22a   : >> { %2442 = vmatpush.bf16.msra.mxu3 %v3179_v29  ;;  %v952_v3 = vpack.c.bf16 %v945_v28, %v944_v12  ;;  %918 = vrot.lane.b32.xlu2 %v4655_v48, %s5874_s11  ;;  %v3131_v12 = vor.u32 %v3535_v40, %v3130_v52 }
 0x22b   : >> { %1313 = vrot.lane.b32.xlu1 %v4768_v7, %s5877_s7 }
 0x22c   : >> { %956 = vst [vmem:[#allocation4 + $0x160] sm:$0xff] %v952_v3  ;;  %1365 = vrot.lane.b32.xlu0 %v4768_v7, %s3994_s19  ;;  %v5059_v23 = vpop.permute.xlu2 %860 }
 0x22d   : >> { %v3602_v29 = vld [vmem:[#allocation4 + $0x26c] sm:$0xf0] }
 0x22e   : >> { %2443 = vmatpush.bf16.msra.mxu3 %v3163_v32  ;;  %v3395_v24 = vor.u32 %v3602_v29, %v3394_v46  ;;  %v932_v32 = vsel %vm924_vm3, %v4997_v1, %v911_v30  ;;  %v5064_v8 = vpop.permute.xlu1 %1249  ;;  %v5066_v61 = vpop.permute.xlu0 %914  ;;  %v5071_v46 = vld [vmem:[#allocation7 + $0x42] ss:$8 sm:$0xf] }
 0x22f   : >> { %5878 = vst [vmem:[#allocation38_spill] sm:$0xff] %v5064_v8  ;;  %v930_v28 = vsel %vm924_vm3, %v911_v30, %v5066_v61  ;;  %v948_v3 = vmul.f32 %v936_v0, %v932_v32  ;;  %v3114_v29 = vld [vmem:[#allocation4 + $0x28] sm:$0xf]  ;;  %v1276_v40 = vperm.slane %v5071_v46, 1  ;;  %v3527_v32 = vld [vmem:[#allocation4 + $0x14] sm:$0xf0] }
 0x230   : >> { %2330 = vmatpush.bf16.msra.mxu2 %v3395_v24  ;;  %5879 = vst [vmem:[#allocation39_spill] sm:$0xff] %v5071_v46  ;;  %v3115_v43 = vor.u32 %v3531_v49, %v3114_v29  ;;  %v3098_v30 = vld [vmem:[#allocation4 + $0x8] sm:$0xf]  ;;  %v3212_v24 = vld [vmem:[#allocation4 + $0xf8] sm:$0xf0] }
 0x231   : >> { %v3549_v29 = vld [vmem:[#allocation4 + $0xcc] sm:$0xf] }
 0x232   : >> { %2444 = vmatpush.bf16.msra.mxu3 %v3147_v55  ;;  %v949_v55 = vmul.f32 %v937_v37, %v930_v28  ;;  %864 = vrot.lane.b32.xlu2 %v4675_v62, %s3998_s14  ;;  %v1275_v37 = vperm.slane %v5071_v46, 0  ;;  %v3553_v28 = vld [vmem:[#allocation4 + $0xec] sm:$0xf] }
 0x233   : >> { %1259 = vrot.lane.b32.xlu1 %v4749_v58, %s5880_s6  ;;  %v3266_v59 = vld [vmem:[#allocation4 + $0x160] sm:$0xf] }
 0x234   : >> { %v954_v57 = vpack.c.bf16 %v949_v55, %v948_v3  ;;  %1311 = vrot.lane.b32.xlu0 %v4749_v58, %s5877_s7  ;;  %v5081_v0 = vpop.permute.xlu2 %870  ;;  %v3215_v3 = vor.u32 %v3553_v28, %v3212_v24  ;;  %v3180_v28 = vld [vmem:[#allocation4 + $0xb8] sm:$0xf0] }
 0x235   : >> { %5881 = vst [vmem:[#allocation40_spill] sm:$0xff] %v5081_v0 }
 0x236   : >> { %2445 = vmatpush.bf16.msra.mxu3 %v3131_v12  ;;  %958 = vst [vmem:[#allocation4 + $0x170] sm:$0xff] %v954_v57  ;;  %v5084_v62 = vpop.permute.xlu1 %1255  ;;  %v5090_v12 = vpop.permute.xlu0 %1247  ;;  %v3099_v57 = vor.u32 %v3527_v32, %v3098_v30 }
 0x237   : >> { %5882 = vst [vmem:[#allocation41_spill] sm:$0xff] %v5084_v62  ;;  %v1266_v52 = vsel %vm1263_vm4, %v5023_v9, %v5084_v62  ;;  %v3196_v62 = vld [vmem:[#allocation4 + $0xd8] sm:$0xf0] }
 0x238   : >> { %5883 = vst [vmem:[#allocation42_spill] sm:$0xff] %v5090_v12  ;;  %v1284_v49 = vmul.f32 %v1276_v40, %v1266_v52  ;;  %v3199_v30 = vor.u32 %v3549_v29, %v3196_v62  ;;  %v3568_v52 = vld [vmem:[#allocation4 + $0x164] sm:$0xf] }
 0x23a   : >> { %2446 = vmatpush.bf16.msra.mxu3 %v3115_v43  ;;  %v1268_v43 = vsel %vm1263_vm4, %v5090_v12, %v5023_v9  ;;  %1261 = vrot.lane.b32.xlu2 %v4768_v7, %s5880_s6 }
 0x23b   : >> { %v1283_v55 = vmul.f32 %v1275_v37, %v1268_v43  ;;  %1209 = vrot.lane.b32.xlu1 %v4768_v7, %s5884_s8 }
 0x23c   : >> { %866 = vrot.lane.b32.xlu0 %v4655_v48, %s3998_s14  ;;  %v5102_v9 = vpop.permute.xlu2 %1199 }
 0x23d   : >> { %v1291_v5 = vpack.c.bf16 %v1284_v49, %v1283_v55  ;;  %v3570_v32 = vld [vmem:[#allocation4 + $0x16c] sm:$0xf0]  ;;  %v3268_v35 = vld [vmem:[#allocation4 + $0x170] sm:$0xf0] }
 0x23e   : >> { %2447 = vmatpush.bf16.msra.mxu3 %v3099_v57  ;;  %v3267_v24 = vor.u32 %v3570_v32, %v3266_v59  ;;  %v3271_v57 = vor.u32 %v3568_v52, %v3268_v35  ;;  %v859_v49 = vpop.permute.xlu1 %858  ;;  %v1254_v43 = vpop.permute.xlu0 %1253  ;;  %v3164_v59 = vld [vmem:[#allocation4 + $0x98] sm:$0xf0]  ;;  %v5110_v35 = vld [vmem:[#allocation7 + $0x22] ss:$8 sm:$0xf] }
 0x23f   : >> { %1295 = vst [vmem:[#allocation4 + $0x240] sm:$0xff] %v1291_v5  ;;  %v1267_v62 = vsel %vm1263_vm4, %v1254_v43, %v5042_v34  ;;  %v1269_v5 = vsel %vm1263_vm4, %v5064_v8, %v1254_v43  ;;  %v3541_v32 = vld [vmem:[#allocation4 + $0x8c] sm:$0xf] }
 0x240   : >> { %2311 = vmatpush.bf16.msra.mxu1 %v3267_v24  ;;  %2387 = vmatpush.bf16.msrb.mxu0 %v3271_v57  ;;  %v1287_v55 = vmul.f32 %v1275_v37, %v1269_v5  ;;  %v1288_v29 = vmul.f32 %v1276_v40, %v1267_v62  ;;  %v3167_v52 = vor.u32 %v3541_v32, %v3164_v59  ;;  %v884_v24 = vperm.slane %v5110_v35, 0  ;;  %v3537_v57 = vld [vmem:[#allocation4 + $0x6c] sm:$0xf] }
 0x241   : >> { %v885_v37 = vperm.slane %v5110_v35, 1 }
 0x242   : >> { %2516 = vmatpush.bf16.msrb.mxu3 %v3215_v3  ;;  %v3545_v3 = vld [vmem:[#allocation4 + $0xac] sm:$0xf]  ;;  %1571 = vrot.lane.b32.xlu2 %v4749_v58, %s5885_s9 }
 0x243   : >> { %v3183_v48 = vor.u32 %v3545_v3, %v3180_v28  ;;  %1155 = vrot.lane.b32.xlu1 %v4749_v58, %s4000_s30  ;;  %v3148_v3 = vld [vmem:[#allocation4 + $0x78] sm:$0xf0] }
 0x244   : >> { %1207 = vrot.lane.b32.xlu0 %v4749_v58, %s5884_s8  ;;  %v5120_v40 = vpop.permute.xlu2 %1205 }
 0x245   : >> { %5886 = vst [vmem:[#allocation43_spill] sm:$0xff] %v5120_v40 }
 0x246   : >> { %2517 = vmatpush.bf16.msrb.mxu3 %v3199_v30  ;;  %v1293_v30 = vpack.c.bf16 %v1288_v29, %v1287_v55  ;;  %v5123_v28 = vpop.permute.xlu1 %868  ;;  %v857_v43 = vpop.permute.xlu0 %856  ;;  %v3132_v29 = vld [vmem:[#allocation4 + $0x58] sm:$0xf0] }
 0x247   : >> { %v877_v62 = vsel %vm872_vm5, %v857_v43, %v5059_v23  ;;  %v879_v5 = vsel %vm872_vm5, %v5123_v28, %v857_v43 }
 0x248   : >> { %1297 = vst [vmem:[#allocation4 + $0x250] sm:$0xff] %v1293_v30  ;;  %v892_v58 = vmul.f32 %v884_v24, %v879_v5  ;;  %v893_v55 = vmul.f32 %v885_v37, %v877_v62  ;;  %v3533_v30 = vld [vmem:[#allocation4 + $0x4c] sm:$0xf] }
 0x249   : >> { %v3135_v32 = vor.u32 %v3533_v30, %v3132_v29 }
 0x24a   : >> { %2518 = vmatpush.bf16.msrb.mxu3 %v3183_v48  ;;  %v3151_v48 = vor.u32 %v3537_v57, %v3148_v3  ;;  %v900_v59 = vpack.c.bf16 %v893_v55, %v892_v58  ;;  %1157 = vrot.lane.b32.xlu2 %v4768_v7, %s4000_s30  ;;  %v3116_v57 = vld [vmem:[#allocation4 + $0x38] sm:$0xf0]  ;;  %v880_v3 = vsel %vm872_vm5, %v5081_v0, %v859_v49 }
 0x24b   : >> { %v896_v55 = vmul.f32 %v884_v24, %v880_v3  ;;  %v5156_v24 = vld [vmem:[#allocation7 + $0x21] ss:$8 sm:$0xf] }
 0x24c   : >> { %904 = vst [vmem:[#allocation4 + $0x140] sm:$0xff] %v900_v59  ;;  %1573 = vrot.lane.b32.xlu0 %v4768_v7, %s5885_s9  ;;  %v5135_v45 = vpop.permute.xlu2 %1143  ;;  %v5147_v59 = vld [vmem:[#allocation7 + $0x41] ss:$8 sm:$0xf] }
 0x24d   : >> { %5888 = vst [vmem:[#allocation45_spill] sm:$0xff] %v5147_v59  ;;  %v1223_v21 = vperm.slane %v5147_v59, 0 }
 0x24e   : >> { %2519 = vmatpush.bf16.msrb.mxu3 %v3167_v52  ;;  %v3378_v52 = vld [vmem:[#allocation4 + $0x240] sm:$0xf]  ;;  %v5140_v62 = vpop.permute.xlu1 %1197  ;;  %v5142_v5 = vpop.permute.xlu0 %862 }
 0x24f   : >> { %v3598_v12 = vld [vmem:[#allocation4 + $0x24c] sm:$0xf0]  ;;  %5887 = vst [vmem:[#allocation44_spill] sm:$0xff] %v5142_v5  ;;  %v878_v58 = vsel %vm872_vm5, %v859_v49, %v5142_v5 }
 0x250   : >> { %v3379_v43 = vor.u32 %v3598_v12, %v3378_v52  ;;  %v897_v29 = vmul.f32 %v885_v37, %v878_v58  ;;  %v3525_v12 = vld [vmem:[#allocation4 + $0xc] sm:$0xf]  ;;  %v3100_v52 = vld [vmem:[#allocation4 + $0x18] sm:$0xf0]  ;;  %v834_v58 = vperm.slane %v5156_v24, 2 }
 0x252   : >> { %2520 = vmatpush.bf16.msrb.mxu3 %v3151_v48  ;;  %2331 = vmatpush.bf16.msra.mxu2 %v3379_v43  ;;  %v3529_v48 = vld [vmem:[#allocation4 + $0x2c] sm:$0xf]  ;;  %v902_v30 = vpack.c.bf16 %v897_v29, %v896_v55  ;;  %v1224_v43 = vperm.slane %v5147_v59, 1  ;;  %v824_v29 = vsel %vm820_vm7, %v4669_v56, %v4617_v18 }
 0x253   : >> { %v3119_v7 = vor.u32 %v3529_v48, %v3116_v57  ;;  %v3250_v55 = vld [vmem:[#allocation4 + $0x140] sm:$0xf]  ;;  %v846_v8 = vmul.f32 %v834_v58, %v824_v29 }
 0x254   : >> { %906 = vst [vmem:[#allocation4 + $0x150] sm:$0xff] %v902_v30  ;;  %v5151_v0 = vpop.permute.xlu2 %1149  ;;  %v832_v30 = vperm.slane %v5156_v24, 0 }
 0x256   : >> { %2521 = vmatpush.bf16.msrb.mxu3 %v3135_v32  ;;  %v3103_v32 = vor.u32 %v3525_v12, %v3100_v52  ;;  %v5154_v49 = vpop.permute.xlu1 %1203  ;;  %v5162_v57 = vpop.permute.xlu0 %1195  ;;  %v826_v12 = vsel %vm820_vm7, %v4636_v33, %v4669_v56  ;;  %v835_v52 = vperm.slane %v5156_v24, 3 }
 0x257   : >> { %5889 = vst [vmem:[#allocation46_spill] sm:$0xff] %v5154_v49  ;;  %v1214_v37 = vsel %vm1211_vm6, %v5102_v9, %v5154_v49  ;;  %v1216_v48 = vsel %vm1211_vm6, %v5162_v57, %v5102_v9  ;;  %v3564_v49 = vld [vmem:[#allocation4 + $0x144] sm:$0xf] }
 0x258   : >> { %5890 = vst [vmem:[#allocation47_spill] sm:$0xff] %v5162_v57  ;;  %v1232_v3 = vmul.f32 %v1224_v43, %v1214_v37 }
 0x25a   : >> { %2522 = vmatpush.bf16.msrb.mxu3 %v3119_v7  ;;  %v1231_v7 = vmul.f32 %v1223_v21, %v1216_v48 }
 0x25b   : >> { %v3566_v57 = vld [vmem:[#allocation4 + $0x14c] sm:$0xf0]  ;;  %v3252_v5 = vld [vmem:[#allocation4 + $0x150] sm:$0xf0] }
 0x25c   : >> { %v1239_v9 = vpack.c.bf16 %v1232_v3, %v1231_v7  ;;  %v1104_v59 = vpop.permute.xlu2 %1103  ;;  %v3251_v56 = vor.u32 %v3566_v57, %v3250_v55  ;;  %v3255_v20 = vor.u32 %v3564_v49, %v3252_v5  ;;  %v5891_v3 = vperm.slane %v5156_v24, 1 }
 0x25d   : >> { %v1108_v37 = vsel %vm1107_vm10, %v4721_v2, %v1104_v59  ;;  %v1114_v48 = vsel %vm1107_vm10, %v1104_v59, %v4726_v36  ;;  %v3074_v2 = vld [vmem:[%s4138_s12 + $0x20] sm:$0xf] }
 0x25e   : >> { %2523 = vmatpush.bf16.msrb.mxu3 %v3103_v32  ;;  %v5181_v32 = vld [vmem:[#allocation7 + $0x27] ss:$8 sm:$0xf]  ;;  %1243 = vst [vmem:[#allocation4 + $0x220] sm:$0xff] %v1239_v9  ;;  %v845_v7 = vmul.f32 %v5891_v3, %v826_v12  ;;  %v819_v34 = vpop.permute.xlu1 %818  ;;  %v1202_v12 = vpop.permute.xlu0 %1201  ;;  %2312 = vmatpush.bf16.msra.mxu1 %v3251_v56  ;;  %v3522_v3 = vld [vmem:[%s4138_s12 + $0x2c] sm:$0xf0] }
 0x25f   : >> { %v822_v9 = vsel %vm820_vm7, %v4617_v18, %v819_v34  ;;  %v828_v5 = vsel %vm820_vm7, %v819_v34, %v4636_v33  ;;  %v5892_v49 = vperm.slane %v5181_v32, 2  ;;  %v5893_v55 = vperm.slane %v5181_v32, 3  ;;  %2388 = vmatpush.bf16.msrb.mxu0 %v3255_v20 }
 0x260   : >> { %v844_v46 = vmul.f32 %v832_v30, %v828_v5  ;;  %v847_v36 = vmul.f32 %v835_v52, %v822_v9  ;;  %v1215_v18 = vsel %vm1211_vm6, %v1202_v12, %v5120_v40  ;;  %v1217_v33 = vsel %vm1211_vm6, %v5140_v62, %v1202_v12  ;;  %v5213_v5 = vld [vmem:[#allocation7 + $0x47] ss:$8 sm:$0xf] }
 0x261   : >> { %v1129_v57 = vmul.f32 %v5892_v49, %v1108_v37  ;;  %v1130_v29 = vmul.f32 %v5893_v55, %v1114_v48  ;;  %v1235_v59 = vmul.f32 %v1223_v21, %v1217_v33  ;;  %v1236_v37 = vmul.f32 %v1224_v43, %v1215_v18 }
 0x262   : >> { %v850_v49 = vpack.c.bf16 %v845_v7, %v844_v46  ;;  %v851_v48 = vpack.c.bf16 %v847_v36, %v846_v8  ;;  %v5211_v55 = vor.u32 %v3522_v3, %v3074_v2  ;;  %v1537_v9 = vperm.slane %v5213_v5, 2 }
 0x263   : >> { %v1136_v34 = vpack.c.bf16 %v1130_v29, %v1129_v57  ;;  %v1241_v56 = vpack.c.bf16 %v1236_v37, %v1235_v59  ;;  %v1538_v40 = vperm.slane %v5213_v5, 3  ;;  %v823_v21 = vsel %vm820_vm7, %v4592_v54, %v4651_v42 }
 0x264   : >> { %854 = vst [vmem:[#allocation4 + $0x130] sm:$0xff] %v850_v49  ;;  %2377 = vmatmul.bf16.gmra.mxu3 %v5211_v55  ;;  %2301 = vmatmul.bf16.gmra.mxu0 %v5211_v55  ;;  %v1522_v20 = vpop.permute.xlu2 %1521  ;;  %v825_v8 = vsel %vm820_vm7, %v4653_v26, %v4592_v54  ;;  %v842_v2 = vmul.f32 %v834_v58, %v823_v21  ;;  %v5894_v3 = vperm.slane %v5156_v24, 1  ;;  %v5249_v58 = vld [vmem:[#allocation7 + $0x46] ss:$8 sm:$0xf] }
 0x265   : >> { %1140 = vst [vmem:[#allocation4 + $0x1e8] sm:$0xff] %v1136_v34  ;;  %v1525_v43 = vsel %vm1523_vm9, %v4649_v39, %v1522_v20  ;;  %v1531_v7 = vsel %vm1523_vm9, %v1522_v20, %v4667_v53  ;;  %v5247_v34 = vld [vmem:[#allocation7 + $0x40] ss:$8 sm:$0xf]  ;;  %v1485_v49 = vperm.slane %v5249_v58, 2 }
 0x266   : >> { %855 = vst [vmem:[#allocation4 + $0x138] sm:$0xff] %v851_v48  ;;  %v5227_v46 = vpop.permute.xlu1 %1147  ;;  %v1549_v57 = vmul.f32 %v1537_v9, %v1525_v43  ;;  %v1550_v29 = vmul.f32 %v1538_v40, %v1531_v7  ;;  %v817_v12 = vpop.permute.xlu0 %816  ;;  %v841_v36 = vmul.f32 %v5894_v3, %v825_v8  ;;  %v1172_v48 = vperm.slane %v5247_v34, 1  ;;  %v3362_v24 = vld [vmem:[#allocation4 + $0x220] sm:$0xf]  ;;  %v5282_v3 = vld [vmem:[#allocation4 + $0x2f0] sm:$0xf0] }
 0x267   : >> { %1245 = vst [vmem:[#allocation4 + $0x230] sm:$0xff] %v1241_v56  ;;  %v821_v54 = vsel %vm820_vm7, %v4651_v42, %v817_v12  ;;  %v827_v39 = vsel %vm820_vm7, %v817_v12, %v4653_v26  ;;  %v1486_v42 = vperm.slane %v5249_v58, 3  ;;  %v1171_v8 = vperm.slane %v5247_v34, 0 }
 0x268   : >> { %v1554_v53 = vpack.c.bf16 %v1550_v29, %v1549_v57  ;;  %v840_v18 = vmul.f32 %v832_v30, %v827_v39  ;;  %v843_v33 = vmul.f32 %v835_v52, %v821_v54  ;;  %v3218_v54 = vld [vmem:[#allocation4 + $0x100] sm:$0xf]  ;;  %v5280_v39 = vld [vmem:[#allocation4 + $0x104] sm:$0xf] }
 0x26a   : >> { %1558 = vst [vmem:[#allocation4 + $0x2f8] sm:$0xff] %v1554_v53  ;;  %v848_v59 = vpack.c.bf16 %v841_v36, %v840_v18  ;;  %v849_v37 = vpack.c.bf16 %v843_v33, %v842_v2  ;;  %v3558_v36 = vld [vmem:[#allocation4 + $0x10c] sm:$0xf0]  ;;  %v3220_v53 = vld [vmem:[#allocation4 + $0x110] sm:$0xf0] }
 0x26b   : >> { %v3616_v18 = vld [vmem:[#allocation4 + $0x2e4] sm:$0xf] }
 0x26c   : >> { %852 = vst [vmem:[#allocation4 + $0x120] sm:$0xff] %v848_v59  ;;  %v1468_v26 = vpop.permute.xlu2 %1467  ;;  %v1017_v59 = vperm.slane %v4887_v50, 2 }
 0x26d   : >> { %853 = vst [vmem:[#allocation4 + $0x128] sm:$0xff] %v849_v37  ;;  %v1472_v52 = vsel %vm1471_vm11, %v4758_v4, %v1468_v26  ;;  %v1478_v21 = vsel %vm1471_vm11, %v1468_v26, %v4763_v10  ;;  %v1018_v37 = vperm.slane %v4887_v50, 3  ;;  %v3562_v26 = vld [vmem:[#allocation4 + $0x12c] sm:$0xf0] }
 0x26e   : >> { %v3594_v56 = vld [vmem:[#allocation4 + $0x22c] sm:$0xf0]  ;;  %v5255_v30 = vpop.permute.xlu1 %1153  ;;  %v1493_v7 = vmul.f32 %v1485_v49, %v1472_v52  ;;  %v1494_v57 = vmul.f32 %v1486_v42, %v1478_v21  ;;  %v5272_v29 = vpop.permute.xlu0 %1145  ;;  %v3219_v52 = vor.u32 %v3558_v36, %v3218_v54  ;;  %v3223_v21 = vor.u32 %v5280_v39, %v3220_v53 }
 0x26f   : >> { %v3363_v20 = vor.u32 %v3594_v56, %v3362_v24  ;;  %v1163_v43 = vsel %vm1159_vm8, %v5151_v0, %v5255_v30  ;;  %v1165_v10 = vsel %vm1159_vm8, %v5272_v29, %v5151_v0  ;;  %v3236_v0 = vld [vmem:[#allocation4 + $0x130] sm:$0xf0]  ;;  %v965_v39 = vperm.slane %v4961_v22, 2 }
 0x270   : >> { %v1184_v4 = vmul.f32 %v1172_v48, %v1163_v43  ;;  %v1500_v12 = vpack.c.bf16 %v1494_v57, %v1493_v7  ;;  %v1183_v2 = vmul.f32 %v1171_v8, %v1165_v10  ;;  %v1164_v43 = vsel %vm1159_vm8, %v5135_v45, %v5227_v46 }
 0x271   : >> { %2332 = vmatpush.bf16.msra.mxu2 %v3363_v20  ;;  %v3463_v20 = vor.u32 %v3616_v18, %v5282_v3  ;;  %v1381_v10 = vperm.slane %v4930_v13, 2  ;;  %v966_v3 = vperm.slane %v4961_v22, 3 }
 0x272   : >> { %1504 = vst [vmem:[#allocation4 + $0x2c8] sm:$0xff] %v1500_v12  ;;  %v1189_v33 = vpack.c.bf16 %v1184_v4, %v1183_v2 }
 0x273   : >> { %v3234_v24 = vld [vmem:[#allocation4 + $0x120] sm:$0xf]  ;;  %v3560_v56 = vld [vmem:[#allocation4 + $0x124] sm:$0xf] }
 0x274   : >> { %2448 = vmatmul.bf16.vlgmr.msra.gmra.mxu3 %v5014_v47  ;;  %1193 = vst [vmem:[#allocation4 + $0x210] sm:$0xff] %v1189_v33  ;;  %v1002_v7 = vpop.permute.xlu2 %1001  ;;  %v3235_v57 = vor.u32 %v3562_v26, %v3234_v24  ;;  %v3239_v4 = vor.u32 %v3560_v56, %v3236_v0  ;;  %v3060_v26 = vld [vmem:[%s4138_s12 + $0x10] sm:$0xf0]  ;;  %v1719_v24 = vld [vmem:[%s4153_s27] sm:$0xff]  ;;  %v1179_v56 = vmul.f32 %v1171_v8, %v1164_v43  ;;  %v3810_v43 = vld [vmem:[#allocation2 + $0x28] sm:$0xff] }
 0x275   : >> { %v1005_v2 = vsel %vm1003_vm15, %v4859_v17, %v1002_v7  ;;  %v1011_v54 = vsel %vm1003_vm15, %v1002_v7, %v4879_v38  ;;  %v3516_v38 = vld [vmem:[%s4138_s12 + $0x4] sm:$0xf]  ;;  %v3444_v8 = vld [vmem:[#allocation4 + $0x2d0] sm:$0xf0] }
 0x276   : >> { %v1520_v12 = vpop.permute.xlu1 %1519  ;;  %v1029_v17 = vmul.f32 %v1017_v59, %v1005_v2  ;;  %v1030_v18 = vmul.f32 %v1018_v37, %v1011_v54  ;;  %v5312_v33 = vpop.permute.xlu0 %1151  ;;  %2313 = vmatpush.bf16.msra.mxu1 %v3235_v57  ;;  %2389 = vmatpush.bf16.msrb.mxu0 %v3239_v4  ;;  %v1382_v57 = vperm.slane %v4930_v13, 3  ;;  %v5328_v5 = vor.u32 %v3516_v38, %v3060_v26  ;;  %v3809_v54 = vld [vmem:[#allocation2 + $0x10] sm:$0xff] }
 0x277   : >> { %v1524_v36 = vsel %vm1523_vm9, %v4686_v11, %v1520_v12  ;;  %v1530_v53 = vsel %vm1523_vm9, %v1520_v12, %v4692_v63  ;;  %v1162_v63 = vsel %vm1159_vm8, %v5227_v46, %v5312_v33  ;;  %v4001_v12 = vmov 0  }
 0x278   : >> { %v1545_v22 = vmul.f32 %v1537_v9, %v1524_v36  ;;  %v1546_v11 = vmul.f32 %v1538_v40, %v1530_v53  ;;  %v1034_v0 = vpack.c.bf16 %v1030_v18, %v1029_v17  ;;  %v1180_v7 = vmul.f32 %v1172_v48, %v1162_v63  ;;  %3730 = vset.pattern.permute.xlu0 %v4001_v12  ;;  %v3808_v40 = vld [vmem:[#allocation2 + $0x18] sm:$0xff] }
 0x279   : >> { %3731 = vset.pattern.permute.xlu1 %v4001_v12  ;;  %1725 = vperm.xlu0 %3730, %v1719_v24   ;;  %v973_v2 = vmul.f32 %v3808_v40, %v965_v39  ;;  %v974_v46 = vmul.f32 %v3809_v54, %v966_v3  ;;  %v977_v48 = vmul.f32 %v3810_v43, %v965_v39  ;;  %v3811_v36 = vld [vmem:[#allocation2 + $0x38] sm:$0xff] }
 0x27a   : >> { %v1552_v9 = vpack.c.bf16 %v1546_v11, %v1545_v22  ;;  %1038 = vst [vmem:[#allocation4 + $0x1b8] sm:$0xff] %v1034_v0  ;;  %v1187_v4 = vpack.c.bf16 %v1180_v7, %v1179_v56  ;;  %2314 = vmatpush.bf16.msra.mxu1 %v3219_v52  ;;  %v978_v53 = vmul.f32 %v3811_v36, %v966_v3  ;;  %v5330_v17 = vld [vmem:[#allocation7 + $0x26] ss:$8 sm:$0xf] }
 0x27b   : >> { %3732 = vset.pattern.permute.xlu2 %v4001_v12  ;;  %2390 = vmatpush.bf16.msrb.mxu0 %v3223_v21  ;;  %v1069_v18 = vperm.slane %v5330_v17, 2  ;;  %v1070_v38 = vperm.slane %v5330_v17, 3  ;;  %v980_v26 = vpack.c.bf16 %v974_v46, %v973_v2  ;;  %v3612_v52 = vld [vmem:[#allocation4 + $0x2c4] sm:$0xf]  ;;  %v3428_v7 = vld [vmem:[#allocation4 + $0x2b0] sm:$0xf0] }
 0x27c   : >> { %1556 = vst [vmem:[#allocation4 + $0x2e8] sm:$0xff] %v1552_v9  ;;  %v1364_v22 = vpop.permute.xlu2 %1363  ;;  %v1720_v11 = vld [vmem:[%s4153_s27 + $0x8] sm:$0xff]  ;;  %v982_v63 = vpack.c.bf16 %v978_v53, %v977_v48  ;;  %v5895_v2 = vperm.slane %v5181_v32, 2  ;;  %v5896_v46 = vperm.slane %v5181_v32, 3  ;;  %v3412_v36 = vld [vmem:[#allocation4 + $0x290] sm:$0xf0] }
 0x27d   : >> { %1191 = vst [vmem:[#allocation4 + $0x200] sm:$0xff] %v1187_v4  ;;  %v1368_v39 = vsel %vm1367_vm1, %v4945_v14, %v1364_v22  ;;  %v1374_v21 = vsel %vm1367_vm1, %v1364_v22, %v4951_v27  ;;  %2315 = vmatmul.bf16.vlgmr.msra.gmra.mxu1 %v5328_v5  ;;  %1730 = vperm.xlu1 %3731, %v1720_v11   ;;  %v3620_v53 = vld [vmem:[#allocation4 + $0x304] sm:$0xf]  ;;  %v939_v22 = vperm.slane %v5031_v15, 3  ;;  %v3519_v11 = vld [vmem:[%s4138_s12 + $0x14] sm:$0xf0] }
 0x27e   : >> { %2402 = vmatpush.bf16.msrb.mxu1 %v3463_v20  ;;  %v1054_v24 = vpop.permute.xlu1 %1053  ;;  %v3447_v20 = vor.u32 %v3612_v52, %v3444_v8  ;;  %984 = vst [vmem:[#allocation4 + $0x188] sm:$0xff] %v980_v26  ;;  %v1389_v14 = vmul.f32 %v1381_v10, %v1368_v39  ;;  %v1390_v0 = vmul.f32 %v1382_v57, %v1374_v21  ;;  %v1106_v27 = vpop.permute.xlu0 %1105  ;;  %v3608_v8 = vld [vmem:[#allocation4 + $0x2a4] sm:$0xf]  ;;  %v3066_v52 = vld [vmem:[%s4138_s12 + $0x8] sm:$0xf]  ;;  %v887_v17 = vperm.slane %v5110_v35, 3 }
 0x27f   : >> { %v1057_v3 = vsel %vm1055_vm12, %v4756_v60, %v1054_v24  ;;  %v1063_v56 = vsel %vm1055_vm12, %v1054_v24, %v4776_v31  ;;  %986 = vst [vmem:[#allocation4 + $0x198] sm:$0xff] %v982_v63  ;;  %v1109_v60 = vsel %vm1107_vm10, %v4684_v51, %v1106_v27  ;;  %v1115_v31 = vsel %vm1107_vm10, %v1106_v27, %v4704_v25  ;;  %v3476_v25 = vld [vmem:[#allocation4 + $0x310] sm:$0xf0]  ;;  %v3590_v63 = vld [vmem:[#allocation4 + $0x20c] sm:$0xf0] }
 0x280   : >> { %v1081_v12 = vmul.f32 %v1069_v18, %v1057_v3  ;;  %v1082_v9 = vmul.f32 %v1070_v38, %v1063_v56  ;;  %v1396_v40 = vpack.c.bf16 %v1390_v0, %v1389_v14  ;;  %v1133_v54 = vmul.f32 %v5895_v2, %v1109_v60  ;;  %2391 = vmatmul.bf16.vlgmr.msrb.gmra.mxu0 %v5328_v5  ;;  %v3604_v21 = vld [vmem:[#allocation4 + $0x284] sm:$0xf] }
 0x281   : >> { %v1134_v4 = vmul.f32 %v5896_v46, %v1115_v31  ;;  %v3431_v48 = vor.u32 %v3608_v8, %v3428_v7  ;;  %v938_v51 = vperm.slane %v5031_v15, 2  ;;  %v3415_v0 = vor.u32 %v3604_v21, %v3412_v36  ;;  %v3520_v31 = vld [vmem:[%s4138_s12 + $0x24] sm:$0xf]  ;;  %v3579_v15 = vld [vmem:[#allocation4 + $0x1b4] sm:$0xf0] }
 0x282   : >> { %2403 = vmatpush.bf16.msrb.mxu1 %v3447_v20  ;;  %v1086_v43 = vpack.c.bf16 %v1082_v9, %v1081_v12  ;;  %1400 = vst [vmem:[#allocation4 + $0x288] sm:$0xff] %v1396_v40  ;;  %v3479_v20 = vor.u32 %v3620_v53, %v3476_v25  ;;  %v5378_v27 = vor.u32 %v3519_v11, %v3066_v52  ;;  %v3076_v40 = vld [vmem:[%s4138_s12 + $0x30] sm:$0xf0] }
 0x283   : >> { %v1138_v26 = vpack.c.bf16 %v1134_v4, %v1133_v54  ;;  %v5409_v36 = vld [vmem:[#allocation7 + $0x45] ss:$8 sm:$0xf] }
 0x284   : >> { %1090 = vst [vmem:[#allocation4 + $0x1d8] sm:$0xff] %v1086_v43  ;;  %v3346_v32 = vld [vmem:[#allocation4 + $0x200] sm:$0xf]  ;;  %2453 = vmatmul.bf16.gmra.mxu3 %v5211_v55  ;;  %v919_v24 = vpop.permute.xlu2 %918  ;;  %v3585_v43 = vld [vmem:[#allocation4 + $0x1ec] sm:$0xf]  ;;  %v1433_v53 = vperm.slane %v5409_v36, 2 }
 0x285   : >> { %1142 = vst [vmem:[#allocation4 + $0x1f8] sm:$0xff] %v1138_v26  ;;  %v3347_v39 = vor.u32 %v3590_v63, %v3346_v32  ;;  %v926_v56 = vsel %vm924_vm3, %v919_v24, %v4997_v1  ;;  %v928_v14 = vsel %vm924_vm3, %v5066_v61, %v919_v24  ;;  %v3396_v61 = vld [vmem:[#allocation4 + $0x270] sm:$0xf0]  ;;  %v1434_v25 = vperm.slane %v5409_v36, 3  ;;  %v3596_v24 = vld [vmem:[#allocation4 + $0x244] sm:$0xf] }
 0x286   : >> { %2404 = vmatpush.bf16.msrb.mxu1 %v3431_v48  ;;  %v1000_v3 = vpop.permute.xlu1 %999  ;;  %v950_v9 = vmul.f32 %v938_v51, %v928_v14  ;;  %v951_v1 = vmul.f32 %v939_v22, %v926_v56  ;;  %v1052_v60 = vpop.permute.xlu0 %1051  ;;  %v5407_v48 = vor.u32 %v3520_v31, %v3076_v40  ;;  %v5897_v56 = vld [vmem:[#allocation19_spill] sm:$0xff]  ;;  %v5900_v31 = vld [vmem:[#allocation18_spill] sm:$0xff] }
 0x287   : >> { %v1004_v7 = vsel %vm1003_vm15, %v4900_v6, %v1000_v3  ;;  %v1010_v12 = vsel %vm1003_vm15, %v1000_v3, %v4905_v16  ;;  %2333 = vmatpush.bf16.msra.mxu2 %v3347_v39  ;;  %v1056_v16 = vsel %vm1055_vm12, %v4793_v41, %v1052_v60  ;;  %v1062_v54 = vsel %vm1055_vm12, %v1052_v60, %v4799_v44  ;;  %v3380_v41 = vld [vmem:[#allocation4 + $0x250] sm:$0xf0]  ;;  %v5899_v60 = vld [vmem:[#allocation17_spill] sm:$0xff] }
 0x288   : >> { %v1025_v2 = vmul.f32 %v1017_v59, %v1004_v7  ;;  %v1026_v6 = vmul.f32 %v1018_v37, %v1010_v12  ;;  %v955_v46 = vpack.c.bf16 %v951_v1, %v950_v9  ;;  %v1077_v4 = vmul.f32 %v1069_v18, %v1056_v16  ;;  %v3600_v59 = vld [vmem:[#allocation4 + $0x264] sm:$0xf] }
 0x289   : >> { %v1078_v8 = vmul.f32 %v1070_v38, %v1062_v54  ;;  %v3399_v37 = vor.u32 %v3600_v59, %v3396_v61  ;;  %v886_v18 = vperm.slane %v5110_v35, 2  ;;  %v3338_v38 = vld [vmem:[#allocation4 + $0x1e8] sm:$0xf]  ;;  %v3383_v3 = vor.u32 %v3596_v24, %v3380_v41 }
 0x28a   : >> { %2405 = vmatpush.bf16.msrb.mxu1 %v3415_v0  ;;  %v1032_v50 = vpack.c.bf16 %v1026_v6, %v1025_v2  ;;  %2334 = vmatmul.bf16.vlgmr.msra.gmra.mxu2 %v5378_v27  ;;  %959 = vst [vmem:[#allocation4 + $0x178] sm:$0xff] %v955_v46  ;;  %v5898_v0 = vld [vmem:[#allocation20_spill] sm:$0xff]  ;;  %v3364_v2 = vld [vmem:[#allocation4 + $0x230] sm:$0xf0]  ;;  %v3466_v41 = vld [vmem:[#allocation4 + $0x2e8] sm:$0xf] }
 0x28b   : >> { %2428 = vmatpush.bf16.msrb.mxu2 %v3479_v20  ;;  %v1084_v44 = vpack.c.bf16 %v1078_v8, %v1077_v4  ;;  %v1722_v6 = vld [vmem:[%s4153_s27 + $0x18] sm:$0xff]  ;;  %v3592_v4 = vld [vmem:[#allocation4 + $0x224] sm:$0xf]  ;;  %v3583_v58 = vld [vmem:[#allocation4 + $0x1d4] sm:$0xf0] }
 0x28c   : >> { %1036 = vst [vmem:[#allocation4 + $0x1a8] sm:$0xff] %v1032_v50  ;;  %v3340_v26 = vld [vmem:[#allocation4 + $0x1f8] sm:$0xf0]  ;;  %v3587_v52 = vld [vmem:[#allocation4 + $0x1f4] sm:$0xf0]  ;;  %v865_v11 = vpop.permute.xlu2 %864  ;;  %v5901_v8 = vld [vmem:[#allocation39_spill] sm:$0xff]  ;;  %1740 = vperm.xlu1 %3731, %v1722_v6  }
 0x28d   : >> { %1088 = vst [vmem:[#allocation4 + $0x1c8] sm:$0xff] %v1084_v44  ;;  %v5415_v32 = vor.u32 %v3585_v43, %v3340_v26  ;;  %v3339_v63 = vor.u32 %v3587_v52, %v3338_v38  ;;  %v873_v21 = vsel %vm872_vm5, %v865_v11, %v5123_v28  ;;  %v875_v20 = vsel %vm872_vm5, %v5059_v23, %v865_v11  ;;  %v3082_v50 = vld [vmem:[%s4138_s12 + $0x28] sm:$0xf]  ;;  %v3588_v43 = vld [vmem:[#allocation4 + $0x204] sm:$0xf] }
 0x28e   : >> { %2406 = vmatpush.bf16.msrb.mxu1 %v3399_v37  ;;  %v1418_v39 = vpop.permute.xlu1 %1417  ;;  %v894_v12 = vmul.f32 %v886_v18, %v875_v20  ;;  %v895_v28 = vmul.f32 %v887_v17, %v873_v21  ;;  %v1470_v23 = vpop.permute.xlu0 %1469  ;;  %v1277_v59 = vperm.slane %v5901_v8, 2  ;;  %v3523_v44 = vld [vmem:[%s4138_s12 + $0x34] sm:$0xf0]  ;;  %v3367_v26 = vor.u32 %v3592_v4, %v3364_v2  ;;  %v3324_v52 = vld [vmem:[#allocation4 + $0x1d8] sm:$0xf0] }
 0x28f   : >> { %2320 = vmatmul.bf16.gmra.mxu1 %v5407_v48  ;;  %v1421_v14 = vsel %vm1419_vm13, %v5897_v56, %v1418_v39  ;;  %v1427_v7 = vsel %vm1419_vm13, %v1418_v39, %v5898_v0  ;;  %3625 = vmatpush.bf16.msra.mxu3 %v5415_v32  ;;  %v1473_v61 = vsel %vm1471_vm11, %v5899_v60, %v1470_v23  ;;  %v3348_v21 = vld [vmem:[#allocation4 + $0x210] sm:$0xf0]  ;;  %v3619_v20 = vld [vmem:[#allocation4 + $0x2f4] sm:$0xf0] }
 0x290   : >> { %v1445_v9 = vmul.f32 %v1433_v53, %v1421_v14  ;;  %v1446_v1 = vmul.f32 %v1434_v25, %v1427_v7  ;;  %v1479_v40 = vsel %vm1471_vm11, %v1470_v23, %v5900_v31  ;;  %2459 = vmatpush.bf16.msra.mxu0 %v3339_v63  ;;  %v901_v16 = vpack.c.bf16 %v895_v28, %v894_v12  ;;  %v5902_v14 = vld [vmem:[#allocation36_spill] sm:$0xff]  ;;  %v5903_v7 = vld [vmem:[#allocation38_spill] sm:$0xff]  ;;  %v5905_v60 = vld [vmem:[#allocation31_spill] sm:$0xff] }
 0x291   : >> { %v1497_v54 = vmul.f32 %v1485_v49, %v1473_v61  ;;  %v1498_v46 = vmul.f32 %v1486_v42, %v1479_v40  ;;  %2396 = vmatmul.bf16.gmra.mxu0 %v5407_v48  ;;  %v1278_v49 = vperm.slane %v5901_v8, 3  ;;  %v3467_v28 = vor.u32 %v3619_v20, %v3466_v41 }
 0x292   : >> { %2407 = vmatpush.bf16.msrb.mxu1 %v3383_v3  ;;  %v1450_v37 = vpack.c.bf16 %v1446_v1, %v1445_v9  ;;  %905 = vst [vmem:[#allocation4 + $0x148] sm:$0xff] %v901_v16  ;;  %v5458_v3 = vor.u32 %v3523_v44, %v3082_v50  ;;  %v5904_v9 = vld [vmem:[#allocation37_spill] sm:$0xff]  ;;  %v5907_v50 = vld [vmem:[#allocation23_spill] sm:$0xff] }
 0x293   : >> { %v1502_v38 = vpack.c.bf16 %v1498_v46, %v1497_v54  ;;  %v3577_v23 = vld [vmem:[#allocation4 + $0x1ac] sm:$0xf]  ;;  %v3306_v6 = vld [vmem:[#allocation4 + $0x1a8] sm:$0xf] }
 0x294   : >> { %1454 = vst [vmem:[#allocation4 + $0x2b8] sm:$0xff] %v1450_v37  ;;  %v3581_v42 = vld [vmem:[#allocation4 + $0x1cc] sm:$0xf]  ;;  %v3322_v11 = vld [vmem:[#allocation4 + $0x1c8] sm:$0xf]  ;;  %2524 = vmatmul.bf16.vlgmr.msrb.gmra.mxu3 %v5014_v47  ;;  %v1262_v63 = vpop.permute.xlu2 %1261  ;;  %v3351_v47 = vor.u32 %v3588_v43, %v3348_v21 }
 0x295   : >> { %1506 = vst [vmem:[#allocation4 + $0x2d8] sm:$0xff] %v1502_v38  ;;  %v5456_v24 = vor.u32 %v3581_v42, %v3324_v52  ;;  %v3323_v39 = vor.u32 %v3583_v58, %v3322_v11  ;;  %v1265_v0 = vsel %vm1263_vm4, %v5902_v14, %v1262_v63  ;;  %v1271_v12 = vsel %vm1263_vm4, %v1262_v63, %v5903_v7  ;;  %v5906_v46 = vld [vmem:[#allocation22_spill] sm:$0xff]  ;;  %v3308_v43 = vld [vmem:[#allocation4 + $0x1b8] sm:$0xf0] }
 0x296   : >> { %2408 = vmatpush.bf16.msrb.mxu1 %v3367_v26  ;;  %v917_v56 = vpop.permute.xlu1 %916  ;;  %v1289_v31 = vmul.f32 %v1277_v59, %v1265_v0  ;;  %v1290_v40 = vmul.f32 %v1278_v49, %v1271_v12  ;;  %v1416_v2 = vpop.permute.xlu0 %1415  ;;  %v3290_v38 = vld [vmem:[#allocation4 + $0x188] sm:$0xf]  ;;  %v3575_v26 = vld [vmem:[#allocation4 + $0x194] sm:$0xf0]  ;;  %v3307_v58 = vor.u32 %v3579_v15, %v3306_v6  ;;  %v3573_v42 = vld [vmem:[#allocation4 + $0x18c] sm:$0xf] }
 0x297   : >> { %v925_v1 = vsel %vm924_vm3, %v917_v56, %v5904_v9  ;;  %v927_v61 = vsel %vm924_vm3, %v5905_v60, %v917_v56  ;;  %3626 = vmatpush.bf16.msra.mxu3 %v5456_v24  ;;  %v1420_v4 = vsel %vm1419_vm13, %v5906_v46, %v1416_v2  ;;  %v1426_v37 = vsel %vm1419_vm13, %v1416_v2, %v5907_v50  ;;  %v3292_v11 = vld [vmem:[#allocation4 + $0x198] sm:$0xf0]  ;;  %v5499_v21 = vld [vmem:[#allocation7 + $0x43] ss:$8 sm:$0xf] }
 0x298   : >> { %v946_v16 = vmul.f32 %v938_v51, %v927_v61  ;;  %v947_v54 = vmul.f32 %v939_v22, %v925_v1  ;;  %2460 = vmatpush.bf16.msra.mxu0 %v3323_v39  ;;  %v1294_v41 = vpack.c.bf16 %v1290_v40, %v1289_v31  ;;  %v1441_v44 = vmul.f32 %v1433_v53, %v1420_v4  ;;  %v5495_v53 = vld [vmem:[#allocation7 + $0x60] ss:$8 sm:$0xf] }
 0x299   : >> { %v1442_v51 = vmul.f32 %v1434_v25, %v1426_v37  ;;  %v5491_v22 = vor.u32 %v3577_v23, %v3308_v43  ;;  %v1589_v36 = vperm.slane %v5495_v53, 2  ;;  %v1590_v25 = vperm.slane %v5495_v53, 3  ;;  %v3450_v39 = vld [vmem:[#allocation4 + $0x2c8] sm:$0xf]  ;;  %v5908_v23 = vld [vmem:[#allocation25_spill] sm:$0xff]  ;;  %v5912_v50 = vld [vmem:[#allocation27_spill] sm:$0xff] }
 0x29a   : >> { %2409 = vmatpush.bf16.msrb.mxu1 %v3351_v47  ;;  %v953_v52 = vpack.c.bf16 %v947_v54, %v946_v16  ;;  %2339 = vmatmul.bf16.gmra.mxu2 %v5458_v3  ;;  %1298 = vst [vmem:[#allocation4 + $0x258] sm:$0xff] %v1294_v41  ;;  %v1329_v20 = vperm.slane %v5499_v21, 2  ;;  %v1330_v56 = vperm.slane %v5499_v21, 3  ;;  %v3291_v0 = vor.u32 %v3575_v26, %v3290_v38  ;;  %v5909_v1 = vld [vmem:[#allocation26_spill] sm:$0xff]  ;;  %v5911_v40 = vld [vmem:[#allocation33_spill] sm:$0xff]  ;;  %v5913_v43 = vld [vmem:[#allocation28_spill] sm:$0xff] }
 0x29b   : >> { %v1448_v63 = vpack.c.bf16 %v1442_v51, %v1441_v44  ;;  %3627 = vmatpush.bf16.msra.mxu3 %v5491_v22  ;;  %v5503_v47 = vor.u32 %v3573_v42, %v3292_v11  ;;  %v5910_v61 = vld [vmem:[#allocation30_spill] sm:$0xff]  ;;  %v3571_v42 = vld [vmem:[#allocation4 + $0x174] sm:$0xf0]  ;;  %v5920_v21 = vld [vmem:[#allocation43_spill] sm:$0xff] }
 0x29c   : >> { %957 = vst [vmem:[#allocation4 + $0x168] sm:$0xff] %v953_v52  ;;  %2461 = vmatpush.bf16.msra.mxu0 %v3307_v58  ;;  %v3615_v14 = vld [vmem:[#allocation4 + $0x2d4] sm:$0xf0]  ;;  %v1572_v7 = vpop.permute.xlu2 %1571  ;;  %v1721_v44 = vld [vmem:[%s4153_s27 + $0x10] sm:$0xff]  ;;  %v1173_v52 = vperm.slane %v5247_v34, 2 }
 0x29d   : >> { %1452 = vst [vmem:[#allocation4 + $0x2a8] sm:$0xff] %v1448_v63  ;;  %v3451_v12 = vor.u32 %v3615_v14, %v3450_v39  ;;  %v1576_v9 = vsel %vm1575_vm14, %v5908_v23, %v1572_v7  ;;  %v1582_v60 = vsel %vm1575_vm14, %v1572_v7, %v5909_v1  ;;  %1735 = vperm.xlu2 %3732, %v1721_v44   ;;  %v3276_v58 = vld [vmem:[#allocation4 + $0x178] sm:$0xf0]  ;;  %v1174_v63 = vperm.slane %v5247_v34, 3  ;;  %v5914_v1 = vld [vmem:[#allocation41_spill] sm:$0xff] }
 0x29e   : >> { %2478 = vmatpush.bf16.msra.mxu1 %v3467_v28  ;;  %v1314_v28 = vpop.permute.xlu1 %1313  ;;  %v1597_v6 = vmul.f32 %v1589_v36, %v1576_v9  ;;  %v1598_v16 = vmul.f32 %v1590_v25, %v1582_v60  ;;  %v1366_v54 = vpop.permute.xlu0 %1365  ;;  %v3565_v34 = vld [vmem:[#allocation4 + $0x14c] sm:$0xf] }
 0x29f   : >> { %2410 = vmatmul.bf16.vlgmr.msrb.gmra.mxu1 %v5378_v27  ;;  %v1317_v31 = vsel %vm1315_vm2, %v5910_v61, %v1314_v28  ;;  %v1323_v2 = vsel %vm1315_vm2, %v1314_v28, %v5911_v40  ;;  %v1369_v37 = vsel %vm1367_vm1, %v5912_v50, %v1366_v54  ;;  %v1375_v41 = vsel %vm1367_vm1, %v1366_v54, %v5913_v43  ;;  %v5917_v54 = vld [vmem:[#allocation35_spill] sm:$0xff]  ;;  %v3617_v53 = vld [vmem:[#allocation4 + $0x2ec] sm:$0xf] }
 0x2a0   : >> { %v1341_v46 = vmul.f32 %v1329_v20, %v1317_v31  ;;  %v1342_v4 = vmul.f32 %v1330_v56, %v1323_v2  ;;  %2462 = vmatpush.bf16.msra.mxu0 %v3291_v0  ;;  %v1604_v51 = vpack.c.bf16 %v1598_v16, %v1597_v6  ;;  %v1393_v15 = vmul.f32 %v1381_v10, %v1369_v37  ;;  %v5916_v6 = vld [vmem:[#allocation34_spill] sm:$0xff] }
 0x2a1   : >> { %v1394_v38 = vmul.f32 %v1382_v57, %v1375_v41  ;;  %3628 = vmatpush.bf16.msra.mxu3 %v5503_v47  ;;  %v3611_v57 = vld [vmem:[#allocation4 + $0x2b4] sm:$0xf0]  ;;  %v5919_v41 = vld [vmem:[#allocation45_spill] sm:$0xff] }
 0x2a2   : >> { %2479 = vmatpush.bf16.msra.mxu1 %v3451_v12  ;;  %v1346_v26 = vpack.c.bf16 %v1342_v4, %v1341_v46  ;;  %1608 = vst [vmem:[#allocation4 + $0x308] sm:$0xff] %v1604_v51  ;;  %v1225_v44 = vperm.slane %v5919_v41, 2  ;;  %v1226_v51 = vperm.slane %v5919_v41, 3  ;;  %v5926_v41 = vld [vmem:[#allocation21_spill] sm:$0xff] }
 0x2a3   : >> { %v1398_v11 = vpack.c.bf16 %v1394_v38, %v1393_v15  ;;  %v3569_v39 = vld [vmem:[#allocation4 + $0x16c] sm:$0xf]  ;;  %v3274_v14 = vld [vmem:[#allocation4 + $0x168] sm:$0xf] }
 0x2a4   : >> { %1350 = vst [vmem:[#allocation4 + $0x278] sm:$0xff] %v1346_v26  ;;  %v5540_v0 = vor.u32 %v3569_v39, %v3276_v58  ;;  %v3275_v10 = vor.u32 %v3571_v42, %v3274_v14  ;;  %v3434_v13 = vld [vmem:[#allocation4 + $0x2a8] sm:$0xf]  ;;  %2529 = vmatmul.bf16.gmra.mxu3 %v5211_v55  ;;  %v1158_v7 = vpop.permute.xlu2 %1157  ;;  %v5921_v39 = vld [vmem:[#allocation40_spill] sm:$0xff] }
 0x2a5   : >> { %1402 = vst [vmem:[#allocation4 + $0x298] sm:$0xff] %v1398_v11  ;;  %v3435_v12 = vor.u32 %v3611_v57, %v3434_v13  ;;  %v1161_v23 = vsel %vm1159_vm8, %v5255_v30, %v1158_v7  ;;  %v1167_v9 = vsel %vm1159_vm8, %v1158_v7, %v5272_v29  ;;  %v5915_v55 = vld [vmem:[#allocation42_spill] sm:$0xff] }
 0x2a6   : >> { %v1260_v28 = vpop.permute.xlu1 %1259  ;;  %3629 = vmatpush.bf16.msra.mxu3 %v5540_v0  ;;  %2463 = vmatpush.bf16.msra.mxu0 %v3275_v10  ;;  %v1185_v31 = vmul.f32 %v1173_v52, %v1161_v23  ;;  %v1186_v30 = vmul.f32 %v1174_v63, %v1167_v9  ;;  %v1312_v40 = vpop.permute.xlu0 %1311  ;;  %v5922_v10 = vld [vmem:[#allocation44_spill] sm:$0xff] }
 0x2a7   : >> { %v1264_v60 = vsel %vm1263_vm4, %v5914_v1, %v1260_v28  ;;  %v1270_v61 = vsel %vm1263_vm4, %v1260_v28, %v5915_v55  ;;  %2480 = vmatpush.bf16.msra.mxu1 %v3435_v12  ;;  %v1316_v16 = vsel %vm1315_vm2, %v5916_v6, %v1312_v40  ;;  %v1322_v46 = vsel %vm1315_vm2, %v1312_v40, %v5917_v54  ;;  %v5924_v40 = vld [vmem:[#allocation47_spill] sm:$0xff]  ;;  %v5925_v54 = vld [vmem:[#allocation32_spill] sm:$0xff] }
 0x2a8   : >> { %v1285_v29 = vmul.f32 %v1277_v59, %v1264_v60  ;;  %v1286_v2 = vmul.f32 %v1278_v49, %v1270_v61  ;;  %v1190_v4 = vpack.c.bf16 %v1186_v30, %v1185_v31  ;;  %v1337_v50 = vmul.f32 %v1329_v20, %v1316_v16  ;;  %v5918_v59 = vld [vmem:[#allocation29_spill] sm:$0xff]  ;;  %v3418_v49 = vld [vmem:[#allocation4 + $0x288] sm:$0xf] }
 0x2a9   : >> { %v1338_v37 = vmul.f32 %v1330_v56, %v1322_v46  ;;  %v5923_v31 = vld [vmem:[#allocation46_spill] sm:$0xff] }
 0x2aa   : >> { %v1292_v43 = vpack.c.bf16 %v1286_v2, %v1285_v29  ;;  %3490 = vmatmul.msk.bf16.vlgmr.msrb.gmra.mxu2 %vm2281_vm0, %v5918_v59  ;;  %1194 = vst [vmem:[#allocation4 + $0x218] sm:$0xff] %v1190_v4  ;;  %v3599_v29 = vld [vmem:[#allocation4 + $0x254] sm:$0xf0] }
 0x2ab   : >> { %v1344_v8 = vpack.c.bf16 %v1338_v37, %v1337_v50  ;;  %v3603_v23 = vld [vmem:[#allocation4 + $0x274] sm:$0xf0] }
 0x2ac   : >> { %1296 = vst [vmem:[#allocation4 + $0x248] sm:$0xff] %v1292_v43  ;;  %v3607_v15 = vld [vmem:[#allocation4 + $0x294] sm:$0xf0]  ;;  %v3242_v43 = vld [vmem:[#allocation4 + $0x128] sm:$0xf] }
 0x2ad   : >> { %1348 = vst [vmem:[#allocation4 + $0x268] sm:$0xff] %v1344_v8  ;;  %v3419_v38 = vor.u32 %v3607_v15, %v3418_v49  ;;  %v3561_v8 = vld [vmem:[#allocation4 + $0x12c] sm:$0xf] }
 0x2ae   : >> { %v1210_v26 = vpop.permute.xlu1 %1209  ;;  %v867_v58 = vpop.permute.xlu0 %866 }
 0x2af   : >> { %2415 = vmatmul.bf16.gmra.mxu1 %v5458_v3  ;;  %v1213_v20 = vsel %vm1211_vm6, %v5920_v21, %v1210_v26  ;;  %v1219_v56 = vsel %vm1211_vm6, %v1210_v26, %v5140_v62  ;;  %v874_v14 = vsel %vm872_vm5, %v867_v58, %v5921_v39  ;;  %v876_v13 = vsel %vm872_vm5, %v5922_v10, %v867_v58  ;;  %v3244_v26 = vld [vmem:[#allocation4 + $0x138] sm:$0xf0] }
 0x2b0   : >> { %2481 = vmatpush.bf16.msra.mxu1 %v3419_v38  ;;  %v1237_v42 = vmul.f32 %v1225_v44, %v1213_v20  ;;  %v1238_v11 = vmul.f32 %v1226_v51, %v1219_v56  ;;  %v898_v57 = vmul.f32 %v886_v18, %v876_v13  ;;  %v899_v7 = vmul.f32 %v887_v17, %v874_v14  ;;  %v3563_v38 = vld [vmem:[#allocation4 + $0x134] sm:$0xf0]  ;;  %v3228_v39 = vld [vmem:[#allocation4 + $0x118] sm:$0xf0]  ;;  %v3226_v14 = vld [vmem:[#allocation4 + $0x108] sm:$0xf] }
 0x2b1   : >> { %v3243_v56 = vor.u32 %v3563_v38, %v3242_v43  ;;  %v5626_v58 = vor.u32 %v3561_v8, %v3244_v26  ;;  %v2297_v43 = vpop.f32.mrf.mxu0 }
 0x2b2   : >> { %v1242_v12 = vpack.c.bf16 %v1238_v11, %v1237_v42  ;;  %v903_v62 = vpack.c.bf16 %v899_v7, %v898_v57  ;;  %v3559_v42 = vld [vmem:[#allocation4 + $0x114] sm:$0xf0]  ;;  %v3557_v7 = vld [vmem:[#allocation4 + $0x10c] sm:$0xf] }
 0x2b3   : >> { %v3386_v60 = vld [vmem:[#allocation4 + $0x248] sm:$0xf]  ;;  %v3227_v13 = vor.u32 %v3559_v42, %v3226_v14 }
 0x2b4   : >> { %1246 = vst [vmem:[#allocation4 + $0x238] sm:$0xff] %v1242_v12  ;;  %v3402_v28 = vld [vmem:[#allocation4 + $0x268] sm:$0xf] }
 0x2b5   : >> { %907 = vst [vmem:[#allocation4 + $0x158] sm:$0xff] %v903_v62  ;;  %v3403_v9 = vor.u32 %v3603_v23, %v3402_v28  ;;  %v3468_v28 = vld [vmem:[#allocation4 + $0x2f8] sm:$0xf0] }
 0x2b6   : >> { %v1156_v1 = vpop.permute.xlu1 %1155  ;;  %v1208_v61 = vpop.permute.xlu0 %1207  ;;  %v3471_v23 = vor.u32 %v3617_v53, %v3468_v28 }
 0x2b7   : >> { %v1160_v55 = vsel %vm1159_vm8, %v5312_v33, %v1156_v1  ;;  %v1166_v18 = vsel %vm1159_vm8, %v1156_v1, %v5135_v45  ;;  %2482 = vmatpush.bf16.msra.mxu1 %v3403_v9  ;;  %v1212_v30 = vsel %vm1211_vm6, %v5923_v31, %v1208_v61  ;;  %v1218_v33 = vsel %vm1211_vm6, %v1208_v61, %v5924_v40  ;;  %v3482_v9 = vld [vmem:[#allocation4 + $0x308] sm:$0xf]  ;;  %v3452_v1 = vld [vmem:[#allocation4 + $0x2d8] sm:$0xf0]  ;;  %v3609_v31 = vld [vmem:[#allocation4 + $0x2ac] sm:$0xf] }
 0x2b8   : >> { %v1181_v35 = vmul.f32 %v1173_v52, %v1160_v55  ;;  %v1182_v17 = vmul.f32 %v1174_v63, %v1166_v18  ;;  %v1233_v2 = vmul.f32 %v1225_v44, %v1212_v30  ;;  %v1234_v6 = vmul.f32 %v1226_v51, %v1218_v33  ;;  %v3258_v63 = vld [vmem:[#allocation4 + $0x148] sm:$0xf]  ;;  %v5927_v51 = vld [vmem:[#allocation24_spill] sm:$0xff]  ;;  %v3621_v55 = vld [vmem:[#allocation4 + $0x30c] sm:$0xf] }
 0x2b9   : >> { %v3387_v45 = vor.u32 %v3599_v29, %v3386_v60  ;;  %v3436_v30 = vld [vmem:[#allocation4 + $0x2b8] sm:$0xf0]  ;;  %v3605_v33 = vld [vmem:[#allocation4 + $0x28c] sm:$0xf] }
 0x2ba   : >> { %v1188_v16 = vpack.c.bf16 %v1182_v17, %v1181_v35  ;;  %3491 = vmatmul.msk.bf16.gmra.mxu2 %vm2281_vm0, %v5925_v54  ;;  %v1240_v52 = vpack.c.bf16 %v1234_v6, %v1233_v2  ;;  %v3613_v35 = vld [vmem:[#allocation4 + $0x2cc] sm:$0xf]  ;;  %v3420_v40 = vld [vmem:[#allocation4 + $0x298] sm:$0xf0] }
 0x2bb   : >> { %2483 = vmatpush.bf16.msra.mxu1 %v3387_v45  ;;  %v3595_v10 = vld [vmem:[#allocation4 + $0x234] sm:$0xf0]  ;;  %v3455_v17 = vor.u32 %v3613_v35, %v3452_v1  ;;  %v3423_v29 = vor.u32 %v3605_v33, %v3420_v40  ;;  %v3601_v2 = vld [vmem:[#allocation4 + $0x26c] sm:$0xf]  ;;  %v3404_v6 = vld [vmem:[#allocation4 + $0x278] sm:$0xf0] }
 0x2bc   : >> { %1192 = vst [vmem:[#allocation4 + $0x208] sm:$0xff] %v1188_v16  ;;  %v3260_v46 = vld [vmem:[#allocation4 + $0x158] sm:$0xf0]  ;;  %v3567_v4 = vld [vmem:[#allocation4 + $0x154] sm:$0xf0]  ;;  %v3407_v45 = vor.u32 %v3601_v2, %v3404_v6 }
 0x2bd   : >> { %1244 = vst [vmem:[#allocation4 + $0x228] sm:$0xff] %v1240_v52  ;;  %v5613_v50 = vor.u32 %v3565_v34, %v3260_v46  ;;  %v3259_v37 = vor.u32 %v3567_v4, %v3258_v63  ;;  %v3388_v16 = vld [vmem:[#allocation4 + $0x258] sm:$0xf0]  ;;  %v2354_v52 = vpop.f32.mrf.mxu3 }
 0x2be   : >> { %v1574_v49 = vpop.permute.xlu0 %1573  ;;  %v3372_v63 = vld [vmem:[#allocation4 + $0x238] sm:$0xf0] }
 0x2bf   : >> { %3630 = vmatpush.bf16.msra.mxu3 %v5613_v50  ;;  %2464 = vmatpush.bf16.msra.mxu0 %v3259_v37  ;;  %v1577_v44 = vsel %vm1575_vm14, %v5926_v41, %v1574_v49  ;;  %v1583_v15 = vsel %vm1575_vm14, %v1574_v49, %v5927_v51  ;;  %v2299_v41 = vpop.f32.mrf.mxu0 }
 0x2c0   : >> { %v1601_v21 = vmul.f32 %v1589_v36, %v1577_v44  ;;  %v1602_v20 = vmul.f32 %v1590_v25, %v1583_v15  ;;  %v3231_v36 = vor.u32 %v3557_v7, %v3228_v39  ;;  %v3591_v25 = vld [vmem:[#allocation4 + $0x214] sm:$0xf0] }
 0x2c2   : >> { %v1606_v11 = vpack.c.bf16 %v1602_v20, %v1601_v21 }
 0x2c3   : >> { %2465 = vmatpush.bf16.msra.mxu0 %v3243_v56  ;;  %3631 = vmatpush.bf16.msra.mxu3 %v5626_v58  ;;  %v3354_v12 = vld [vmem:[#allocation4 + $0x208] sm:$0xf]  ;;  %v3589_v46 = vld [vmem:[#allocation4 + $0x20c] sm:$0xf] }
 0x2c4   : >> { %v3370_v19 = vld [vmem:[#allocation4 + $0x228] sm:$0xf]  ;;  %1610 = vst [vmem:[#allocation4 + $0x318] sm:$0xff] %v1606_v11  ;;  %v3355_v62 = vor.u32 %v3591_v25, %v3354_v12 }
 0x2c5   : >> { %v3371_v57 = vor.u32 %v3595_v10, %v3370_v19 }
 0x2c7   : >> { %2466 = vmatpush.bf16.msra.mxu0 %v3227_v13  ;;  %2484 = vmatpush.bf16.msra.mxu1 %v3371_v57 }
 0x2c8   : >> { %3632 = vmatpush.bf16.msra.mxu3 %v3231_v36 }
 0x2ca   : >> { %2467 = vmatmul.bf16.vlgmr.msra.gmra.mxu0 %v5328_v5 }
 0x2cb   : >> { %2535 = vmatpush.bf16.msrb.mxu0 %v5415_v32  ;;  %2485 = vmatpush.bf16.msra.mxu1 %v3355_v62  ;;  %v3623_v60 = vld [vmem:[#allocation4 + $0x314] sm:$0xf0]  ;;  %v3484_v18 = vld [vmem:[#allocation4 + $0x318] sm:$0xf0] }
 0x2cc   : >> { %2548 = vmatmul.bf16.vlgmr.msra.gmra.mxu3 %v5407_v48  ;;  %v3483_v61 = vor.u32 %v3623_v60, %v3482_v9  ;;  %v3487_v32 = vor.u32 %v3621_v55, %v3484_v18 }
 0x2ce   : >> { %2486 = vmatmul.bf16.vlgmr.msra.gmra.mxu1 %v5378_v27  ;;  %2504 = vmatpush.bf16.msra.mxu2 %v3483_v61 }
 0x2cf   : >> { %2536 = vmatpush.bf16.msrb.mxu0 %v5456_v24  ;;  %2554 = vmatpush.bf16.msrb.mxu1 %v3471_v23  ;;  %v3439_v24 = vor.u32 %v3609_v31, %v3436_v30 }
 0x2d1   : >> { %3492 = vmatmul.msk.bf16.vlgmr.msra.gmra.mxu2 %vm2281_vm0, %v5918_v59 }
 0x2d2   : >> { %2580 = vmatpush.bf16.msrb.mxu2 %v3487_v32 }
 0x2d3   : >> { %2537 = vmatpush.bf16.msrb.mxu0 %v5491_v22  ;;  %2555 = vmatpush.bf16.msrb.mxu1 %v3455_v17  ;;  %v3597_v22 = vld [vmem:[#allocation4 + $0x24c] sm:$0xf] }
 0x2d4   : >> { %v3391_v34 = vor.u32 %v3597_v22, %v3388_v16 }
 0x2d7   : >> { %2538 = vmatpush.bf16.msrb.mxu0 %v5503_v47  ;;  %2556 = vmatpush.bf16.msrb.mxu1 %v3439_v24  ;;  %v3593_v47 = vld [vmem:[#allocation4 + $0x22c] sm:$0xf] }
 0x2da   : >> { %2472 = vmatmul.bf16.gmra.mxu0 %v5407_v48  ;;  %v3356_v48 = vld [vmem:[#allocation4 + $0x218] sm:$0xf0] }
 0x2db   : >> { %2539 = vmatpush.bf16.msrb.mxu0 %v5540_v0  ;;  %2557 = vmatpush.bf16.msrb.mxu1 %v3423_v29  ;;  %v3375_v0 = vor.u32 %v3593_v47, %v3372_v63  ;;  %v3359_v4 = vor.u32 %v3589_v46, %v3356_v48 }
 0x2de   : >> { %2491 = vmatmul.bf16.gmra.mxu1 %v5458_v3 }
 0x2df   : >> { %2540 = vmatpush.bf16.msrb.mxu0 %v5613_v50  ;;  %2558 = vmatpush.bf16.msrb.mxu1 %v3407_v45  ;;  %v2356_v50 = vpop.f32.mrf.mxu3 }
 0x2e1   : >> { %3493 = vmatmul.msk.bf16.gmra.mxu2 %vm2281_vm0, %v5925_v54  ;;  %v2302_v26 = vpop.f32.mrf.mxu0 }
 0x2e3   : >> { %2541 = vmatpush.bf16.msrb.mxu0 %v5626_v58  ;;  %2559 = vmatpush.bf16.msrb.mxu1 %v3391_v34 }
 0x2e7   : >> { %2542 = vmatpush.bf16.msrb.mxu0 %v3231_v36  ;;  %2560 = vmatpush.bf16.msrb.mxu1 %v3375_v0  ;;  %v2359_v37 = vpop.f32.mrf.mxu3 }
 0x2e9   : >> { %v2304_v10 = vpop.f32.mrf.mxu0 }
 0x2ea   : >> { %2543 = vmatmul.bf16.vlgmr.msrb.gmra.mxu0 %v5328_v5 }
 0x2eb   : >> { %2561 = vmatpush.bf16.msrb.mxu1 %v3359_v4  ;;  %v5652_v44 = vpop.permute.xlu0 %1725 }
 0x2ec   : >> { %v2298_v5 = vadd.f32 %v2297_v43, %v5652_v44 }
 0x2ee   : >> { %2562 = vmatmul.bf16.vlgmr.msrb.gmra.mxu1 %v5378_v27 }
 0x2ef   : >> { %v2361_v8 = vpop.f32.mrf.mxu3  ;;  %v5655_v38 = vpop.permute.xlu1 %1730 }
 0x2f0   : >> { %v2300_v20 = vadd.f32 %v2299_v41, %v5655_v38 }
 0x2f1   : >> { %3494 = vmatmul.msk.bf16.vlgmr.msrb.gmra.mxu2 %vm2281_vm0, %v5918_v59 }
 0x2f7   : >> { %v2373_v51 = vpop.f32.mrf.mxu3  ;;  %v5658_v11 = vpop.permute.xlu2 %1735 }
 0x2f8   : >> { %v2303_v19 = vadd.f32 %v2302_v26, %v5658_v11  ;;  %v2374_v31 = vadd.f32 %v2373_v51, %v5652_v44 }
 0x2fa   : >> { %v2316_v49 = vpop.f32.mrf.mxu1 }
 0x2fb   : >> { %v2317_v27 = vadd.f32 %v2316_v49, %v2298_v5 }
 0x2fd   : >> { %v2392_v60 = vpop.f32.mrf.mxu0 }
 0x2fe   : >> { %2567 = vmatmul.bf16.gmra.mxu1 %v5458_v3  ;;  %v5663_v25 = vpop.permute.xlu1 %1740  ;;  %v2393_v6 = vadd.f32 %v2392_v60, %v2374_v31 }
 0x2ff   : >> { %v2375_v56 = vpop.f32.mrf.mxu3  ;;  %v2305_v9 = vadd.f32 %v2304_v10, %v5663_v25 }
 0x300   : >> { %v2376_v45 = vadd.f32 %v2375_v56, %v5655_v38 }
 0x301   : >> { %3495 = vmatmul.msk.bf16.gmra.mxu2 %vm2281_vm0, %v5925_v54 }
 0x302   : >> { %v2318_v15 = vpop.f32.mrf.mxu1 }
 0x303   : >> { %v2319_v54 = vadd.f32 %v2318_v15, %v2300_v20 }
 0x307   : >> { %v5661_v57 = vpop.f32.mrf.mxu3 }
 0x30c   : >> { %v2321_v58 = vpop.f32.mrf.mxu1 }
 0x30d   : >> { %v2335_v59 = vpop.f32.mrf.mxu2  ;;  %v2322_v12 = vadd.f32 %v2321_v58, %v2303_v19 }
 0x30e   : >> { %v2336_v21 = vadd.f32 %v2335_v59, %v2317_v27 }
 0x30f   : >> { %v5666_v17 = vpop.f32.mrf.mxu3 }
 0x310   : >> { %v2355_v3 = vadd.f32 %v2354_v52, %v2336_v21  ;;  %v2394_v52 = vpop.f32.mrf.mxu0 }
 0x311   : >> { %v2395_v48 = vadd.f32 %v2394_v52, %v2376_v45 }
 0x312   : >> { %v3496_v42 = vmul.f32 -1.442695, %v2355_v3 }
 0x314   : >> { %3733 = vpow2.f32 %v3496_v42  ;;  %v2323_v62 = vpop.f32.mrf.mxu1  ;;  %v2824_v42 = vld [vmem:[#allocation3] sm:$0xff] }
 0x315   : >> { %v2337_v39 = vpop.f32.mrf.mxu2  ;;  %v2324_v61 = vadd.f32 %v2323_v62, %v2305_v9 }
 0x316   : >> { %v2338_v14 = vadd.f32 %v2337_v39, %v2319_v54  ;;  %v2379_v54 = vadd.f32 %v5661_v57, %v5658_v11 }
 0x317   : >> { %v5673_v4 = vpop.f32.mrf.mxu3 }
 0x318   : >> { %v2357_v13 = vadd.f32 %v2356_v50, %v2338_v14 }
 0x31a   : >> { %v3734_v7 = vpop.eup %3733  ;;  %v3500_v36 = vmul.f32 -1.442695, %v2357_v13 }
 0x31b   : >> { %v2604_v53 = vadd.f32 1.0, %v3734_v7 }
 0x31c   : >> { %3735 = vpow2.f32 %v3500_v36  ;;  %v2411_v40 = vpop.f32.mrf.mxu1  ;;  %v2397_v36 = vpop.f32.mrf.mxu0 }
 0x31d   : >> { %3737 = vrcp.f32 %v2604_v53  ;;  %v2340_v28 = vpop.f32.mrf.mxu2  ;;  %v2412_v0 = vadd.f32 %v2411_v40, %v2393_v6  ;;  %vm2613_vm10 = vweird.f32 %v2604_v53  ;;  %v2617_v49 = vand.u32 2147483647, %v2604_v53 }
 0x31e   : >> { %v2341_v23 = vadd.f32 %v2340_v28, %v2322_v12  ;;  %v2619_v41 = vand.u32 2147483648, %v2604_v53  ;;  %v2398_v57 = vadd.f32 %v2397_v36, %v2379_v54 }
 0x31f   : >> { %vm2618_vm15 = vcmp.eq.f32.partialorder %v2617_v49, 8.507059e+37 }
 0x320   : >> { %v2360_v1 = vadd.f32 %v2359_v37, %v2341_v23  ;;  %v2620_v58 = vor.u32 1.1754944e-38, %v2619_v41  ;;  %v5684_v23 = vpop.f32.mrf.mxu3 }
 0x322   : >> { %v3736_v55 = vpop.eup %3735  ;;  %v3504_v18 = vmul.f32 -1.442695, %v2360_v1 }
 0x323   : >> { %v3738_v35 = vpop.eup %3737  ;;  %v2680_v32 = vadd.f32 1.0, %v3736_v55 }
 0x324   : >> { %3739 = vpow2.f32 %v3504_v18  ;;  %v2609_v30 = vmul.f32 %v3738_v35, %v2604_v53  ;;  %vm2614_vm9 = vweird.f32 %v3738_v35  ;;  %v2413_v51 = vpop.f32.mrf.mxu1  ;;  %v2399_v6 = vpop.f32.mrf.mxu0 }
 0x325   : >> { %3741 = vrcp.f32 %v2680_v32  ;;  %v2342_v24 = vpop.f32.mrf.mxu2  ;;  %v2693_v15 = vand.u32 2147483647, %v2680_v32  ;;  %vm5675_vm12 = vmor %vm2613_vm10, %vm2614_vm9  ;;  %vm2689_vm13 = vweird.f32 %v2680_v32  ;;  %v2414_v19 = vadd.f32 %v2413_v51, %v2395_v48 }
 0x326   : >> { %v2343_v33 = vadd.f32 %v2342_v24, %v2324_v61  ;;  %v2610_v29 = vsub.f32 1.0, %v2609_v30 }
 0x327   : >> { %vm2694_vm0 = vcmp.eq.f32.partialorder %v2693_v15, 8.507059e+37 }
 0x328   : >> { %v2362_v2 = vadd.f32 %v2361_v8, %v2343_v33  ;;  %v2611_v16 = vmul.f32 %v3738_v35, %v2610_v29  ;;  %v2695_v8 = vand.u32 2147483648, %v2680_v32 }
 0x32a   : >> { %v3740_v22 = vpop.eup %3739  ;;  %3743 = vtanh.f32 %v2362_v2  ;;  %v2612_v37 = vadd.f32 %v3738_v35, %v2611_v16  ;;  %v2696_v3 = vor.u32 1.1754944e-38, %v2695_v8  ;;  %v2381_v2 = vadd.f32 %v5666_v17, %v5663_v25 }
 0x32b   : >> { %v3742_v34 = vpop.eup %3741  ;;  %v5670_v47 = vadd.f32 1.0, %v3740_v22 }
 0x32c   : >> { %v2685_v63 = vmul.f32 %v3742_v34, %v2680_v32  ;;  %vm2690_vm11 = vweird.f32 %v3742_v34  ;;  %v2616_v21 = vsel %vm5675_vm12, %v3738_v35, %v2612_v37  ;;  %v2416_v61 = vpop.f32.mrf.mxu1 }
 0x32d   : >> { %3745 = vrcp.f32 %v5670_v47  ;;  %v2430_v46 = vpop.f32.mrf.mxu2  ;;  %vm2691_vm14 = vmor %vm2689_vm13, %vm2690_vm11  ;;  %v2621_v10 = vsel %vm2618_vm15, %v2620_v58, %v2616_v21  ;;  %v2771_v32 = vand.u32 2147483648, %v5670_v47  ;;  %vm2765_vm2 = vweird.f32 %v5670_v47 }
 0x32e   : >> { %v2686_v50 = vsub.f32 1.0, %v2685_v63  ;;  %v2431_v43 = vadd.f32 %v2430_v46, %v2412_v0  ;;  %v2769_v31 = vand.u32 2147483647, %v5670_v47  ;;  %v2417_v30 = vadd.f32 %v2416_v61, %v2398_v57 }
 0x32f   : >> { %v2772_v33 = vor.u32 1.1754944e-38, %v2771_v32 }
 0x330   : >> { %v2687_v5 = vmul.f32 %v3742_v34, %v2686_v50  ;;  %v3497_v27 = vmul.f32 -1.442695, %v2431_v43  ;;  %v3744_v59 = vpop.eup %3743  ;;  %vm2770_vm4 = vcmp.eq.f32.partialorder %v2769_v31, 8.507059e+37  ;;  %v2400_v50 = vadd.f32 %v2399_v6, %v2381_v2 }
 0x331   : >> { %v2832_v62 = vmul.f32 %v3744_v59, %v2621_v10 }
 0x332   : >> { %v2688_v20 = vadd.f32 %v3742_v34, %v2687_v5  ;;  %3747 = vpow2.f32 %v3497_v27 }
 0x333   : >> { %v3746_v56 = vpop.eup %3745 }
 0x334   : >> { %v2761_v39 = vmul.f32 %v3746_v56, %v5670_v47  ;;  %v2692_v14 = vsel %vm2691_vm14, %v3742_v34, %v2688_v20  ;;  %vm2766_vm1 = vweird.f32 %v3746_v56  ;;  %v5694_v47 = vpop.f32.mrf.mxu3  ;;  %v2418_v37 = vpop.f32.mrf.mxu1 }
 0x335   : >> { %v2697_v13 = vsel %vm2694_vm0, %v2696_v3, %v2692_v14  ;;  %v2432_v7 = vpop.f32.mrf.mxu2  ;;  %vm2767_vm3 = vmor %vm2765_vm2, %vm2766_vm1  ;;  %v2419_v8 = vadd.f32 %v2418_v37, %v2400_v50 }
 0x336   : >> { %v2762_v12 = vsub.f32 1.0, %v2761_v39  ;;  %v2828_v53 = vmul.f32 %v2824_v42, %v2697_v13  ;;  %v2433_v28 = vadd.f32 %v2432_v7, %v2414_v19 }
 0x338   : >> { %v3748_v9 = vpop.eup %3747  ;;  %v2763_v1 = vmul.f32 %v3746_v56, %v2762_v12  ;;  %v2836_v60 = vadd.f32 %v2832_v62, %v2828_v53  ;;  %v3501_v55 = vmul.f32 -1.442695, %v2433_v28 }
 0x339   : >> { %v5686_v18 = vadd.f32 1.0, %v3748_v9  ;;  %v2825_v9 = vld [vmem:[#allocation3 + $0x18] sm:$0xff] }
 0x33a   : >> { %v2764_v35 = vadd.f32 %v3746_v56, %v2763_v1  ;;  %3749 = vtanh.f32 %v2836_v60  ;;  %2848 = vst [vmem:[#allocation3] sm:$0xff] %v2836_v60 }
 0x33b   : >> { %3751 = vrcp.f32 %v5686_v18  ;;  %v2632_v42 = vand.u32 2147483647, %v5686_v18  ;;  %v2634_v54 = vand.u32 2147483648, %v5686_v18  ;;  %vm2628_vm7 = vweird.f32 %v5686_v18 }
 0x33c   : >> { %3753 = vpow2.f32 %v3501_v55  ;;  %v2768_v24 = vsel %vm2767_vm3, %v3746_v56, %v2764_v35  ;;  %v5700_v59 = vpop.f32.mrf.mxu3  ;;  %v2450_v56 = vadd.f32 %v5673_v4, %v5652_v44 }
 0x33d   : >> { %v2435_v40 = vpop.f32.mrf.mxu2  ;;  %v2773_v22 = vsel %vm2770_vm4, %v2772_v33, %v2768_v24  ;;  %vm2633_vm11 = vcmp.eq.f32.partialorder %v2632_v42, 8.507059e+37  ;;  %v2635_v28 = vor.u32 1.1754944e-38, %v2634_v54  ;;  %v2452_v33 = vadd.f32 %v5684_v23, %v5655_v38 }
 0x33e   : >> { %v2436_v29 = vadd.f32 %v2435_v40, %v2417_v30 }
 0x340   : >> { %v3750_v45 = vpop.eup %3749  ;;  %v3505_v16 = vmul.f32 -1.442695, %v2436_v29 }
 0x341   : >> { %v3752_v52 = vpop.eup %3751  ;;  %v2844_v34 = vmul.f32 %v3750_v45, %v2773_v22 }
 0x342   : >> { %v3754_v63 = vpop.eup %3753  ;;  %v2624_v0 = vmul.f32 %v3752_v52, %v5686_v18  ;;  %3755 = vpow2.f32 %v3505_v16  ;;  %vm2629_vm5 = vweird.f32 %v3752_v52 }
 0x343   : >> { %v2856_v46 = vrot.slane %v2844_v34, 4  ;;  %v2681_v48 = vadd.f32 1.0, %v3754_v63  ;;  %vm5707_vm9 = vmor %vm2628_vm7, %vm2629_vm5 }
 0x344   : >> { %v2625_v17 = vsub.f32 1.0, %v2624_v0  ;;  %v2525_v32 = vpop.f32.mrf.mxu3 }
 0x345   : >> { %2864 = vst [vmem:[#allocation2 + $0x30] sm:$0xf0] %v2856_v46  ;;  %3757 = vrcp.f32 %v2681_v48  ;;  %v2437_v43 = vpop.f32.mrf.mxu2  ;;  %v2710_v58 = vand.u32 2147483648, %v2681_v48  ;;  %v2708_v19 = vand.u32 2147483647, %v2681_v48  ;;  %vm2704_vm8 = vweird.f32 %v2681_v48 }
 0x346   : >> { %2868 = vst [vmem:[#allocation2 + $0x8] sm:$0xf] %v2856_v46  ;;  %v2438_v5 = vadd.f32 %v2437_v43, %v2419_v8  ;;  %v2626_v15 = vmul.f32 %v3752_v52, %v2625_v17 }
 0x347   : >> { %v2468_v49 = vpop.f32.mrf.mxu0  ;;  %v2711_v62 = vor.u32 1.1754944e-38, %v2710_v58  ;;  %vm2709_vm12 = vcmp.eq.f32.partialorder %v2708_v19, 8.507059e+37 }
 0x348   : >> { %v3756_v41 = vpop.eup %3755  ;;  %v2627_v3 = vadd.f32 %v3752_v52, %v2626_v15  ;;  %v2469_v12 = vadd.f32 %v2468_v49, %v2450_v56 }
 0x349   : >> { %v5697_v51 = vadd.f32 1.0, %v3756_v41 }
 0x34a   : >> { %v2631_v7 = vsel %vm5707_vm9, %v3752_v52, %v2627_v3  ;;  %v2457_v3 = vadd.f32 %v5700_v59, %v5663_v25 }
 0x34b   : >> { %v3758_v27 = vpop.eup %3757  ;;  %3759 = vrcp.f32 %v5697_v51  ;;  %v2487_v26 = vpop.f32.mrf.mxu1  ;;  %v2636_v18 = vsel %vm2633_vm11, %v2635_v28, %v2631_v7  ;;  %v2786_v22 = vand.u32 2147483648, %v5697_v51  ;;  %vm2780_vm14 = vweird.f32 %v5697_v51 }
 0x34c   : >> { %v2700_v21 = vmul.f32 %v3758_v27, %v2681_v48  ;;  %3761 = vtanh.f32 %v2438_v5  ;;  %vm2705_vm6 = vweird.f32 %v3758_v27  ;;  %v2488_v57 = vadd.f32 %v2487_v26, %v2469_v12  ;;  %v2527_v37 = vpop.f32.mrf.mxu3 }
 0x34d   : >> { %vm2706_vm10 = vmor %vm2704_vm8, %vm2705_vm6  ;;  %v2784_v52 = vand.u32 2147483647, %v5697_v51  ;;  %v2787_v46 = vor.u32 1.1754944e-38, %v2786_v22  ;;  %v2455_v48 = vadd.f32 %v5694_v47, %v5658_v11  ;;  %v2526_v12 = vadd.f32 %v2525_v32, %v5652_v44 }
 0x34e   : >> { %v2701_v20 = vsub.f32 1.0, %v2700_v21 }
 0x34f   : >> { %v2470_v39 = vpop.f32.mrf.mxu0  ;;  %vm2785_vm0 = vcmp.eq.f32.partialorder %v2784_v52, 8.507059e+37 }
 0x350   : >> { %v2702_v14 = vmul.f32 %v3758_v27, %v2701_v20  ;;  %v2471_v16 = vadd.f32 %v2470_v39, %v2452_v33 }
 0x351   : >> { %v3760_v10 = vpop.eup %3759 }
 0x352   : >> { %v2776_v4 = vmul.f32 %v3760_v10, %v5697_v51  ;;  %v2703_v36 = vadd.f32 %v3758_v27, %v2702_v14  ;;  %v3762_v53 = vpop.eup %3761  ;;  %vm2781_vm13 = vweird.f32 %v3760_v10 }
 0x353   : >> { %v2489_v1 = vpop.f32.mrf.mxu1  ;;  %v2833_v24 = vmul.f32 %v3762_v53, %v2636_v18  ;;  %vm2782_vm15 = vmor %vm2780_vm14, %vm2781_vm13 }
 0x354   : >> { %v2777_v60 = vsub.f32 1.0, %v2776_v4  ;;  %v2707_v55 = vsel %vm2706_vm10, %v3758_v27, %v2703_v36  ;;  %v2506_v35 = vpop.f32.mrf.mxu2  ;;  %v2490_v63 = vadd.f32 %v2489_v1, %v2471_v16  ;;  %v5726_v54 = vpop.f32.mrf.mxu3 }
 0x355   : >> { %v2712_v61 = vsel %vm2709_vm12, %v2711_v62, %v2707_v55  ;;  %v2507_v40 = vadd.f32 %v2506_v35, %v2488_v57 }
 0x356   : >> { %v2778_v31 = vmul.f32 %v3760_v10, %v2777_v60  ;;  %v2829_v30 = vmul.f32 %v2825_v9, %v2712_v61 }
 0x357   : >> { %v3498_v2 = vmul.f32 -1.442695, %v2507_v40  ;;  %v2473_v45 = vpop.f32.mrf.mxu0 }
 0x358   : >> { %v2837_v29 = vadd.f32 %v2833_v24, %v2829_v30  ;;  %v2779_v6 = vadd.f32 %v3760_v10, %v2778_v31  ;;  %v2474_v51 = vadd.f32 %v2473_v45, %v2455_v48 }
 0x35a   : >> { %3763 = vtanh.f32 %v2837_v29  ;;  %2849 = vst [vmem:[#allocation3 + $0x18] sm:$0xff] %v2837_v29  ;;  %v2783_v0 = vsel %vm2782_vm15, %v3760_v10, %v2779_v6  ;;  %v2528_v29 = vadd.f32 %v2527_v37, %v5655_v38 }
 0x35b   : >> { %3765 = vpow2.f32 %v3498_v2  ;;  %v2492_v34 = vpop.f32.mrf.mxu1  ;;  %v2788_v43 = vsel %vm2785_vm0, %v2787_v46, %v2783_v0 }
 0x35c   : >> { %v2508_v23 = vpop.f32.mrf.mxu2  ;;  %v2493_v21 = vadd.f32 %v2492_v34, %v2474_v51  ;;  %v5733_v55 = vpop.f32.mrf.mxu3 }
 0x35d   : >> { %v2509_v50 = vadd.f32 %v2508_v23, %v2490_v63  ;;  %v2826_v23 = vld [vmem:[#allocation3 + $0x10] sm:$0xff] }
 0x35f   : >> { %v3502_v8 = vmul.f32 -1.442695, %v2509_v50  ;;  %v2475_v27 = vpop.f32.mrf.mxu0 }
 0x360   : >> { %v3764_v17 = vpop.eup %3763  ;;  %v2476_v14 = vadd.f32 %v2475_v27, %v2457_v3  ;;  %v2531_v27 = vadd.f32 %v5726_v54, %v5658_v11 }
 0x361   : >> { %v3766_v49 = vpop.eup %3765  ;;  %v2845_v41 = vmul.f32 %v3764_v17, %v2788_v43  ;;  %3767 = vpow2.f32 %v3502_v8 }
 0x362   : >> { %v5721_v5 = vadd.f32 1.0, %v3766_v49 }
 0x363   : >> { %v2857_v15 = vrot.slane %v2845_v41, 4  ;;  %v2494_v26 = vpop.f32.mrf.mxu1 }
 0x364   : >> { %3769 = vrcp.f32 %v5721_v5  ;;  %v2511_v47 = vpop.f32.mrf.mxu2  ;;  %v2495_v13 = vadd.f32 %v2494_v26, %v2476_v14  ;;  %v2647_v44 = vand.u32 2147483647, %v5721_v5  ;;  %v2649_v32 = vand.u32 2147483648, %v5721_v5 }
 0x365   : >> { %2865 = vst [vmem:[#allocation2] sm:$0xf0] %v2857_v15  ;;  %v2512_v20 = vadd.f32 %v2511_v47, %v2493_v21  ;;  %vm2643_vm3 = vweird.f32 %v5721_v5 }
 0x366   : >> { %2869 = vst [vmem:[#allocation2 + $0x20] sm:$0xf] %v2857_v15  ;;  %vm2648_vm7 = vcmp.eq.f32.partialorder %v2647_v44, 8.507059e+37  ;;  %v2650_v0 = vor.u32 1.1754944e-38, %v2649_v32 }
 0x367   : >> { %v3768_v56 = vpop.eup %3767  ;;  %v3506_v58 = vmul.f32 -1.442695, %v2512_v20  ;;  %v2544_v36 = vpop.f32.mrf.mxu0 }
 0x368   : >> { %v2682_v42 = vadd.f32 1.0, %v3768_v56  ;;  %v2545_v60 = vadd.f32 %v2544_v36, %v2526_v12 }
 0x369   : >> { %3771 = vpow2.f32 %v3506_v58 }
 0x36a   : >> { %v3770_v39 = vpop.eup %3769  ;;  %3773 = vrcp.f32 %v2682_v42  ;;  %v2725_v35 = vand.u32 2147483648, %v2682_v42  ;;  %v2723_v31 = vand.u32 2147483647, %v2682_v42  ;;  %vm2719_vm5 = vweird.f32 %v2682_v42 }
 0x36b   : >> { %v2639_v19 = vmul.f32 %v3770_v39, %v5721_v5  ;;  %v2563_v10 = vpop.f32.mrf.mxu1  ;;  %vm2644_vm1 = vweird.f32 %v3770_v39  ;;  %v2549_v5 = vpop.f32.mrf.mxu3 }
 0x36c   : >> { %v2513_v7 = vpop.f32.mrf.mxu2  ;;  %v2564_v61 = vadd.f32 %v2563_v10, %v2545_v60  ;;  %vm5739_vm4 = vmor %vm2643_vm3, %vm2644_vm1  ;;  %v2726_v63 = vor.u32 1.1754944e-38, %v2725_v35  ;;  %vm2724_vm8 = vcmp.eq.f32.partialorder %v2723_v31, 8.507059e+37 }
 0x36d   : >> { %v2640_v4 = vsub.f32 1.0, %v2639_v19  ;;  %v2514_v53 = vadd.f32 %v2513_v7, %v2495_v13 }
 0x36f   : >> { %v3772_v62 = vpop.eup %3771  ;;  %v2641_v59 = vmul.f32 %v3770_v39, %v2640_v4  ;;  %3775 = vtanh.f32 %v2514_v53  ;;  %v2546_v6 = vpop.f32.mrf.mxu0  ;;  %v2533_v4 = vadd.f32 %v5733_v55, %v5663_v25 }
 0x370   : >> { %v3774_v28 = vpop.eup %3773  ;;  %v5730_v9 = vadd.f32 1.0, %v3772_v62  ;;  %v2547_v48 = vadd.f32 %v2546_v6, %v2528_v29 }
 0x371   : >> { %v2715_v1 = vmul.f32 %v3774_v28, %v2682_v42  ;;  %v2642_v18 = vadd.f32 %v3770_v39, %v2641_v59  ;;  %vm2720_vm2 = vweird.f32 %v3774_v28 }
 0x372   : >> { %3777 = vrcp.f32 %v5730_v9  ;;  %vm2721_vm6 = vmor %vm2719_vm5, %vm2720_vm2  ;;  %v2801_v56 = vand.u32 2147483648, %v5730_v9  ;;  %vm2795_vm10 = vweird.f32 %v5730_v9  ;;  %v2799_v58 = vand.u32 2147483647, %v5730_v9 }
 0x373   : >> { %v2716_v57 = vsub.f32 1.0, %v2715_v1  ;;  %v2565_v24 = vpop.f32.mrf.mxu1  ;;  %v2646_v22 = vsel %vm5739_vm4, %v3770_v39, %v2642_v18  ;;  %v2550_v39 = vadd.f32 %v2549_v5, %v2531_v27  ;;  %v2551_v12 = vpop.f32.mrf.mxu3 }
 0x374   : >> { %v2582_v30 = vpop.f32.mrf.mxu2  ;;  %v2651_v50 = vsel %vm2648_vm7, %v2650_v0, %v2646_v22  ;;  %v2566_v49 = vadd.f32 %v2565_v24, %v2547_v48  ;;  %v2802_v11 = vor.u32 1.1754944e-38, %v2801_v56  ;;  %vm2800_vm12 = vcmp.eq.f32.partialorder %v2799_v58, 8.507059e+37 }
 0x375   : >> { %v2717_v40 = vmul.f32 %v3774_v28, %v2716_v57  ;;  %v2583_v33 = vadd.f32 %v2582_v30, %v2564_v61  ;;  %v3776_v45 = vpop.eup %3775  ;;  %v2552_v57 = vadd.f32 %v2551_v12, %v2533_v4 }
 0x376   : >> { %v2834_v8 = vmul.f32 %v3776_v45, %v2651_v50 }
 0x377   : >> { %v2718_v16 = vadd.f32 %v3774_v28, %v2717_v40  ;;  %v3499_v52 = vmul.f32 -1.442695, %v2583_v33 }
 0x378   : >> { %v3778_v34 = vpop.eup %3777 }
 0x379   : >> { %v2791_v38 = vmul.f32 %v3778_v34, %v5730_v9  ;;  %v2722_v46 = vsel %vm2721_vm6, %v3774_v28, %v2718_v16  ;;  %3779 = vpow2.f32 %v3499_v52  ;;  %vm2796_vm9 = vweird.f32 %v3778_v34 }
 0x37a   : >> { %v2727_v37 = vsel %vm2724_vm8, %v2726_v63, %v2722_v46  ;;  %vm2797_vm11 = vmor %vm2795_vm10, %vm2796_vm9 }
 0x37b   : >> { %v2792_v17 = vsub.f32 1.0, %v2791_v38  ;;  %v2830_v43 = vmul.f32 %v2826_v23, %v2727_v37  ;;  %v2568_v21 = vpop.f32.mrf.mxu1  ;;  %v2827_v23 = vld [vmem:[#allocation3 + $0x8] sm:$0xff] }
 0x37c   : >> { %v2584_v41 = vpop.f32.mrf.mxu2  ;;  %v2569_v54 = vadd.f32 %v2568_v21, %v2550_v39 }
 0x37d   : >> { %v2793_v51 = vmul.f32 %v3778_v34, %v2792_v17  ;;  %v2838_v15 = vadd.f32 %v2834_v8, %v2830_v43  ;;  %v2585_v26 = vadd.f32 %v2584_v41, %v2566_v49 }
 0x37f   : >> { %v3780_v47 = vpop.eup %3779  ;;  %v2794_v20 = vadd.f32 %v3778_v34, %v2793_v51  ;;  %3781 = vtanh.f32 %v2838_v15  ;;  %2850 = vst [vmem:[#allocation3 + $0x10] sm:$0xff] %v2838_v15  ;;  %v3503_v3 = vmul.f32 -1.442695, %v2585_v26 }
 0x380   : >> { %v2607_v42 = vadd.f32 1.0, %v3780_v47 }
 0x381   : >> { %3783 = vpow2.f32 %v3503_v3  ;;  %v2798_v14 = vsel %vm2797_vm11, %v3778_v34, %v2794_v20 }
 0x382   : >> { %3785 = vrcp.f32 %v2607_v42  ;;  %v2803_v13 = vsel %vm2800_vm12, %v2802_v11, %v2798_v14  ;;  %vm2658_vm14 = vweird.f32 %v2607_v42  ;;  %v2664_v29 = vand.u32 2147483648, %v2607_v42 }
 0x383   : >> { %v2570_v1 = vpop.f32.mrf.mxu1  ;;  %v2662_v6 = vand.u32 2147483647, %v2607_v42 }
 0x384   : >> { %v2587_v19 = vpop.f32.mrf.mxu2  ;;  %v2571_v61 = vadd.f32 %v2570_v1, %v2552_v57  ;;  %v2665_v0 = vor.u32 1.1754944e-38, %v2664_v29 }
 0x385   : >> { %v3782_v10 = vpop.eup %3781  ;;  %v2588_v7 = vadd.f32 %v2587_v19, %v2569_v54  ;;  %vm2663_vm3 = vcmp.eq.f32.partialorder %v2662_v6, 8.507059e+37 }
 0x386   : >> { %v2846_v36 = vmul.f32 %v3782_v10, %v2803_v13 }
 0x387   : >> { %v3784_v53 = vpop.eup %3783  ;;  %v3507_v62 = vmul.f32 -1.442695, %v2588_v7 }
 0x388   : >> { %v3786_v59 = vpop.eup %3785  ;;  %v2858_v28 = vrot.slane %v2846_v36, 4  ;;  %v2683_v9 = vadd.f32 1.0, %v3784_v53 }
 0x389   : >> { %v2654_v60 = vmul.f32 %v3786_v59, %v2607_v42  ;;  %3787 = vpow2.f32 %v3507_v62  ;;  %vm2659_vm13 = vweird.f32 %v3786_v59 }
 0x38a   : >> { %2866 = vst [vmem:[#allocation2 + $0x18] sm:$0xf0] %v2858_v28  ;;  %3789 = vrcp.f32 %v2683_v9  ;;  %v2740_v33 = vand.u32 2147483648, %v2683_v9  ;;  %v2738_v45 = vand.u32 2147483647, %v2683_v9  ;;  %vm2660_vm0 = vmor %vm2658_vm14, %vm2659_vm13  ;;  %vm2734_vm1 = vweird.f32 %v2683_v9 }
 0x38b   : >> { %2870 = vst [vmem:[#allocation2 + $0x28] sm:$0xf] %v2858_v28  ;;  %v2655_v18 = vsub.f32 1.0, %v2654_v60 }
 0x38c   : >> { %v2589_v35 = vpop.f32.mrf.mxu2  ;;  %v2741_v63 = vor.u32 1.1754944e-38, %v2740_v33  ;;  %vm2739_vm4 = vcmp.eq.f32.partialorder %v2738_v45, 8.507059e+37 }
 0x38d   : >> { %v2590_v44 = vadd.f32 %v2589_v35, %v2571_v61  ;;  %v2656_v55 = vmul.f32 %v3786_v59, %v2655_v18 }
 0x38f   : >> { %v3788_v25 = vpop.eup %3787  ;;  %3791 = vtanh.f32 %v2590_v44  ;;  %v2657_v40 = vadd.f32 %v3786_v59, %v2656_v55 }
 0x390   : >> { %v3790_v32 = vpop.eup %3789  ;;  %v2759_v31 = vadd.f32 1.0, %v3788_v25 }
 0x391   : >> { %v2730_v30 = vmul.f32 %v3790_v32, %v2683_v9  ;;  %vm2735_vm15 = vweird.f32 %v3790_v32  ;;  %v2661_v16 = vsel %vm2660_vm0, %v3786_v59, %v2657_v40 }
 0x392   : >> { %3793 = vrcp.f32 %v2759_v31  ;;  %vm2736_vm2 = vmor %vm2734_vm1, %vm2735_vm15  ;;  %v2666_v48 = vsel %vm2663_vm3, %v2665_v0, %v2661_v16  ;;  %v2816_v5 = vand.u32 2147483648, %v2759_v31  ;;  %vm2810_vm6 = vweird.f32 %v2759_v31 }
 0x393   : >> { %v2731_v24 = vsub.f32 1.0, %v2730_v30  ;;  %v2814_v51 = vand.u32 2147483647, %v2759_v31 }
 0x394   : >> { %v2817_v27 = vor.u32 1.1754944e-38, %v2816_v5 }
 0x395   : >> { %v2732_v2 = vmul.f32 %v3790_v32, %v2731_v24  ;;  %v3792_v22 = vpop.eup %3791  ;;  %vm2815_vm8 = vcmp.eq.f32.partialorder %v2814_v51, 8.507059e+37 }
 0x396   : >> { %v2835_v43 = vmul.f32 %v3792_v22, %v2666_v48 }
 0x397   : >> { %v2733_v52 = vadd.f32 %v3790_v32, %v2732_v2 }
 0x398   : >> { %v3794_v34 = vpop.eup %3793 }
 0x399   : >> { %v2806_v38 = vmul.f32 %v3794_v34, %v2759_v31  ;;  %v2737_v46 = vsel %vm2736_vm2, %v3790_v32, %v2733_v52  ;;  %vm2811_vm5 = vweird.f32 %v3794_v34 }
 0x39a   : >> { %v2742_v50 = vsel %vm2739_vm4, %v2741_v63, %v2737_v46  ;;  %vm2812_vm7 = vmor %vm2810_vm6, %vm2811_vm5 }
 0x39b   : >> { %v2807_v37 = vsub.f32 1.0, %v2806_v38  ;;  %v2831_v17 = vmul.f32 %v2827_v23, %v2742_v50 }
 0x39d   : >> { %v2808_v8 = vmul.f32 %v3794_v34, %v2807_v37  ;;  %v2839_v49 = vadd.f32 %v2835_v43, %v2831_v17 }
 0x39f   : >> { %v2809_v41 = vadd.f32 %v3794_v34, %v2808_v8  ;;  %3795 = vtanh.f32 %v2839_v49  ;;  %2851 = vst [vmem:[#allocation3 + $0x8] sm:$0xff] %v2839_v49 }
 0x3a1   : >> { %v2813_v15 = vsel %vm2812_vm7, %v3794_v34, %v2809_v41 }
 0x3a2   : >> { %v2818_v21 = vsel %vm2815_vm8, %v2817_v27, %v2813_v15 }
 0x3a5   : >> { %v3796_v26 = vpop.eup %3795 }
 0x3a6   : >> { %v2847_v47 = vmul.f32 %v3796_v26, %v2818_v21 }
 0x3a7   : > { %303 = sbr.rel (!%p300_p8) target bundleno = 69 (0x45), region = 125 }
 0x3a8   : >> { %v2859_v20 = vrot.slane %v2847_v47, 4 }
 0x3aa   : >> { %2867 = vst [vmem:[#allocation2 + $0x10] sm:$0xf0] %v2859_v20 }
 0x3ab   : >> { %2871 = vst [vmem:[#allocation2 + $0x38] sm:$0xf] %v2859_v20 }
 0x3ac PF: > { %v2872_v56 = vld [vmem:[#allocation2 + $0x30] sm:$0xf0]  ;;  %v2876_v3 = vld [vmem:[#allocation2 + $0x8] sm:$0xf]  ;;  %vm2888_vm9 = vcmask 1043456   ;;  %s3624_s12 = sshll.u32 %s4056_s0, 5 }
 0x3ad   : > { %v2889_v58 = vrot.slane %v2872_v56, 4  ;;  %v2890_v42 = vrot.slane %v2876_v3, 4  ;;  %v2873_v39 = vld [vmem:[#allocation2] sm:$0xf0]  ;;  %v2877_v14 = vld [vmem:[#allocation2 + $0x20] sm:$0xf]  ;;  %s2921_s21 = scalar_lea.hbm %s5804_s5, %s3624_s12 }
 0x3ae   : > { %v2892_v11 = vrot.slane %v2873_v39, 4  ;;  %v2893_v54 = vrot.slane %v2877_v14, 4  ;;  %v2874_v19 = vld [vmem:[#allocation2 + $0x18] sm:$0xf0]  ;;  %v2878_v10 = vld [vmem:[#allocation2 + $0x28] sm:$0xf] }
 0x3af   : > { %v2891_v13 = vsel %vm2888_vm9, %v2889_v58, %v2890_v42  ;;  %v2895_v4 = vrot.slane %v2874_v19, 4  ;;  %v2896_v7 = vrot.slane %v2878_v10, 4  ;;  %s2923_s29 = sshll.u32 %s4160_s17, 4  ;;  %s2925_s13 = sshll.u32 %s2921_s21, 4  ;;  %s2924_s29 = int_to_ptr.vmem [resolvable:$true] %s2923_s29  ;;  %s2926_s13 = int_to_ptr.hbm [resolvable:$true] %s2925_s13 }
 0x3b0   : > { %2905 = vst [vmem:[%s4160_s17] sm:$0xff] %v2891_v13  ;;  %v2894_v53 = vsel %vm2888_vm9, %v2892_v11, %v2893_v54  ;;  %s2910_s14 = scalar_lea.sflag [#allocation9], %s4134_s26  ;;  %s3902_s18 = sshra.s32 %s2926_s13, 4  ;;  %s3903_s18 = int_to_ptr.hbm [resolvable:$true] %s3902_s18 }
 0x3b1   : > { %v2875_v36 = vld [vmem:[#allocation2 + $0x10] sm:$0xf0]  ;;  %2906 = vst [vmem:[%s4160_s17 + $0x8] sm:$0xff] %v2894_v53  ;;  %v2897_v28 = vsel %vm2888_vm9, %v2895_v4, %v2896_v7  ;;  %s3904_s0 = scalar_lea.hbm %s3903_s18, 32  ;;  %s3908_s11 = scalar_lea.hbm %s5804_s5, 64 }
 0x3b2   : > { %v2879_v12 = vld [vmem:[#allocation2 + $0x38] sm:$0xf]  ;;  %v2898_v62 = vrot.slane %v2875_v36, 4  ;;  %2907 = vst [vmem:[%s4160_s17 + $0x10] sm:$0xff] %v2897_v28  ;;  %p3905_p11 = scmp.ne.s32.totalorder %s3903_s18, %s3904_s0  ;;  %p3909_p10 = scmp.lt.s32.totalorder %s3903_s18, %s5804_s5 }
 0x3b3   : > { %v2899_v59 = vrot.slane %v2879_v12, 4  ;;  %p3910_p12 = scmp.lt.s32.totalorder %s3908_s11, %s3904_s0 }
 0x3b4   : > { %p3906_p9 = pnand %p3905_p11, %p4102_p7 }
 0x3b5   : > { %v2900_v9 = vsel %vm2888_vm9, %v2898_v62, %v2899_v59  ;;  %p3911_p13 = por %p3910_p12, %p3909_p10 }
 0x3b6   : > { %2908 = vst [vmem:[%s4160_s17 + $0x18] sm:$0xff] %v2900_v9  ;;  %p3907_p2 = pneg %p3906_p9 }
 0x3b8   : > { %p3912_p0 = pnand %p3911_p13, %p3907_p2 }
 0x3ba   : > { %3915 = shalt.err (!%p3912_p0)
}
 0x3bb   : > { %3640 = dma.vmem_to_hbm [thread:$0]  (%p4102_p7), %s2924_s29, 512, %s2926_s13, %s2910_s14  }
 0x3bc PF: > { %s2937_s26 = sand.u32 1, %s3952_s22   ;;  %p5934_p3 = scmp.ge.s32.totalorder %s3964_s25, 2 }
 0x3bd   : > { %s2938_s17 = scalar_lea.sflag [#allocation9], %s2937_s26 }
 0x3be   : > { %p3651_p5 = pnand %p5934_p3, %p4070_p6 }
 0x3c0   : > { %p3652_p1 = pneg %p3651_p5 }
 0x3c2   : > { %3947 = dma.done.wait (%p3652_p1), %s2938_s17, 512  }
 0x3c3   : > { %3949 = vsyncadd (%p3652_p1), %s2938_s17, 4294966784  ;;  %p27_p4 = scmp.ge.s32.totalorder %s4088_s10, 4   ;;  %s5935_s22 = smov %s3956_s23 }
 0x3c4   : > { %s5936_s23 = smov %s3960_s24  ;;  %s5937_s24 = smov %s4098_s15 }
 0x3c5   : > { %s5938_s25 = smov %s4088_s10  ;;  %29 = sbr.rel (!%p27_p4) target bundleno = 12 (0xc), region = 136 }
 0x3ca   :  { %2944 = vsyncpa [#allocation8], 1 }
 0x3cb   :  { %2946 = vsyncpa [#allocation8 + $0x1], 1 }
 0x3cc   :  { %2947 = vsyncpa [#allocation11], 1 }
 0x3cd   :  { %2949 = vsyncpa [#allocation11 + $0x1], 1 }
 0x3ce   :  { %2950 = vsyncpa [#allocation9], 1 }
 0x3cf   :  { %2952 = vsyncpa [#allocation9 + $0x1], 1 }

</bundles_post_ra>
